<compile_context>
chip_gen: v7x
topology: tpu7x:2x2x1
jax: 0.10.0
libtpu: 0.0.40
codegen_flags: <defaults>
</compile_context>

<pallas_src>
import functools

import numpy as np
import jax
import jax.numpy as jnp
from jax.experimental import pallas as pl
from jax.experimental.pallas import tpu as pltpu

BN_EPS = 1e-3
VMEM_LIMIT = 32 * 1024 * 1024  # safe scoped-VMEM request on v5e/v6e/v7x


# --------------------------------------------------------------------------
# small helpers
# --------------------------------------------------------------------------
def _act(y, name):
    if name == "hardswish":
        return y * jnp.clip(y + 3.0, 0.0, 6.0) * (1.0 / 6.0)
    if name == "relu":
        return jnp.maximum(y, 0.0)
    if name == "hardsigmoid":
        return jnp.clip(y + 3.0, 0.0, 6.0) * (1.0 / 6.0)
    return y


def _make_divisible(ch, divisor=8, min_ch=None):
    if min_ch is None:
        min_ch = divisor
    new_ch = max(min_ch, int(ch + divisor / 2) // divisor * divisor)
    if new_ch < 0.9 * ch:
        new_ch += divisor
    return new_ch


def _interior_mask(H, W, P):
    """(1, (H+2P)*(W+2P)) f32 mask: 1 on the true spatial interior, 0 on halo."""
    Hp, Wp = H + 2 * P, W + 2 * P
    idx = np.arange(Hp * Wp)
    row, col = idx // Wp, idx % Wp
    m = ((row >= P) & (row < P + H) & (col >= P) & (col < P + W))
    return jnp.asarray(m.astype(np.float32).reshape(1, Hp * Wp))


def _valid_mask(span, pitch, Wo):
    """(1, span) f32 mask over the depthwise output plane: 1 where col < Wo."""
    col = np.arange(span) % pitch
    return jnp.asarray((col < Wo).astype(np.float32).reshape(1, span))


# --------------------------------------------------------------------------
# XLA-side prep (stem im2col; phase decomposition only at stride-2 blocks)
# --------------------------------------------------------------------------
def _stem_patches(x_nchw, P):
    """3x3/s2 im2col in bf16, emitted directly in the pitched (halo P) layout."""
    N, C, H, W = x_nchw.shape
    k, s, p = 3, 2, 1
    Ho = (H + 2 * p - k) // s + 1
    Wo = (W + 2 * p - k) // s + 1
    xp = jnp.pad(x_nchw, ((0, 0), (0, 0), (p, p), (p, p)))
    taps = []
    for kh in range(k):
        for kw in range(k):
            taps.append(xp[:, :, kh:kh + (Ho - 1) * s + 1:s,
                               kw:kw + (Wo - 1) * s + 1:s])
    pat = jnp.concatenate(taps, axis=1)                  # (N, 27, Ho, Wo)
    pat = jnp.pad(pat, ((0, 0), (0, 0), (P, P), (P, P)))
    Lp = (Ho + 2 * P) * (Wo + 2 * P)
    return pat.reshape(N, k * k * C, Lp), Ho, Wo


def _phase_decompose(x, H, W, P, p, s, Hph, Wph):
    """Split a stride-s block's input into s*s phase slabs (pitch Wph) so the
    depthwise taps become contiguous lane slices.  Returns (x_flat, mask_h)."""
    N, C, _ = x.shape
    Hp, Wp = H + 2 * P, W + 2 * P
    x4 = x.reshape(N, C, Hp, Wp)
    off = P - p
    xp = x4[:, :, off: off + H + 2 * p, off: off + W + 2 * p]
    slabs = []
    for r in range(s):
        for t in range(s):
            ph = xp[:, :, r::s, t::s]
            ph = jnp.pad(ph, ((0, 0), (0, 0),
                              (0, Hph - ph.shape[2]), (0, Wph - ph.shape[3])))
            slabs.append(ph.reshape(N, C, Hph * Wph))
    x_flat = jnp.concatenate(slabs, axis=2)              # (N, C, s*s*Hph*Wph)

    Hc, Wc = H + 2 * p, W + 2 * p
    masks = []
    for r in range(s):
        for t in range(s):
            py, px = np.meshgrid(np.arange(Hph), np.arange(Wph), indexing="ij")
            iy, ix = s * py + r, s * px + t
            m = ((iy >= p) & (iy < p + H) & (ix >= p) & (ix < p + W)
                 & (iy < Hc) & (ix < Wc))
            masks.append(m.reshape(-1))
    mask_h = jnp.asarray(
        np.concatenate(masks).astype(np.float32).reshape(1, -1))
    return x_flat, mask_h


# --------------------------------------------------------------------------
# Kernel 1: stem 3x3/s2 conv (GEMM) + folded-BN bias + hardswish, pitched out
# --------------------------------------------------------------------------
def _stem_kernel(x_ref, w_ref, b_ref, m_ref, o_ref):
    h = jnp.dot(w_ref[...], x_ref[0], preferred_element_type=jnp.float32)
    h = _act(h + b_ref[...], "hardswish") * m_ref[...]
    o_ref[0] = h.astype(o_ref.dtype)


def stem_conv(patches, w, b, H, W, P):
    N, K, Lp = patches.shape
    C0 = w.shape[0]
    mask = _interior_mask(H, W, P)
    return pl.pallas_call(
        _stem_kernel,
        out_shape=jax.ShapeDtypeStruct((N, C0, Lp), jnp.bfloat16),
        grid=(N,),
        in_specs=[pl.BlockSpec((1, K, Lp), lambda n: (n, 0, 0)),
                  pl.BlockSpec((C0, K), lambda n: (0, 0)),
                  pl.BlockSpec((C0, 1), lambda n: (0, 0)),
                  pl.BlockSpec((1, Lp), lambda n: (0, 0))],
        out_specs=pl.BlockSpec((1, C0, Lp), lambda n: (n, 0, 0)),
        compiler_params=pltpu.CompilerParams(
            dimension_semantics=("parallel",),
            vmem_limit_bytes=VMEM_LIMIT),
    )(patches, w, b, mask)


# --------------------------------------------------------------------------
# Kernel 2: fully fused inverted-residual block (expand -> depthwise -> SE ->
# project -> residual), writing the next block's pitched zero-halo layout.
# --------------------------------------------------------------------------
def _block_kernel(*refs, cfg):
    it = iter(refs)
    x_ref = next(it)                  # (1, Cin, Lin) bf16
    if cfg["has_expand"]:
        mh_ref = next(it)             # (1, Lin) f32 interior mask
        ew_ref = next(it)             # (Cexp, Cin) bf16 (BN folded)
        eb_ref = next(it)             # (Cexp, 1) f32
    dww_ref = next(it)                # (Cexp, k*k) f32 (BN folded)
    dwb_ref = next(it)                # (Cexp, 1) f32
    mv_ref = next(it)                 # (1, span) f32 valid-column mask
    if cfg["use_se"]:
        s1w_ref = next(it)            # (Cexp, sq) f32
        s1b_ref = next(it)            # (1, sq) f32
        s2w_ref = next(it)            # (Cexp, sq) f32
        s2b_ref = next(it)            # (Cexp, 1) f32
    pw_ref = next(it)                 # (Cout, Cexp) bf16 (BN folded)
    pb_ref = next(it)                 # (Cout, 1) f32
    o_ref = next(it)                  # (1, Cout, Lp_out) bf16

    act = cfg["act"]
    span = cfg["span"]
    offs = cfg["tap_offsets"]

    x = x_ref[0]                                              # (Cin, Lin) bf16

    # ---- expand 1x1 + BN bias + activation (or pass-through) -------------
    if cfg["has_expand"]:
        h = jnp.dot(ew_ref[...], x, preferred_element_type=jnp.float32)
        h = _act(h + eb_ref[...], act)
        h = h * mh_ref[...]           # re-zero conv-padding / halo positions
    else:
        h = x.astype(jnp.float32)     # halo is already exactly zero

    # ---- depthwise kxk: static lane-shifted slices * per-channel taps ----
    dww = dww_ref[...]
    acc = h[:, offs[0]:offs[0] + span] * dww[:, 0:1]
    for t in range(1, len(offs)):
        acc = acc + h[:, offs[t]:offs[t] + span] * dww[:, t:t + 1]
    y = _act(acc + dwb_ref[...], act)                         # (Cexp, span)

    mask_v = mv_ref[...]                                      # (1, span)

    # ---- squeeze-excite: masked mean -> fc1 relu -> fc2 hsigmoid (VPU) ---
    if cfg["use_se"]:
        pooled = jnp.sum(y * mask_v, axis=1, keepdims=True) * cfg["inv_hw"]
        z1 = jnp.sum(s1w_ref[...] * pooled, axis=0, keepdims=True) + s1b_ref[...]
        z1 = jnp.maximum(z1, 0.0)                             # (1, sq)
        z2 = jnp.sum(s2w_ref[...] * z1, axis=1, keepdims=True) + s2b_ref[...]
        z2 = jnp.clip(z2 + 3.0, 0.0, 6.0) * (1.0 / 6.0)       # (Cexp, 1)
        y = y * z2

    # ---- project 1x1 + BN bias (+ residual), mask garbage columns --------
    out = jnp.dot(pw_ref[...], y.astype(jnp.bfloat16),
                  preferred_element_type=jnp.float32) + pb_ref[...]
    if cfg["use_residual"]:
        out = out + x[:, cfg["res_off"]:cfg["res_off"] + span].astype(jnp.float32)
    out = (out * mask_v).astype(o_ref.dtype)                  # (Cout, span)

    # ---- single lane-dense store in the next block's pitched layout ------
    lead = jnp.zeros((out.shape[0], cfg["store_off"]), o_ref.dtype)
    tail = jnp.zeros((out.shape[0],
                      cfg["Lp_out"] - cfg["store_off"] - span), o_ref.dtype)
    o_ref[0] = jnp.concatenate([lead, out, tail], axis=1)


def fused_block(x, bp, cnf, H, W, P):
    """x: (N, Cin, (H+2P)*(W+2P)) bf16 pitched layout with zero halo."""
    N, Cin, _ = x.shape
    k, s = cnf["kernel"], cnf["stride"]
    exp_c, out_c = cnf["expanded_c"], cnf["out_c"]
    act = "hardswish" if cnf["activation"] == "HS" else "relu"
    has_expand = "expand_w" in bp
    use_se = cnf["use_se"]
    p = (k - 1) // 2
    Wp_in = W + 2 * P

    if s == 1:
        Ho, Wo = H, W
        pitch = Wp_in
        d = P - p
        offsets = [(dy + d) * pitch + (dx + d)
                   for dy in range(k) for dx in range(k)]
        span = (Ho - 1) * pitch + Wo
        x_in = x
        mask_h = _interior_mask(H, W, P) if has_expand else None
        use_res = (Cin == out_c)
        res_off = P * pitch + P
    else:
        Ho = (H + 2 * p - k) // s + 1
        Wo = (W + 2 * p - k) // s + 1
        qmax = (k - 1) // s
        pitch = Wo + 2 * P                 # phase pitch == next block's pitch
        Hph = Ho + qmax
        Lph = Hph * pitch
        x_in, mask_h = _phase_decompose(x, H, W, P, p, s, Hph, pitch)
        offsets = [((dy % s) * s + (dx % s)) * Lph
                   + (dy // s) * pitch + (dx // s)
                   for dy in range(k) for dx in range(k)]
        span = (Ho - 1) * pitch + Wo
        use_res = False
        res_off = 0

    Lin = x_in.shape[2]
    Wp_out = Wo + 2 * P
    Lp_out = (Ho + 2 * P) * Wp_out
    store_off = P * Wp_out + P
    mask_v = _valid_mask(span, pitch, Wo)

    cfg = dict(has_expand=has_expand, use_se=use_se, use_residual=use_res,
               act=act, span=span, tap_offsets=offsets, res_off=res_off,
               store_off=store_off, Lp_out=Lp_out,
               inv_hw=1.0 / float(Ho * Wo))
    kernel = functools.partial(_block_kernel, cfg=cfg)

    inputs = [x_in]
    in_specs = [pl.BlockSpec((1, Cin, Lin), lambda n: (n, 0, 0))]
    if has_expand:
        inputs += [mask_h, bp["expand_w"], bp["expand_b"]]
        in_specs += [pl.BlockSpec((1, Lin), lambda n: (0, 0)),
                     pl.BlockSpec((exp_c, Cin), lambda n: (0, 0)),
                     pl.BlockSpec((exp_c, 1), lambda n: (0, 0))]
    inputs += [bp["dw_w"], bp["dw_b"], mask_v]
    in_specs += [pl.BlockSpec((exp_c, k * k), lambda n: (0, 0)),
                 pl.BlockSpec((exp_c, 1), lambda n: (0, 0)),
                 pl.BlockSpec((1, span), lambda n: (0, 0))]
    if use_se:
        sq = bp["se_fc1_b"].shape[-1]
        inputs += [bp["se_fc1_w"], bp["se_fc1_b"],
                   bp["se_fc2_w"], bp["se_fc2_b"]]
        in_specs += [pl.BlockSpec((exp_c, sq), lambda n: (0, 0)),
                     pl.BlockSpec((1, sq), lambda n: (0, 0)),
                     pl.BlockSpec((exp_c, sq), lambda n: (0, 0)),
                     pl.BlockSpec((exp_c, 1), lambda n: (0, 0))]
    inputs += [bp["project_w"], bp["project_b"]]
    in_specs += [pl.BlockSpec((out_c, exp_c), lambda n: (0, 0)),
                 pl.BlockSpec((out_c, 1), lambda n: (0, 0))]

    out = pl.pallas_call(
        kernel,
        out_shape=jax.ShapeDtypeStruct((N, out_c, Lp_out), jnp.bfloat16),
        grid=(N,),
        in_specs=in_specs,
        out_specs=pl.BlockSpec((1, out_c, Lp_out), lambda n: (n, 0, 0)),
        compiler_params=pltpu.CompilerParams(
            dimension_semantics=("parallel",),
            vmem_limit_bytes=VMEM_LIMIT),
    )(*inputs)
    return out, Ho, Wo


# --------------------------------------------------------------------------
# Kernel 3: head 1x1 conv + hardswish + masked global average pool
# Kernel 4: batched classifier (fc1 -> hardswish -> fc2) over the whole batch
# --------------------------------------------------------------------------
def _head_pool_kernel(x_ref, w_ref, b_ref, m_ref, o_ref, *, inv_hw):
    h = jnp.dot(w_ref[...], x_ref[0], preferred_element_type=jnp.float32)
    h = _act(h + b_ref[...], "hardswish")
    o_ref[0] = jnp.sum(h * m_ref[...], axis=1, keepdims=True) * inv_hw


def head_pool(x, w, b, H, W, P):
    N, Cin, Lp = x.shape
    Ch = w.shape[0]
    mask = _interior_mask(H, W, P)
    kernel = functools.partial(_head_pool_kernel, inv_hw=1.0 / float(H * W))
    out = pl.pallas_call(
        kernel,
        out_shape=jax.ShapeDtypeStruct((N, Ch, 1), jnp.float32),
        grid=(N,),
        in_specs=[pl.BlockSpec((1, Cin, Lp), lambda n: (n, 0, 0)),
                  pl.BlockSpec((Ch, Cin), lambda n: (0, 0)),
                  pl.BlockSpec((Ch, 1), lambda n: (0, 0)),
                  pl.BlockSpec((1, Lp), lambda n: (0, 0))],
        out_specs=pl.BlockSpec((1, Ch, 1), lambda n: (n, 0, 0)),
        compiler_params=pltpu.CompilerParams(
            dimension_semantics=("parallel",),
            vmem_limit_bytes=VMEM_LIMIT),
    )(x, w, b, mask)
    return out[:, :, 0]                                  # (N, Ch) f32


def _classifier_kernel(x_ref, w1_ref, b1_ref, w2_ref, b2_ref, o_ref):
    z = jnp.dot(x_ref[...], w1_ref[...],
                preferred_element_type=jnp.float32) + b1_ref[...]
    z = _act(z, "hardswish")
    # TODO(synk): Dropout(p=0.2) skipped (eval-mode identity).
    logits = jnp.dot(z.astype(jnp.bfloat16), w2_ref[...],
                     preferred_element_type=jnp.float32) + b2_ref[...]
    o_ref[...] = logits.astype(o_ref.dtype)


def classifier(pooled, params):
    N, Ch = pooled.shape
    w1, b1 = params["fc1_w"], params["fc1_b"]
    w2, b2 = params["fc2_w"], params["fc2_b"]
    LC, NC = w1.shape[1], w2.shape[1]
    return pl.pallas_call(
        _classifier_kernel,
        out_shape=jax.ShapeDtypeStruct((N, NC), jnp.float32),
        grid=(1,),
        in_specs=[pl.BlockSpec((N, Ch), lambda i: (0, 0)),
                  pl.BlockSpec((Ch, LC), lambda i: (0, 0)),
                  pl.BlockSpec((1, LC), lambda i: (0, 0)),
                  pl.BlockSpec((LC, NC), lambda i: (0, 0)),
                  pl.BlockSpec((1, NC), lambda i: (0, 0))],
        out_specs=pl.BlockSpec((N, NC), lambda i: (0, 0)),
        compiler_params=pltpu.CompilerParams(vmem_limit_bytes=VMEM_LIMIT),
    )(pooled.astype(jnp.bfloat16), w1, b1, w2, b2)


# --------------------------------------------------------------------------
# Parameter initialization (mirrors the PyTorch __init__, BN folded, eval)
# --------------------------------------------------------------------------
def _kaiming_fan_out(key, shape, fan_out):
    std = (2.0 / fan_out) ** 0.5
    return std * jax.random.normal(key, shape, dtype=jnp.float32)


def init_params(key, setting, last_channel, num_classes):
    bn_scale = (1.0 + BN_EPS) ** -0.5   # eval-mode BN: gamma=1, mean=0, var=1
    keys = iter(jax.random.split(key, 8 + 6 * len(setting)))
    params = {}
    first_c = setting[0]["input_c"]

    # stem: Conv2d(3, first_c, 3, stride=2, bias=False) + BN + Hardswish
    w = _kaiming_fan_out(next(keys), (first_c, 3, 3, 3), fan_out=first_c * 9)
    w = jnp.transpose(w, (0, 2, 3, 1)).reshape(first_c, 27) * bn_scale
    params["stem_w"] = w.astype(jnp.bfloat16)
    params["stem_b"] = jnp.zeros((first_c, 1), jnp.float32)

    blocks = []
    for cnf in setting:
        bp = {}
        in_c, exp_c, out_c, k = (cnf["input_c"], cnf["expanded_c"],
                                 cnf["out_c"], cnf["kernel"])
        if exp_c != in_c:
            w = _kaiming_fan_out(next(keys), (exp_c, in_c), fan_out=exp_c)
            bp["expand_w"] = (w * bn_scale).astype(jnp.bfloat16)
            bp["expand_b"] = jnp.zeros((exp_c, 1), jnp.float32)
        w = _kaiming_fan_out(next(keys), (exp_c, k * k), fan_out=k * k)
        bp["dw_w"] = (w * bn_scale).astype(jnp.float32)
        bp["dw_b"] = jnp.zeros((exp_c, 1), jnp.float32)
        if cnf["use_se"]:
            sq_c = _make_divisible(exp_c // 4, 8)
            w1 = _kaiming_fan_out(next(keys), (sq_c, exp_c), fan_out=sq_c)
            w2 = _kaiming_fan_out(next(keys), (exp_c, sq_c), fan_out=exp_c)
            bp["se_fc1_w"] = w1.T.astype(jnp.float32)        # (Cexp, sq)
            bp["se_fc1_b"] = jnp.zeros((1, sq_c), jnp.float32)
            bp["se_fc2_w"] = w2.astype(jnp.float32)          # (Cexp, sq)
            bp["se_fc2_b"] = jnp.zeros((exp_c, 1), jnp.float32)
        w = _kaiming_fan_out(next(keys), (out_c, exp_c), fan_out=out_c)
        bp["project_w"] = (w * bn_scale).astype(jnp.bfloat16)
        bp["project_b"] = jnp.zeros((out_c, 1), jnp.float32)
        blocks.append(bp)
    params["blocks"] = blocks

    last_in = setting[-1]["out_c"]
    head_c = 6 * last_in
    w = _kaiming_fan_out(next(keys), (head_c, last_in), fan_out=head_c)
    params["head_conv_w"] = (w * bn_scale).astype(jnp.bfloat16)
    params["head_conv_b"] = jnp.zeros((head_c, 1), jnp.float32)

    params["fc1_w"] = (0.01 * jax.random.normal(
        next(keys), (head_c, last_channel), jnp.float32)).astype(jnp.bfloat16)
    params["fc1_b"] = jnp.zeros((1, last_channel), jnp.float32)
    params["fc2_w"] = (0.01 * jax.random.normal(
        next(keys), (last_channel, num_classes), jnp.float32)).astype(jnp.bfloat16)
    params["fc2_b"] = jnp.zeros((1, num_classes), jnp.float32)
    return params


# --------------------------------------------------------------------------
# Forward pass
# --------------------------------------------------------------------------
def mobilenet_v3_forward(params, x_nchw, setting):
    N = x_nchw.shape[0]
    # uniform inter-block halo: max padding required by any depthwise kernel
    P = max((cnf["kernel"] - 1) // 2 for cnf in setting)

    # ---- stem: im2col (bf16, pitched) + fused GEMM/BN/hardswish kernel ----
    patches, H, W = _stem_patches(x_nchw.astype(jnp.bfloat16), P)
    x = stem_conv(patches, params["stem_w"], params["stem_b"], H, W, P)

    # ---- inverted residual blocks: one fused pallas_call per block --------
    for cnf, bp in zip(setting, params["blocks"]):
        x, H, W = fused_block(x, bp, cnf, H, W, P)

    # ---- head conv + masked avg pool (per sample), then batched classifier
    pooled = head_pool(x, params["head_conv_w"], params["head_conv_b"], H, W, P)
    logits = classifier(pooled, params)
    return logits


# --------------------------------------------------------------------------
if __name__ == "__main__":
    inverted_residual_setting = [
        dict(input_c=16, kernel=3, expanded_c=16, out_c=16,
             use_se=False, activation="RE", stride=1),
        dict(input_c=16, kernel=3, expanded_c=32, out_c=24,
             use_se=True, activation="HS", stride=2),
    ]
    last_channel = 64
    num_classes = 10

    key = jax.random.PRNGKey(0)
    pkey, xkey = jax.random.split(key)
    params = init_params(pkey, inverted_residual_setting, last_channel,
                         num_classes)

    x = jax.random.normal(xkey, (2, 3, 32, 32), dtype=jnp.float32)  # NCHW

    fwd = jax.jit(functools.partial(mobilenet_v3_forward,
                                    setting=inverted_residual_setting))
    logits = jax.block_until_ready(fwd(params, x))
    assert logits.shape == (2, num_classes)
    assert bool(jnp.all(jnp.isfinite(logits)))
    print("KERNEL_OK")
</pallas_src>

<mosaic_0001>
module attributes {stable_mosaic.version = 11 : i64} {
  func.func @_stem_kernel(%arg0: i32, %arg1: memref<1x27x324xbf16, #tpu.memory_space<vmem>>, %arg2: memref<16x27xbf16, #tpu.memory_space<vmem>>, %arg3: memref<16x1xf32, #tpu.memory_space<vmem>>, %arg4: memref<1x324xf32, #tpu.memory_space<vmem>>, %arg5: memref<1x16x324xbf16, #tpu.memory_space<vmem>>) attributes {dimension_semantics = [#tpu.dimension_semantics<parallel>], iteration_bounds = array<i64: 2>, scalar_prefetch = 0 : i64, scratch_operands = 0 : i64, tpu.core_type = #tpu.core_type<tc>, window_params = [{transform_indices = @transform_0, window_bounds = array<i64: 1, 27, 324>}, {pipeline_mode = #tpu.pipeline_mode<synchronous>, transform_indices = @transform_1, window_bounds = array<i64: 16, 27>}, {pipeline_mode = #tpu.pipeline_mode<synchronous>, transform_indices = @transform_2, window_bounds = array<i64: 16, 1>}, {pipeline_mode = #tpu.pipeline_mode<synchronous>, transform_indices = @transform_3, window_bounds = array<i64: 1, 324>}, {transform_indices = @transform_4, window_bounds = array<i64: 1, 16, 324>}]} {
    %c0 = arith.constant 0 : index
    %c0_0 = arith.constant 0 : index
    %0 = vector.load %arg2[%c0, %c0_0] : memref<16x27xbf16, #tpu.memory_space<vmem>>, vector<16x27xbf16>
    %c0_1 = arith.constant 0 : index
    %c0_2 = arith.constant 0 : index
    %c0_3 = arith.constant 0 : index
    %1 = vector.load %arg1[%c0_1, %c0_2, %c0_3] : memref<1x27x324xbf16, #tpu.memory_space<vmem>>, vector<1x27x324xbf16>
    %2 = vector.shape_cast %1 : vector<1x27x324xbf16> to vector<27x324xbf16>
    %cst = arith.constant dense<0.000000e+00> : vector<16x324xf32>
    %3 = tpu.matmul %0, %2, %cst {dimension_numbers = #tpu.dot_dimension_numbers<[1], [0], [0], [1], [0, 0, 1, 1], [], []>} : vector<16x27xbf16>, vector<27x324xbf16>, vector<16x324xf32> -> vector<16x324xf32>
    %c0_4 = arith.constant 0 : index
    %c0_5 = arith.constant 0 : index
    %4 = vector.load %arg3[%c0_4, %c0_5] : memref<16x1xf32, #tpu.memory_space<vmem>>, vector<16x1xf32>
    %5 = vector.broadcast %4 : vector<16x1xf32> to vector<16x324xf32>
    %6 = arith.addf %3, %5 : vector<16x324xf32>
    %cst_6 = arith.constant 3.000000e+00 : f32
    %7 = vector.broadcast %cst_6 : f32 to vector<16x324xf32>
    %8 = arith.addf %6, %7 : vector<16x324xf32>
    %cst_7 = arith.constant 0.000000e+00 : f32
    %cst_8 = arith.constant 6.000000e+00 : f32
    %9 = vector.broadcast %cst_7 : f32 to vector<16x324xf32>
    %10 = arith.maximumf %9, %8 : vector<16x324xf32>
    %11 = vector.broadcast %cst_8 : f32 to vector<16x324xf32>
    %12 = arith.minimumf %11, %10 : vector<16x324xf32>
    %13 = arith.mulf %6, %12 : vector<16x324xf32>
    %cst_9 = arith.constant 0.166666672 : f32
    %14 = vector.broadcast %cst_9 : f32 to vector<16x324xf32>
    %15 = arith.mulf %13, %14 : vector<16x324xf32>
    %c0_10 = arith.constant 0 : index
    %c0_11 = arith.constant 0 : index
    %16 = vector.load %arg4[%c0_10, %c0_11] : memref<1x324xf32, #tpu.memory_space<vmem>>, vector<1x324xf32>
    %17 = vector.broadcast %16 : vector<1x324xf32> to vector<16x324xf32>
    %18 = arith.mulf %15, %17 : vector<16x324xf32>
    %19 = arith.truncf %18 : vector<16x324xf32> to vector<16x324xbf16>
    %c0_12 = arith.constant 0 : index
    %c0_13 = arith.constant 0 : index
    %c0_14 = arith.constant 0 : index
    %20 = vector.load %arg5[%c0_12, %c0_13, %c0_14] : memref<1x16x324xbf16, #tpu.memory_space<vmem>>, vector<1x16x324xbf16>
    %21 = vector.shape_cast %20 : vector<1x16x324xbf16> to vector<16x324xbf16>
    %22 = vector.shape_cast %19 : vector<16x324xbf16> to vector<1x16x324xbf16>
    tpu.vector_store %arg5[%c0_12, %c0_13, %c0_14], %22 {strides = array<i32>} : memref<1x16x324xbf16, #tpu.memory_space<vmem>>, vector<1x16x324xbf16>,
    return
  }
  func.func @transform_0(%arg0: i32) -> (i32, i32, i32) {
    %c0_i32 = arith.constant 0 : i32
    %c0_i32_0 = arith.constant 0 : i32
    %c0_i32_1 = arith.constant 0 : i32
    return %arg0, %c0_i32, %c0_i32_0 : i32, i32, i32
  }
  func.func @transform_1(%arg0: i32) -> (i32, i32) {
    %c0_i32 = arith.constant 0 : i32
    %c0_i32_0 = arith.constant 0 : i32
    %c0_i32_1 = arith.constant 0 : i32
    return %c0_i32, %c0_i32_0 : i32, i32
  }
  func.func @transform_2(%arg0: i32) -> (i32, i32) {
    %c0_i32 = arith.constant 0 : i32
    %c0_i32_0 = arith.constant 0 : i32
    %c0_i32_1 = arith.constant 0 : i32
    return %c0_i32, %c0_i32_0 : i32, i32
  }
  func.func @transform_3(%arg0: i32) -> (i32, i32) {
    %c0_i32 = arith.constant 0 : i32
    %c0_i32_0 = arith.constant 0 : i32
    %c0_i32_1 = arith.constant 0 : i32
    return %c0_i32, %c0_i32_0 : i32, i32
  }
  func.func @transform_4(%arg0: i32) -> (i32, i32, i32) {
    %c0_i32 = arith.constant 0 : i32
    %c0_i32_0 = arith.constant 0 : i32
    %c0_i32_1 = arith.constant 0 : i32
    return %arg0, %c0_i32, %c0_i32_0 : i32, i32, i32
  }
}

module attributes {stable_mosaic.version = 11 : i64} {
  func.func @_block_kernel(%arg0: i32, %arg1: memref<1x16x324xbf16, #tpu.memory_space<vmem>>, %arg2: memref<16x9xf32, #tpu.memory_space<vmem>>, %arg3: memref<16x1xf32, #tpu.memory_space<vmem>>, %arg4: memref<1x286xf32, #tpu.memory_space<vmem>>, %arg5: memref<16x16xbf16, #tpu.memory_space<vmem>>, %arg6: memref<16x1xf32, #tpu.memory_space<vmem>>, %arg7: memref<1x16x324xbf16, #tpu.memory_space<vmem>>) attributes {dimension_semantics = [#tpu.dimension_semantics<parallel>], iteration_bounds = array<i64: 2>, scalar_prefetch = 0 : i64, scratch_operands = 0 : i64, tpu.core_type = #tpu.core_type<tc>, window_params = [{transform_indices = @transform_0, window_bounds = array<i64: 1, 16, 324>}, {pipeline_mode = #tpu.pipeline_mode<synchronous>, transform_indices = @transform_1, window_bounds = array<i64: 16, 9>}, {pipeline_mode = #tpu.pipeline_mode<synchronous>, transform_indices = @transform_2, window_bounds = array<i64: 16, 1>}, {pipeline_mode = #tpu.pipeline_mode<synchronous>, transform_indices = @transform_3, window_bounds = array<i64: 1, 286>}, {pipeline_mode = #tpu.pipeline_mode<synchronous>, transform_indices = @transform_4, window_bounds = array<i64: 16, 16>}, {pipeline_mode = #tpu.pipeline_mode<synchronous>, transform_indices = @transform_5, window_bounds = array<i64: 16, 1>}, {transform_indices = @transform_6, window_bounds = array<i64: 1, 16, 324>}]} {
    %c0 = arith.constant 0 : index
    %c0_0 = arith.constant 0 : index
    %c0_1 = arith.constant 0 : index
    %0 = vector.load %arg1[%c0, %c0_0, %c0_1] : memref<1x16x324xbf16, #tpu.memory_space<vmem>>, vector<1x16x324xbf16>
    %1 = vector.shape_cast %0 : vector<1x16x324xbf16> to vector<16x324xbf16>
    %2 = arith.extf %1 : vector<16x324xbf16> to vector<16x324xf32>
    %c0_2 = arith.constant 0 : index
    %c0_3 = arith.constant 0 : index
    %3 = vector.load %arg2[%c0_2, %c0_3] : memref<16x9xf32, #tpu.memory_space<vmem>>, vector<16x9xf32>
    %4 = vector.extract_strided_slice %2 {offsets = [0, 0], sizes = [16, 286], strides = [1, 1]} : vector<16x324xf32> to vector<16x286xf32>
    %5 = vector.extract_strided_slice %3 {offsets = [0, 0], sizes = [16, 1], strides = [1, 1]} : vector<16x9xf32> to vector<16x1xf32>
    %6 = vector.broadcast %5 : vector<16x1xf32> to vector<16x286xf32>
    %7 = arith.mulf %4, %6 : vector<16x286xf32>
    %8 = vector.extract_strided_slice %2 {offsets = [0, 1], sizes = [16, 286], strides = [1, 1]} : vector<16x324xf32> to vector<16x286xf32>
    %9 = vector.extract_strided_slice %3 {offsets = [0, 1], sizes = [16, 1], strides = [1, 1]} : vector<16x9xf32> to vector<16x1xf32>
    %10 = vector.broadcast %9 : vector<16x1xf32> to vector<16x286xf32>
    %11 = arith.mulf %8, %10 : vector<16x286xf32>
    %12 = arith.addf %7, %11 : vector<16x286xf32>
    %13 = vector.extract_strided_slice %2 {offsets = [0, 2], sizes = [16, 286], strides = [1, 1]} : vector<16x324xf32> to vector<16x286xf32>
    %14 = vector.extract_strided_slice %3 {offsets = [0, 2], sizes = [16, 1], strides = [1, 1]} : vector<16x9xf32> to vector<16x1xf32>
    %15 = vector.broadcast %14 : vector<16x1xf32> to vector<16x286xf32>
    %16 = arith.mulf %13, %15 : vector<16x286xf32>
    %17 = arith.addf %12, %16 : vector<16x286xf32>
    %18 = vector.extract_strided_slice %2 {offsets = [0, 18], sizes = [16, 286], strides = [1, 1]} : vector<16x324xf32> to vector<16x286xf32>
    %19 = vector.extract_strided_slice %3 {offsets = [0, 3], sizes = [16, 1], strides = [1, 1]} : vector<16x9xf32> to vector<16x1xf32>
    %20 = vector.broadcast %19 : vector<16x1xf32> to vector<16x286xf32>
    %21 = arith.mulf %18, %20 : vector<16x286xf32>
    %22 = arith.addf %17, %21 : vector<16x286xf32>
    %23 = vector.extract_strided_slice %2 {offsets = [0, 19], sizes = [16, 286], strides = [1, 1]} : vector<16x324xf32> to vector<16x286xf32>
    %24 = vector.extract_strided_slice %3 {offsets = [0, 4], sizes = [16, 1], strides = [1, 1]} : vector<16x9xf32> to vector<16x1xf32>
    %25 = vector.broadcast %24 : vector<16x1xf32> to vector<16x286xf32>
    %26 = arith.mulf %23, %25 : vector<16x286xf32>
    %27 = arith.addf %22, %26 : vector<16x286xf32>
    %28 = vector.extract_strided_slice %2 {offsets = [0, 20], sizes = [16, 286], strides = [1, 1]} : vector<16x324xf32> to vector<16x286xf32>
    %29 = vector.extract_strided_slice %3 {offsets = [0, 5], sizes = [16, 1], strides = [1, 1]} : vector<16x9xf32> to vector<16x1xf32>
    %30 = vector.broadcast %29 : vector<16x1xf32> to vector<16x286xf32>
    %31 = arith.mulf %28, %30 : vector<16x286xf32>
    %32 = arith.addf %27, %31 : vector<16x286xf32>
    %33 = vector.extract_strided_slice %2 {offsets = [0, 36], sizes = [16, 286], strides = [1, 1]} : vector<16x324xf32> to vector<16x286xf32>
    %34 = vector.extract_strided_slice %3 {offsets = [0, 6], sizes = [16, 1], strides = [1, 1]} : vector<16x9xf32> to vector<16x1xf32>
    %35 = vector.broadcast %34 : vector<16x1xf32> to vector<16x286xf32>
    %36 = arith.mulf %33, %35 : vector<16x286xf32>
    %37 = arith.addf %32, %36 : vector<16x286xf32>
    %38 = vector.extract_strided_slice %2 {offsets = [0, 37], sizes = [16, 286], strides = [1, 1]} : vector<16x324xf32> to vector<16x286xf32>
    %39 = vector.extract_strided_slice %3 {offsets = [0, 7], sizes = [16, 1], strides = [1, 1]} : vector<16x9xf32> to vector<16x1xf32>
    %40 = vector.broadcast %39 : vector<16x1xf32> to vector<16x286xf32>
    %41 = arith.mulf %38, %40 : vector<16x286xf32>
    %42 = arith.addf %37, %41 : vector<16x286xf32>
    %43 = vector.extract_strided_slice %2 {offsets = [0, 38], sizes = [16, 286], strides = [1, 1]} : vector<16x324xf32> to vector<16x286xf32>
    %44 = vector.extract_strided_slice %3 {offsets = [0, 8], sizes = [16, 1], strides = [1, 1]} : vector<16x9xf32> to vector<16x1xf32>
    %45 = vector.broadcast %44 : vector<16x1xf32> to vector<16x286xf32>
    %46 = arith.mulf %43, %45 : vector<16x286xf32>
    %47 = arith.addf %42, %46 : vector<16x286xf32>
    %c0_4 = arith.constant 0 : index
    %c0_5 = arith.constant 0 : index
    %48 = vector.load %arg3[%c0_4, %c0_5] : memref<16x1xf32, #tpu.memory_space<vmem>>, vector<16x1xf32>
    %49 = vector.broadcast %48 : vector<16x1xf32> to vector<16x286xf32>
    %50 = arith.addf %47, %49 : vector<16x286xf32>
    %cst = arith.constant 0.000000e+00 : f32
    %51 = vector.broadcast %cst : f32 to vector<16x286xf32>
    %52 = arith.maximumf %50, %51 : vector<16x286xf32>
    %c0_6 = arith.constant 0 : index
    %c0_7 = arith.constant 0 : index
    %53 = vector.load %arg4[%c0_6, %c0_7] : memref<1x286xf32, #tpu.memory_space<vmem>>, vector<1x286xf32>
    %c0_8 = arith.constant 0 : index
    %c0_9 = arith.constant 0 : index
    %54 = vector.load %arg5[%c0_8, %c0_9] : memref<16x16xbf16, #tpu.memory_space<vmem>>, vector<16x16xbf16>
    %55 = arith.truncf %52 : vector<16x286xf32> to vector<16x286xbf16>
    %cst_10 = arith.constant dense<0.000000e+00> : vector<16x286xf32>
    %56 = tpu.matmul %54, %55, %cst_10 {dimension_numbers = #tpu.dot_dimension_numbers<[1], [0], [0], [1], [0, 0, 1, 1], [], []>} : vector<16x16xbf16>, vector<16x286xbf16>, vector<16x286xf32> -> vector<16x286xf32>
    %c0_11 = arith.constant 0 : index
    %c0_12 = arith.constant 0 : index
    %57 = vector.load %arg6[%c0_11, %c0_12] : memref<16x1xf32, #tpu.memory_space<vmem>>, vector<16x1xf32>
    %58 = vector.broadcast %57 : vector<16x1xf32> to vector<16x286xf32>
    %59 = arith.addf %56, %58 : vector<16x286xf32>
    %60 = vector.extract_strided_slice %1 {offsets = [0, 19], sizes = [16, 286], strides = [1, 1]} : vector<16x324xbf16> to vector<16x286xbf16>
    %61 = arith.extf %60 : vector<16x286xbf16> to vector<16x286xf32>
    %62 = arith.addf %59, %61 : vector<16x286xf32>
    %63 = vector.broadcast %53 : vector<1x286xf32> to vector<16x286xf32>
    %64 = arith.mulf %62, %63 : vector<16x286xf32>
    %65 = arith.truncf %64 : vector<16x286xf32> to vector<16x286xbf16>
    %cst_13 = arith.constant 0.000000e+00 : bf16
    %66 = vector.broadcast %cst_13 : bf16 to vector<16x19xbf16>
    %cst_14 = arith.constant 0.000000e+00 : bf16
    %67 = vector.broadcast %cst_14 : bf16 to vector<16x19xbf16>
    %68 = tpu.concatenate %66, %65, %67 in 1 : vector<16x19xbf16>, vector<16x286xbf16>, vector<16x19xbf16> -> vector<16x324xbf16>
    %c0_15 = arith.constant 0 : index
    %c0_16 = arith.constant 0 : index
    %c0_17 = arith.constant 0 : index
    %69 = vector.load %arg7[%c0_15, %c0_16, %c0_17] : memref<1x16x324xbf16, #tpu.memory_space<vmem>>, vector<1x16x324xbf16>
    %70 = vector.shape_cast %69 : vector<1x16x324xbf16> to vector<16x324xbf16>
    %71 = vector.shape_cast %68 : vector<16x324xbf16> to vector<1x16x324xbf16>
    tpu.vector_store %arg7[%c0_15, %c0_16, %c0_17], %71 {strides = array<i32>} : memref<1x16x324xbf16, #tpu.memory_space<vmem>>, vector<1x16x324xbf16>,
    return
  }
  func.func @transform_0(%arg0: i32) -> (i32, i32, i32) {
    %c0_i32 = arith.constant 0 : i32
    %c0_i32_0 = arith.constant 0 : i32
    %c0_i32_1 = arith.constant 0 : i32
    return %arg0, %c0_i32, %c0_i32_0 : i32, i32, i32
  }
  func.func @transform_1(%arg0: i32) -> (i32, i32) {
    %c0_i32 = arith.constant 0 : i32
    %c0_i32_0 = arith.constant 0 : i32
    %c0_i32_1 = arith.constant 0 : i32
    return %c0_i32, %c0_i32_0 : i32, i32
  }
  func.func @transform_2(%arg0: i32) -> (i32, i32) {
    %c0_i32 = arith.constant 0 : i32
    %c0_i32_0 = arith.constant 0 : i32
    %c0_i32_1 = arith.constant 0 : i32
    return %c0_i32, %c0_i32_0 : i32, i32
  }
  func.func @transform_3(%arg0: i32) -> (i32, i32) {
    %c0_i32 = arith.constant 0 : i32
    %c0_i32_0 = arith.constant 0 : i32
    %c0_i32_1 = arith.constant 0 : i32
    return %c0_i32, %c0_i32_0 : i32, i32
  }
  func.func @transform_4(%arg0: i32) -> (i32, i32) {
    %c0_i32 = arith.constant 0 : i32
    %c0_i32_0 = arith.constant 0 : i32
    %c0_i32_1 = arith.constant 0 : i32
    return %c0_i32, %c0_i32_0 : i32, i32
  }
  func.func @transform_5(%arg0: i32) -> (i32, i32) {
    %c0_i32 = arith.constant 0 : i32
    %c0_i32_0 = arith.constant 0 : i32
    %c0_i32_1 = arith.constant 0 : i32
    return %c0_i32, %c0_i32_0 : i32, i32
  }
  func.func @transform_6(%arg0: i32) -> (i32, i32, i32) {
    %c0_i32 = arith.constant 0 : i32
    %c0_i32_0 = arith.constant 0 : i32
    %c0_i32_1 = arith.constant 0 : i32
    return %arg0, %c0_i32, %c0_i32_0 : i32, i32, i32
  }
}

module attributes {stable_mosaic.version = 11 : i64} {
  func.func @_head_pool_kernel(%arg0: i32, %arg1: memref<1x24x100xbf16, #tpu.memory_space<vmem>>, %arg2: memref<144x24xbf16, #tpu.memory_space<vmem>>, %arg3: memref<144x1xf32, #tpu.memory_space<vmem>>, %arg4: memref<1x100xf32, #tpu.memory_space<vmem>>, %arg5: memref<1x144x1xf32, #tpu.memory_space<vmem>>) attributes {dimension_semantics = [#tpu.dimension_semantics<parallel>], iteration_bounds = array<i64: 2>, scalar_prefetch = 0 : i64, scratch_operands = 0 : i64, tpu.core_type = #tpu.core_type<tc>, window_params = [{transform_indices = @transform_0, window_bounds = array<i64: 1, 24, 100>}, {pipeline_mode = #tpu.pipeline_mode<synchronous>, transform_indices = @transform_1, window_bounds = array<i64: 144, 24>}, {pipeline_mode = #tpu.pipeline_mode<synchronous>, transform_indices = @transform_2, window_bounds = array<i64: 144, 1>}, {pipeline_mode = #tpu.pipeline_mode<synchronous>, transform_indices = @transform_3, window_bounds = array<i64: 1, 100>}, {transform_indices = @transform_4, window_bounds = array<i64: 1, 144, 1>}]} {
    %c0 = arith.constant 0 : index
    %c0_0 = arith.constant 0 : index
    %0 = vector.load %arg2[%c0, %c0_0] : memref<144x24xbf16, #tpu.memory_space<vmem>>, vector<144x24xbf16>
    %c0_1 = arith.constant 0 : index
    %c0_2 = arith.constant 0 : index
    %c0_3 = arith.constant 0 : index
    %1 = vector.load %arg1[%c0_1, %c0_2, %c0_3] : memref<1x24x100xbf16, #tpu.memory_space<vmem>>, vector<1x24x100xbf16>
    %2 = vector.shape_cast %1 : vector<1x24x100xbf16> to vector<24x100xbf16>
    %cst = arith.constant dense<0.000000e+00> : vector<144x100xf32>
    %3 = tpu.matmul %0, %2, %cst {dimension_numbers = #tpu.dot_dimension_numbers<[1], [0], [0], [1], [0, 0, 1, 1], [], []>} : vector<144x24xbf16>, vector<24x100xbf16>, vector<144x100xf32> -> vector<144x100xf32>
    %c0_4 = arith.constant 0 : index
    %c0_5 = arith.constant 0 : index
    %4 = vector.load %arg3[%c0_4, %c0_5] : memref<144x1xf32, #tpu.memory_space<vmem>>, vector<144x1xf32>
    %5 = vector.broadcast %4 : vector<144x1xf32> to vector<144x100xf32>
    %6 = arith.addf %3, %5 : vector<144x100xf32>
    %cst_6 = arith.constant 3.000000e+00 : f32
    %7 = vector.broadcast %cst_6 : f32 to vector<144x100xf32>
    %8 = arith.addf %6, %7 : vector<144x100xf32>
    %cst_7 = arith.constant 0.000000e+00 : f32
    %cst_8 = arith.constant 6.000000e+00 : f32
    %9 = vector.broadcast %cst_7 : f32 to vector<144x100xf32>
    %10 = arith.maximumf %9, %8 : vector<144x100xf32>
    %11 = vector.broadcast %cst_8 : f32 to vector<144x100xf32>
    %12 = arith.minimumf %11, %10 : vector<144x100xf32>
    %13 = arith.mulf %6, %12 : vector<144x100xf32>
    %cst_9 = arith.constant 0.166666672 : f32
    %14 = vector.broadcast %cst_9 : f32 to vector<144x100xf32>
    %15 = arith.mulf %13, %14 : vector<144x100xf32>
    %c0_10 = arith.constant 0 : index
    %c0_11 = arith.constant 0 : index
    %16 = vector.load %arg4[%c0_10, %c0_11] : memref<1x100xf32, #tpu.memory_space<vmem>>, vector<1x100xf32>
    %17 = vector.broadcast %16 : vector<1x100xf32> to vector<144x100xf32>
    %18 = arith.mulf %15, %17 : vector<144x100xf32>
    %cst_12 = arith.constant dense<0.000000e+00> : vector<144xf32>
    %19 = vector.multi_reduction <add>, %18, %cst_12 [1] : vector<144x100xf32> to vector<144xf32>
    %20 = vector.shape_cast %19 : vector<144xf32> to vector<144x1xf32>
    %cst_13 = arith.constant 1.562500e-02 : f32
    %21 = vector.broadcast %cst_13 : f32 to vector<144x1xf32>
    %22 = arith.mulf %20, %21 : vector<144x1xf32>
    %c0_14 = arith.constant 0 : index
    %c0_15 = arith.constant 0 : index
    %c0_16 = arith.constant 0 : index
    %23 = vector.load %arg5[%c0_14, %c0_15, %c0_16] : memref<1x144x1xf32, #tpu.memory_space<vmem>>, vector<1x144x1xf32>
    %24 = vector.shape_cast %23 : vector<1x144x1xf32> to vector<144x1xf32>
    %25 = vector.shape_cast %22 : vector<144x1xf32> to vector<1x144x1xf32>
    tpu.vector_store %arg5[%c0_14, %c0_15, %c0_16], %25 {strides = array<i32>} : memref<1x144x1xf32, #tpu.memory_space<vmem>>, vector<1x144x1xf32>,
    return
  }
  func.func @transform_0(%arg0: i32) -> (i32, i32, i32) {
    %c0_i32 = arith.constant 0 : i32
    %c0_i32_0 = arith.constant 0 : i32
    %c0_i32_1 = arith.constant 0 : i32
    return %arg0, %c0_i32, %c0_i32_0 : i32, i32, i32
  }
  func.func @transform_1(%arg0: i32) -> (i32, i32) {
    %c0_i32 = arith.constant 0 : i32
    %c0_i32_0 = arith.constant 0 : i32
    %c0_i32_1 = arith.constant 0 : i32
    return %c0_i32, %c0_i32_0 : i32, i32
  }
  func.func @transform_2(%arg0: i32) -> (i32, i32) {
    %c0_i32 = arith.constant 0 : i32
    %c0_i32_0 = arith.constant 0 : i32
    %c0_i32_1 = arith.constant 0 : i32
    return %c0_i32, %c0_i32_0 : i32, i32
  }
  func.func @transform_3(%arg0: i32) -> (i32, i32) {
    %c0_i32 = arith.constant 0 : i32
    %c0_i32_0 = arith.constant 0 : i32
    %c0_i32_1 = arith.constant 0 : i32
    return %c0_i32, %c0_i32_0 : i32, i32
  }
  func.func @transform_4(%arg0: i32) -> (i32, i32, i32) {
    %c0_i32 = arith.constant 0 : i32
    %c0_i32_0 = arith.constant 0 : i32
    %c0_i32_1 = arith.constant 0 : i32
    return %arg0, %c0_i32, %c0_i32_0 : i32, i32, i32
  }
}

module attributes {stable_mosaic.version = 11 : i64} {
  func.func @_classifier_kernel(%arg0: i32, %arg1: memref<2x144xbf16, #tpu.memory_space<vmem>>, %arg2: memref<144x64xbf16, #tpu.memory_space<vmem>>, %arg3: memref<1x64xf32, #tpu.memory_space<vmem>>, %arg4: memref<64x10xbf16, #tpu.memory_space<vmem>>, %arg5: memref<1x10xf32, #tpu.memory_space<vmem>>, %arg6: memref<2x10xf32, #tpu.memory_space<vmem>>) attributes {dimension_semantics = [#tpu.dimension_semantics<arbitrary>], iteration_bounds = array<i64: 1>, scalar_prefetch = 0 : i64, scratch_operands = 0 : i64, tpu.core_type = #tpu.core_type<tc>, window_params = [{pipeline_mode = #tpu.pipeline_mode<synchronous>, transform_indices = @transform_0, window_bounds = array<i64: 2, 144>}, {pipeline_mode = #tpu.pipeline_mode<synchronous>, transform_indices = @transform_1, window_bounds = array<i64: 144, 64>}, {pipeline_mode = #tpu.pipeline_mode<synchronous>, transform_indices = @transform_2, window_bounds = array<i64: 1, 64>}, {pipeline_mode = #tpu.pipeline_mode<synchronous>, transform_indices = @transform_3, window_bounds = array<i64: 64, 10>}, {pipeline_mode = #tpu.pipeline_mode<synchronous>, transform_indices = @transform_4, window_bounds = array<i64: 1, 10>}, {pipeline_mode = #tpu.pipeline_mode<synchronous>, transform_indices = @transform_5, window_bounds = array<i64: 2, 10>}]} {
    %c0 = arith.constant 0 : index
    %c0_0 = arith.constant 0 : index
    %0 = vector.load %arg1[%c0, %c0_0] : memref<2x144xbf16, #tpu.memory_space<vmem>>, vector<2x144xbf16>
    %c0_1 = arith.constant 0 : index
    %c0_2 = arith.constant 0 : index
    %1 = vector.load %arg2[%c0_1, %c0_2] : memref<144x64xbf16, #tpu.memory_space<vmem>>, vector<144x64xbf16>
    %cst = arith.constant dense<0.000000e+00> : vector<2x64xf32>
    %2 = tpu.matmul %0, %1, %cst {dimension_numbers = #tpu.dot_dimension_numbers<[1], [0], [0], [1], [0, 0, 1, 1], [], []>} : vector<2x144xbf16>, vector<144x64xbf16>, vector<2x64xf32> -> vector<2x64xf32>
    %c0_3 = arith.constant 0 : index
    %c0_4 = arith.constant 0 : index
    %3 = vector.load %arg3[%c0_3, %c0_4] : memref<1x64xf32, #tpu.memory_space<vmem>>, vector<1x64xf32>
    %4 = vector.broadcast %3 : vector<1x64xf32> to vector<2x64xf32>
    %5 = arith.addf %2, %4 : vector<2x64xf32>
    %cst_5 = arith.constant 3.000000e+00 : f32
    %6 = vector.broadcast %cst_5 : f32 to vector<2x64xf32>
    %7 = arith.addf %5, %6 : vector<2x64xf32>
    %cst_6 = arith.constant 0.000000e+00 : f32
    %cst_7 = arith.constant 6.000000e+00 : f32
    %8 = vector.broadcast %cst_6 : f32 to vector<2x64xf32>
    %9 = arith.maximumf %8, %7 : vector<2x64xf32>
    %10 = vector.broadcast %cst_7 : f32 to vector<2x64xf32>
    %11 = arith.minimumf %10, %9 : vector<2x64xf32>
    %12 = arith.mulf %5, %11 : vector<2x64xf32>
    %cst_8 = arith.constant 0.166666672 : f32
    %13 = vector.broadcast %cst_8 : f32 to vector<2x64xf32>
    %14 = arith.mulf %12, %13 : vector<2x64xf32>
    %15 = arith.truncf %14 : vector<2x64xf32> to vector<2x64xbf16>
    %c0_9 = arith.constant 0 : index
    %c0_10 = arith.constant 0 : index
    %16 = vector.load %arg4[%c0_9, %c0_10] : memref<64x10xbf16, #tpu.memory_space<vmem>>, vector<64x10xbf16>
    %cst_11 = arith.constant dense<0.000000e+00> : vector<2x10xf32>
    %17 = tpu.matmul %15, %16, %cst_11 {dimension_numbers = #tpu.dot_dimension_numbers<[1], [0], [0], [1], [0, 0, 1, 1], [], []>} : vector<2x64xbf16>, vector<64x10xbf16>, vector<2x10xf32> -> vector<2x10xf32>
    %c0_12 = arith.constant 0 : index
    %c0_13 = arith.constant 0 : index
    %18 = vector.load %arg5[%c0_12, %c0_13] : memref<1x10xf32, #tpu.memory_space<vmem>>, vector<1x10xf32>
    %19 = vector.broadcast %18 : vector<1x10xf32> to vector<2x10xf32>
    %20 = arith.addf %17, %19 : vector<2x10xf32>
    %c0_14 = arith.constant 0 : index
    %c0_15 = arith.constant 0 : index
    %21 = vector.load %arg6[%c0_14, %c0_15] : memref<2x10xf32, #tpu.memory_space<vmem>>, vector<2x10xf32>
    tpu.vector_store %arg6[%c0_14, %c0_15], %20 {strides = array<i32>} : memref<2x10xf32, #tpu.memory_space<vmem>>, vector<2x10xf32>,
    return
  }
  func.func @transform_0(%arg0: i32) -> (i32, i32) {
    %c0_i32 = arith.constant 0 : i32
    %c0_i32_0 = arith.constant 0 : i32
    %c0_i32_1 = arith.constant 0 : i32
    return %c0_i32, %c0_i32_0 : i32, i32
  }
  func.func @transform_1(%arg0: i32) -> (i32, i32) {
    %c0_i32 = arith.constant 0 : i32
    %c0_i32_0 = arith.constant 0 : i32
    %c0_i32_1 = arith.constant 0 : i32
    return %c0_i32, %c0_i32_0 : i32, i32
  }
  func.func @transform_2(%arg0: i32) -> (i32, i32) {
    %c0_i32 = arith.constant 0 : i32
    %c0_i32_0 = arith.constant 0 : i32
    %c0_i32_1 = arith.constant 0 : i32
    return %c0_i32, %c0_i32_0 : i32, i32
  }
  func.func @transform_3(%arg0: i32) -> (i32, i32) {
    %c0_i32 = arith.constant 0 : i32
    %c0_i32_0 = arith.constant 0 : i32
    %c0_i32_1 = arith.constant 0 : i32
    return %c0_i32, %c0_i32_0 : i32, i32
  }
  func.func @transform_4(%arg0: i32) -> (i32, i32) {
    %c0_i32 = arith.constant 0 : i32
    %c0_i32_0 = arith.constant 0 : i32
    %c0_i32_1 = arith.constant 0 : i32
    return %c0_i32, %c0_i32_0 : i32, i32
  }
  func.func @transform_5(%arg0: i32) -> (i32, i32) {
    %c0_i32 = arith.constant 0 : i32
    %c0_i32_0 = arith.constant 0 : i32
    %c0_i32_1 = arith.constant 0 : i32
    return %c0_i32, %c0_i32_0 : i32, i32
  }
}

module attributes {stable_mosaic.version = 11 : i64} {
  func.func @_block_kernel(%arg0: i32, %arg1: memref<1x16x360xbf16, #tpu.memory_space<vmem>>, %arg2: memref<1x360xf32, #tpu.memory_space<vmem>>, %arg3: memref<32x16xbf16, #tpu.memory_space<vmem>>, %arg4: memref<32x1xf32, #tpu.memory_space<vmem>>, %arg5: memref<32x9xf32, #tpu.memory_space<vmem>>, %arg6: memref<32x1xf32, #tpu.memory_space<vmem>>, %arg7: memref<1x78xf32, #tpu.memory_space<vmem>>, %arg8: memref<32x8xf32, #tpu.memory_space<vmem>>, %arg9: memref<1x8xf32, #tpu.memory_space<vmem>>, %arg10: memref<32x8xf32, #tpu.memory_space<vmem>>, %arg11: memref<32x1xf32, #tpu.memory_space<vmem>>, %arg12: memref<24x32xbf16, #tpu.memory_space<vmem>>, %arg13: memref<24x1xf32, #tpu.memory_space<vmem>>, %arg14: memref<1x24x100xbf16, #tpu.memory_space<vmem>>) attributes {dimension_semantics = [#tpu.dimension_semantics<parallel>], iteration_bounds = array<i64: 2>, scalar_prefetch = 0 : i64, scratch_operands = 0 : i64, tpu.core_type = #tpu.core_type<tc>, window_params = [{transform_indices = @transform_0, window_bounds = array<i64: 1, 16, 360>}, {pipeline_mode = #tpu.pipeline_mode<synchronous>, transform_indices = @transform_1, window_bounds = array<i64: 1, 360>}, {pipeline_mode = #tpu.pipeline_mode<synchronous>, transform_indices = @transform_2, window_bounds = array<i64: 32, 16>}, {pipeline_mode = #tpu.pipeline_mode<synchronous>, transform_indices = @transform_3, window_bounds = array<i64: 32, 1>}, {pipeline_mode = #tpu.pipeline_mode<synchronous>, transform_indices = @transform_4, window_bounds = array<i64: 32, 9>}, {pipeline_mode = #tpu.pipeline_mode<synchronous>, transform_indices = @transform_5, window_bounds = array<i64: 32, 1>}, {pipeline_mode = #tpu.pipeline_mode<synchronous>, transform_indices = @transform_6, window_bounds = array<i64: 1, 78>}, {pipeline_mode = #tpu.pipeline_mode<synchronous>, transform_indices = @transform_7, window_bounds = array<i64: 32, 8>}, {pipeline_mode = #tpu.pipeline_mode<synchronous>, transform_indices = @transform_8, window_bounds = array<i64: 1, 8>}, {pipeline_mode = #tpu.pipeline_mode<synchronous>, transform_indices = @transform_9, window_bounds = array<i64: 32, 8>}, {pipeline_mode = #tpu.pipeline_mode<synchronous>, transform_indices = @transform_10, window_bounds = array<i64: 32, 1>}, {pipeline_mode = #tpu.pipeline_mode<synchronous>, transform_indices = @transform_11, window_bounds = array<i64: 24, 32>}, {pipeline_mode = #tpu.pipeline_mode<synchronous>, transform_indices = @transform_12, window_bounds = array<i64: 24, 1>}, {transform_indices = @transform_13, window_bounds = array<i64: 1, 24, 100>}]} {
    %c0 = arith.constant 0 : index
    %c0_0 = arith.constant 0 : index
    %c0_1 = arith.constant 0 : index
    %0 = vector.load %arg1[%c0, %c0_0, %c0_1] : memref<1x16x360xbf16, #tpu.memory_space<vmem>>, vector<1x16x360xbf16>
    %1 = vector.shape_cast %0 : vector<1x16x360xbf16> to vector<16x360xbf16>
    %c0_2 = arith.constant 0 : index
    %c0_3 = arith.constant 0 : index
    %2 = vector.load %arg3[%c0_2, %c0_3] : memref<32x16xbf16, #tpu.memory_space<vmem>>, vector<32x16xbf16>
    %cst = arith.constant dense<0.000000e+00> : vector<32x360xf32>
    %3 = tpu.matmul %2, %1, %cst {dimension_numbers = #tpu.dot_dimension_numbers<[1], [0], [0], [1], [0, 0, 1, 1], [], []>} : vector<32x16xbf16>, vector<16x360xbf16>, vector<32x360xf32> -> vector<32x360xf32>
    %c0_4 = arith.constant 0 : index
    %c0_5 = arith.constant 0 : index
    %4 = vector.load %arg4[%c0_4, %c0_5] : memref<32x1xf32, #tpu.memory_space<vmem>>, vector<32x1xf32>
    %5 = vector.broadcast %4 : vector<32x1xf32> to vector<32x360xf32>
    %6 = arith.addf %3, %5 : vector<32x360xf32>
    %cst_6 = arith.constant 3.000000e+00 : f32
    %7 = vector.broadcast %cst_6 : f32 to vector<32x360xf32>
    %8 = arith.addf %6, %7 : vector<32x360xf32>
    %cst_7 = arith.constant 0.000000e+00 : f32
    %cst_8 = arith.constant 6.000000e+00 : f32
    %9 = vector.broadcast %cst_7 : f32 to vector<32x360xf32>
    %10 = arith.maximumf %9, %8 : vector<32x360xf32>
    %11 = vector.broadcast %cst_8 : f32 to vector<32x360xf32>
    %12 = arith.minimumf %11, %10 : vector<32x360xf32>
    %13 = arith.mulf %6, %12 : vector<32x360xf32>
    %cst_9 = arith.constant 0.166666672 : f32
    %14 = vector.broadcast %cst_9 : f32 to vector<32x360xf32>
    %15 = arith.mulf %13, %14 : vector<32x360xf32>
    %c0_10 = arith.constant 0 : index
    %c0_11 = arith.constant 0 : index
    %16 = vector.load %arg2[%c0_10, %c0_11] : memref<1x360xf32, #tpu.memory_space<vmem>>, vector<1x360xf32>
    %17 = vector.broadcast %16 : vector<1x360xf32> to vector<32x360xf32>
    %18 = arith.mulf %15, %17 : vector<32x360xf32>
    %c0_12 = arith.constant 0 : index
    %c0_13 = arith.constant 0 : index
    %19 = vector.load %arg5[%c0_12, %c0_13] : memref<32x9xf32, #tpu.memory_space<vmem>>, vector<32x9xf32>
    %20 = vector.extract_strided_slice %18 {offsets = [0, 0], sizes = [32, 78], strides = [1, 1]} : vector<32x360xf32> to vector<32x78xf32>
    %21 = vector.extract_strided_slice %19 {offsets = [0, 0], sizes = [32, 1], strides = [1, 1]} : vector<32x9xf32> to vector<32x1xf32>
    %22 = vector.broadcast %21 : vector<32x1xf32> to vector<32x78xf32>
    %23 = arith.mulf %20, %22 : vector<32x78xf32>
    %24 = vector.extract_strided_slice %18 {offsets = [0, 90], sizes = [32, 78], strides = [1, 1]} : vector<32x360xf32> to vector<32x78xf32>
    %25 = vector.extract_strided_slice %19 {offsets = [0, 1], sizes = [32, 1], strides = [1, 1]} : vector<32x9xf32> to vector<32x1xf32>
    %26 = vector.broadcast %25 : vector<32x1xf32> to vector<32x78xf32>
    %27 = arith.mulf %24, %26 : vector<32x78xf32>
    %28 = arith.addf %23, %27 : vector<32x78xf32>
    %29 = vector.extract_strided_slice %18 {offsets = [0, 1], sizes = [32, 78], strides = [1, 1]} : vector<32x360xf32> to vector<32x78xf32>
    %30 = vector.extract_strided_slice %19 {offsets = [0, 2], sizes = [32, 1], strides = [1, 1]} : vector<32x9xf32> to vector<32x1xf32>
    %31 = vector.broadcast %30 : vector<32x1xf32> to vector<32x78xf32>
    %32 = arith.mulf %29, %31 : vector<32x78xf32>
    %33 = arith.addf %28, %32 : vector<32x78xf32>
    %34 = vector.extract_strided_slice %18 {offsets = [0, 180], sizes = [32, 78], strides = [1, 1]} : vector<32x360xf32> to vector<32x78xf32>
    %35 = vector.extract_strided_slice %19 {offsets = [0, 3], sizes = [32, 1], strides = [1, 1]} : vector<32x9xf32> to vector<32x1xf32>
    %36 = vector.broadcast %35 : vector<32x1xf32> to vector<32x78xf32>
    %37 = arith.mulf %34, %36 : vector<32x78xf32>
    %38 = arith.addf %33, %37 : vector<32x78xf32>
    %39 = vector.extract_strided_slice %18 {offsets = [0, 270], sizes = [32, 78], strides = [1, 1]} : vector<32x360xf32> to vector<32x78xf32>
    %40 = vector.extract_strided_slice %19 {offsets = [0, 4], sizes = [32, 1], strides = [1, 1]} : vector<32x9xf32> to vector<32x1xf32>
    %41 = vector.broadcast %40 : vector<32x1xf32> to vector<32x78xf32>
    %42 = arith.mulf %39, %41 : vector<32x78xf32>
    %43 = arith.addf %38, %42 : vector<32x78xf32>
    %44 = vector.extract_strided_slice %18 {offsets = [0, 181], sizes = [32, 78], strides = [1, 1]} : vector<32x360xf32> to vector<32x78xf32>
    %45 = vector.extract_strided_slice %19 {offsets = [0, 5], sizes = [32, 1], strides = [1, 1]} : vector<32x9xf32> to vector<32x1xf32>
    %46 = vector.broadcast %45 : vector<32x1xf32> to vector<32x78xf32>
    %47 = arith.mulf %44, %46 : vector<32x78xf32>
    %48 = arith.addf %43, %47 : vector<32x78xf32>
    %49 = vector.extract_strided_slice %18 {offsets = [0, 10], sizes = [32, 78], strides = [1, 1]} : vector<32x360xf32> to vector<32x78xf32>
    %50 = vector.extract_strided_slice %19 {offsets = [0, 6], sizes = [32, 1], strides = [1, 1]} : vector<32x9xf32> to vector<32x1xf32>
    %51 = vector.broadcast %50 : vector<32x1xf32> to vector<32x78xf32>
    %52 = arith.mulf %49, %51 : vector<32x78xf32>
    %53 = arith.addf %48, %52 : vector<32x78xf32>
    %54 = vector.extract_strided_slice %18 {offsets = [0, 100], sizes = [32, 78], strides = [1, 1]} : vector<32x360xf32> to vector<32x78xf32>
    %55 = vector.extract_strided_slice %19 {offsets = [0, 7], sizes = [32, 1], strides = [1, 1]} : vector<32x9xf32> to vector<32x1xf32>
    %56 = vector.broadcast %55 : vector<32x1xf32> to vector<32x78xf32>
    %57 = arith.mulf %54, %56 : vector<32x78xf32>
    %58 = arith.addf %53, %57 : vector<32x78xf32>
    %59 = vector.extract_strided_slice %18 {offsets = [0, 11], sizes = [32, 78], strides = [1, 1]} : vector<32x360xf32> to vector<32x78xf32>
    %60 = vector.extract_strided_slice %19 {offsets = [0, 8], sizes = [32, 1], strides = [1, 1]} : vector<32x9xf32> to vector<32x1xf32>
    %61 = vector.broadcast %60 : vector<32x1xf32> to vector<32x78xf32>
    %62 = arith.mulf %59, %61 : vector<32x78xf32>
    %63 = arith.addf %58, %62 : vector<32x78xf32>
    %c0_14 = arith.constant 0 : index
    %c0_15 = arith.constant 0 : index
    %64 = vector.load %arg6[%c0_14, %c0_15] : memref<32x1xf32, #tpu.memory_space<vmem>>, vector<32x1xf32>
    %65 = vector.broadcast %64 : vector<32x1xf32> to vector<32x78xf32>
    %66 = arith.addf %63, %65 : vector<32x78xf32>
    %cst_16 = arith.constant 3.000000e+00 : f32
    %67 = vector.broadcast %cst_16 : f32 to vector<32x78xf32>
    %68 = arith.addf %66, %67 : vector<32x78xf32>
    %cst_17 = arith.constant 0.000000e+00 : f32
    %cst_18 = arith.constant 6.000000e+00 : f32
    %69 = vector.broadcast %cst_17 : f32 to vector<32x78xf32>
    %70 = arith.maximumf %69, %68 : vector<32x78xf32>
    %71 = vector.broadcast %cst_18 : f32 to vector<32x78xf32>
    %72 = arith.minimumf %71, %70 : vector<32x78xf32>
    %73 = arith.mulf %66, %72 : vector<32x78xf32>
    %cst_19 = arith.constant 0.166666672 : f32
    %74 = vector.broadcast %cst_19 : f32 to vector<32x78xf32>
    %75 = arith.mulf %73, %74 : vector<32x78xf32>
    %c0_20 = arith.constant 0 : index
    %c0_21 = arith.constant 0 : index
    %76 = vector.load %arg7[%c0_20, %c0_21] : memref<1x78xf32, #tpu.memory_space<vmem>>, vector<1x78xf32>
    %77 = vector.broadcast %76 : vector<1x78xf32> to vector<32x78xf32>
    %78 = arith.mulf %75, %77 : vector<32x78xf32>
    %cst_22 = arith.constant dense<0.000000e+00> : vector<32xf32>
    %79 = vector.multi_reduction <add>, %78, %cst_22 [1] : vector<32x78xf32> to vector<32xf32>
    %80 = vector.shape_cast %79 : vector<32xf32> to vector<32x1xf32>
    %cst_23 = arith.constant 1.562500e-02 : f32
    %81 = vector.broadcast %cst_23 : f32 to vector<32x1xf32>
    %82 = arith.mulf %80, %81 : vector<32x1xf32>
    %c0_24 = arith.constant 0 : index
    %c0_25 = arith.constant 0 : index
    %83 = vector.load %arg8[%c0_24, %c0_25] : memref<32x8xf32, #tpu.memory_space<vmem>>, vector<32x8xf32>
    %84 = vector.broadcast %82 : vector<32x1xf32> to vector<32x8xf32>
    %85 = arith.mulf %83, %84 : vector<32x8xf32>
    %cst_26 = arith.constant dense<0.000000e+00> : vector<8xf32>
    %86 = vector.multi_reduction <add>, %85, %cst_26 [0] : vector<32x8xf32> to vector<8xf32>
    %87 = vector.shape_cast %86 : vector<8xf32> to vector<1x8xf32>
    %c0_27 = arith.constant 0 : index
    %c0_28 = arith.constant 0 : index
    %88 = vector.load %arg9[%c0_27, %c0_28] : memref<1x8xf32, #tpu.memory_space<vmem>>, vector<1x8xf32>
    %89 = arith.addf %87, %88 : vector<1x8xf32>
    %cst_29 = arith.constant 0.000000e+00 : f32
    %90 = vector.broadcast %cst_29 : f32 to vector<1x8xf32>
    %91 = arith.maximumf %89, %90 : vector<1x8xf32>
    %c0_30 = arith.constant 0 : index
    %c0_31 = arith.constant 0 : index
    %92 = vector.load %arg10[%c0_30, %c0_31] : memref<32x8xf32, #tpu.memory_space<vmem>>, vector<32x8xf32>
    %93 = vector.broadcast %91 : vector<1x8xf32> to vector<32x8xf32>
    %94 = arith.mulf %92, %93 : vector<32x8xf32>
    %cst_32 = arith.constant dense<0.000000e+00> : vector<32xf32>
    %95 = vector.multi_reduction <add>, %94, %cst_32 [1] : vector<32x8xf32> to vector<32xf32>
    %96 = vector.shape_cast %95 : vector<32xf32> to vector<32x1xf32>
    %c0_33 = arith.constant 0 : index
    %c0_34 = arith.constant 0 : index
    %97 = vector.load %arg11[%c0_33, %c0_34] : memref<32x1xf32, #tpu.memory_space<vmem>>, vector<32x1xf32>
    %98 = arith.addf %96, %97 : vector<32x1xf32>
    %cst_35 = arith.constant 3.000000e+00 : f32
    %99 = vector.broadcast %cst_35 : f32 to vector<32x1xf32>
    %100 = arith.addf %98, %99 : vector<32x1xf32>
    %cst_36 = arith.constant 0.000000e+00 : f32
    %cst_37 = arith.constant 6.000000e+00 : f32
    %101 = vector.broadcast %cst_36 : f32 to vector<32x1xf32>
    %102 = arith.maximumf %101, %100 : vector<32x1xf32>
    %103 = vector.broadcast %cst_37 : f32 to vector<32x1xf32>
    %104 = arith.minimumf %103, %102 : vector<32x1xf32>
    %cst_38 = arith.constant 0.166666672 : f32
    %105 = vector.broadcast %cst_38 : f32 to vector<32x1xf32>
    %106 = arith.mulf %104, %105 : vector<32x1xf32>
    %107 = vector.broadcast %106 : vector<32x1xf32> to vector<32x78xf32>
    %108 = arith.mulf %75, %107 : vector<32x78xf32>
    %c0_39 = arith.constant 0 : index
    %c0_40 = arith.constant 0 : index
    %109 = vector.load %arg12[%c0_39, %c0_40] : memref<24x32xbf16, #tpu.memory_space<vmem>>, vector<24x32xbf16>
    %110 = arith.truncf %108 : vector<32x78xf32> to vector<32x78xbf16>
    %cst_41 = arith.constant dense<0.000000e+00> : vector<24x78xf32>
    %111 = tpu.matmul %109, %110, %cst_41 {dimension_numbers = #tpu.dot_dimension_numbers<[1], [0], [0], [1], [0, 0, 1, 1], [], []>} : vector<24x32xbf16>, vector<32x78xbf16>, vector<24x78xf32> -> vector<24x78xf32>
    %c0_42 = arith.constant 0 : index
    %c0_43 = arith.constant 0 : index
    %112 = vector.load %arg13[%c0_42, %c0_43] : memref<24x1xf32, #tpu.memory_space<vmem>>, vector<24x1xf32>
    %113 = vector.broadcast %112 : vector<24x1xf32> to vector<24x78xf32>
    %114 = arith.addf %111, %113 : vector<24x78xf32>
    %115 = vector.broadcast %76 : vector<1x78xf32> to vector<24x78xf32>
    %116 = arith.mulf %114, %115 : vector<24x78xf32>
    %117 = arith.truncf %116 : vector<24x78xf32> to vector<24x78xbf16>
    %cst_44 = arith.constant 0.000000e+00 : bf16
    %118 = vector.broadcast %cst_44 : bf16 to vector<24x11xbf16>
    %cst_45 = arith.constant 0.000000e+00 : bf16
    %119 = vector.broadcast %cst_45 : bf16 to vector<24x11xbf16>
    %120 = tpu.concatenate %118, %117, %119 in 1 : vector<24x11xbf16>, vector<24x78xbf16>, vector<24x11xbf16> -> vector<24x100xbf16>
    %c0_46 = arith.constant 0 : index
    %c0_47 = arith.constant 0 : index
    %c0_48 = arith.constant 0 : index
    %121 = vector.load %arg14[%c0_46, %c0_47, %c0_48] : memref<1x24x100xbf16, #tpu.memory_space<vmem>>, vector<1x24x100xbf16>
    %122 = vector.shape_cast %121 : vector<1x24x100xbf16> to vector<24x100xbf16>
    %123 = vector.shape_cast %120 : vector<24x100xbf16> to vector<1x24x100xbf16>
    tpu.vector_store %arg14[%c0_46, %c0_47, %c0_48], %123 {strides = array<i32>} : memref<1x24x100xbf16, #tpu.memory_space<vmem>>, vector<1x24x100xbf16>,
    return
  }
  func.func @transform_0(%arg0: i32) -> (i32, i32, i32) {
    %c0_i32 = arith.constant 0 : i32
    %c0_i32_0 = arith.constant 0 : i32
    %c0_i32_1 = arith.constant 0 : i32
    return %arg0, %c0_i32, %c0_i32_0 : i32, i32, i32
  }
  func.func @transform_1(%arg0: i32) -> (i32, i32) {
    %c0_i32 = arith.constant 0 : i32
    %c0_i32_0 = arith.constant 0 : i32
    %c0_i32_1 = arith.constant 0 : i32
    return %c0_i32, %c0_i32_0 : i32, i32
  }
  func.func @transform_2(%arg0: i32) -> (i32, i32) {
    %c0_i32 = arith.constant 0 : i32
    %c0_i32_0 = arith.constant 0 : i32
    %c0_i32_1 = arith.constant 0 : i32
    return %c0_i32, %c0_i32_0 : i32, i32
  }
  func.func @transform_3(%arg0: i32) -> (i32, i32) {
    %c0_i32 = arith.constant 0 : i32
    %c0_i32_0 = arith.constant 0 : i32
    %c0_i32_1 = arith.constant 0 : i32
    return %c0_i32, %c0_i32_0 : i32, i32
  }
  func.func @transform_4(%arg0: i32) -> (i32, i32) {
    %c0_i32 = arith.constant 0 : i32
    %c0_i32_0 = arith.constant 0 : i32
    %c0_i32_1 = arith.constant 0 : i32
    return %c0_i32, %c0_i32_0 : i32, i32
  }
  func.func @transform_5(%arg0: i32) -> (i32, i32) {
    %c0_i32 = arith.constant 0 : i32
    %c0_i32_0 = arith.constant 0 : i32
    %c0_i32_1 = arith.constant 0 : i32
    return %c0_i32, %c0_i32_0 : i32, i32
  }
  func.func @transform_6(%arg0: i32) -> (i32, i32) {
    %c0_i32 = arith.constant 0 : i32
    %c0_i32_0 = arith.constant 0 : i32
    %c0_i32_1 = arith.constant 0 : i32
    return %c0_i32, %c0_i32_0 : i32, i32
  }
  func.func @transform_7(%arg0: i32) -> (i32, i32) {
    %c0_i32 = arith.constant 0 : i32
    %c0_i32_0 = arith.constant 0 : i32
    %c0_i32_1 = arith.constant 0 : i32
    return %c0_i32, %c0_i32_0 : i32, i32
  }
  func.func @transform_8(%arg0: i32) -> (i32, i32) {
    %c0_i32 = arith.constant 0 : i32
    %c0_i32_0 = arith.constant 0 : i32
    %c0_i32_1 = arith.constant 0 : i32
    return %c0_i32, %c0_i32_0 : i32, i32
  }
  func.func @transform_9(%arg0: i32) -> (i32, i32) {
    %c0_i32 = arith.constant 0 : i32
    %c0_i32_0 = arith.constant 0 : i32
    %c0_i32_1 = arith.constant 0 : i32
    return %c0_i32, %c0_i32_0 : i32, i32
  }
  func.func @transform_10(%arg0: i32) -> (i32, i32) {
    %c0_i32 = arith.constant 0 : i32
    %c0_i32_0 = arith.constant 0 : i32
    %c0_i32_1 = arith.constant 0 : i32
    return %c0_i32, %c0_i32_0 : i32, i32
  }
  func.func @transform_11(%arg0: i32) -> (i32, i32) {
    %c0_i32 = arith.constant 0 : i32
    %c0_i32_0 = arith.constant 0 : i32
    %c0_i32_1 = arith.constant 0 : i32
    return %c0_i32, %c0_i32_0 : i32, i32
  }
  func.func @transform_12(%arg0: i32) -> (i32, i32) {
    %c0_i32 = arith.constant 0 : i32
    %c0_i32_0 = arith.constant 0 : i32
    %c0_i32_1 = arith.constant 0 : i32
    return %c0_i32, %c0_i32_0 : i32, i32
  }
  func.func @transform_13(%arg0: i32) -> (i32, i32, i32) {
    %c0_i32 = arith.constant 0 : i32
    %c0_i32_0 = arith.constant 0 : i32
    %c0_i32_1 = arith.constant 0 : i32
    return %arg0, %c0_i32, %c0_i32_0 : i32, i32, i32
  }
}

</mosaic_0001>

<bundles_post_ra>
// kernel: mobilenet_v3_forward.5
= control target key start
LH: loop header
LB: loop body
LE: loop exit
PB: predicated region body
PF: predicated region fallthrough
CT: control target
= control target key end

     0   :  { %s587_s15 = smov 0   ;;  %s620_s0 = inlined_call_operand.vmem [shape: bf16[2,27,324], index: 0, kind: input, shape index: {}]   ;;  %s621_s1 = inlined_call_operand.vmem [shape: bf16[16,27], index: 1, kind: input, shape index: {}]   ;;  %s622_s2 = inlined_call_operand.vmem [shape: f32[16,1], index: 2, kind: input, shape index: {}]   ;;  %s623_s3 = inlined_call_operand.vmem [shape: f32[1,324], index: 3, kind: input, shape index: {}]   ;;  %s624_s4 = inlined_call_operand.vmem [shape: bf16[2,16,324], index: 4, kind: output, shape index: {}]  }
   0x1 LB: > { %s489_s16 = sadd.s32 4294967295, %s556_s15   ;;  %p493_p0 = scmp.ge.s32.totalorder %s556_s15, 1  ;;  %s556_s15 = sphi %s587_s15, %s14_s15  }
   0x2   : > { %p162_p1 = scmp.lt.s32.totalorder %s556_s15, 3 }
   0x4   : > { %p163_p2 = pnand %p493_p0, %p162_p1 }
   0x5   : > { %p188_p3 = scmp.lt.s32.totalorder (!%p163_p2), %s489_s16, 1  ;;  %v558_v0 = vmov (!%p163_p2), 0.0   ;;  %vm559_vm0 = vmmov (!%p163_p2), 0   ;;  %v560_v1 = vmov (!%p163_p2), 0   ;;  %v209_v2 = vld [vmem:[%s622_s2] sm:$0xff] (!%p163_p2)  ;;  %vm259_vm1 = vcmask (!%p163_p2), 1044480  }
   0x6   : > { %166 = sbr.rel (%p163_p2) target bundleno = 258 (0x102), region = 36  ;;  %518 = vmatprep.subr.bf16.mxu1 (!%p163_p2), %v558_v0  ;;  %522 = vmatprep.mubr.msk.bf16.mxu1 (!%p163_p2), %vm559_vm0, %v558_v0  ;;  %v210_v3 = vld [vmem:[%s622_s2 + $0x8] sm:$0xff] (!%p163_p2)  ;;  %vm260_vm2 = vcmask (!%p163_p2), 1045504   ;;  %v561_v4 = vmov (!%p163_p2), 65535   ;;  %v549_v16 = vld [vmem:[%s621_s1] sm:$0xff] (!%p163_p2)   ;;  %vm255_vm3 = vcmask (!%p163_p2), 220160   ;;  %v388_v18 = vlaneseq (!%p163_p2) }
   0x7   : > { %304 = vmatprep.mubr.bf16.mxu0 (!%p163_p2), %v560_v1  ;;  %540 = vset.pattern.permute.xlu0 (!%p163_p2), %v560_v1  ;;  %v261_v5 = vsel (!%p163_p2), %vm259_vm1, 4294967295, %v561_v4  ;;  %v386_v38 = vld [vmem:[%s623_s3] sm:$0x7] (!%p163_p2)  ;;  %vm430_vm4 = vcmask (!%p163_p2), 551936  }
   0x8   : > { %213 = vperm.xlu0 (!%p163_p2), %540, %v209_v2   ;;  %v262_v9 = vsel (!%p163_p2), %vm260_vm2, %v261_v5, 0  ;;  %v389_v21 = vshrl.u32 (!%p163_p2), %v388_v18, 7 }
   0xa   : > { %v398_v33 = vsub.s32 (!%p163_p2), 2, %v389_v21  ;;  %v390_v43 = vsub.s32 (!%p163_p2), 0, %v389_v21  ;;  %v394_v44 = vsub.s32 (!%p163_p2), 1, %v389_v21 }
   0xc   : > { %218 = vperm.xlu0 (!%p163_p2), %540, %v210_v3   ;;  %v399_v50 = vrot.slane (!%p163_p2), %v386_v38, %v398_v33  ;;  %v391_v58 = vrot.slane (!%p163_p2), %v386_v38, %v390_v43  ;;  %v395_v59 = vrot.slane (!%p163_p2), %v386_v38, %v394_v44 }
   0xd   : > { %s626_s16 = smov (!%p188_p3, %s489_s16), 1 }
   0xe   : > { %s526_s19 = smul.u32 48, %s626_s16 }
   0xf   : > { %s527_s29 = smul.u32 24, %s626_s16 }
  0x10   : > { %s192_s24 = scalar_lea.vmem %s620_s0, %s526_s19 }
  0x11   : > { %v541_v6 = vld [vmem:[%s192_s24 + $0x4] ss:$12 sps:$4 sm:$0xff]   ;;  %v543_v7 = vld [vmem:[%s192_s24 + $0x8] ss:$12 sps:$4 sm:$0xff]   ;;  %v544_v8 = vld [vmem:[%s192_s24] ss:$12 sps:$4 sm:$0xff]   ;;  %s197_s6 = scalar_lea.vmem %s624_s4, %s527_s29 }
  0x12   : > { %272 = vmatprep.subr.bf16.mxu0 %v541_v6  ;;  %519 = vmatpush3.bf16.msra.mxu1 %v543_v7  ;;  %v545_v10 = vld [vmem:[%s192_s24 + $0x1c] ss:$12 sps:$4 sm:$0x3f]   ;;  %v547_v11 = vld [vmem:[%s192_s24 + $0x20] ss:$12 sps:$4 sm:$0x3f]  }
  0x13   : > { %273 = vmatpush1.bf16.msra.mxu0 %v544_v8  ;;  %520 = vmatprep.subr.bf16.mxu1 %v558_v0  ;;  %v267_v12 = vand.u32 %v545_v10, %v262_v9  ;;  %v548_v13 = vld [vmem:[%s192_s24 + $0x18] ss:$12 sps:$4 sm:$0x3f]   ;;  %v270_v14 = vand.u32 %v547_v11, %v262_v9 }
  0x14   : > { %v264_v15 = vand.u32 %v548_v13, %v262_v9 }
  0x15   : > { %274 = vmatprep.subr.bf16.mxu0 %v267_v12 }
  0x16   : > { %521 = vmatpush3.bf16.msra.mxu1 %v270_v14 }
  0x17   : > { %275 = vmatpush1.bf16.msra.mxu0 %v264_v15 }
  0x19   : > { %523 = vmatmul.mubr.msk.bf16.vlgmr.msra.gmra.mrb[0].mxu1 %vm255_vm3, %v549_v16 }
  0x1a   : > { %503 = vmatmul.mubr.msk.bf16.vlgmr.msra.gmra.mrb[0].mxu0 %vm255_vm3, %v549_v16 }
  0x87   : > { %v214_v17 = vpop.permute.xlu0 %213 }
  0x8b   : > { %v219_v19 = vpop.permute.xlu0 %218 }
  0xec   : > { %v349_v20 = vpop.f32.mrb[0].mxu1 }
  0xed   : > { %v350_v22 = vadd.f32 %v349_v20, %v214_v17  ;;  %v306_v23 = vpop.f32.mrb[0].mxu0  ;;  %v524_v24 = vpop.f32.mrb[1].mxu1 }
  0xee   : > { %v307_v25 = vadd.f32 %v306_v23, %v214_v17  ;;  %v308_v26 = vpop.f32.mrb[1].mxu0  ;;  %v352_v27 = vpop.f32.mrb[2].mxu1 }
  0xef   : > { %v358_v28 = vadd.f32 3.0, %v350_v22  ;;  %v309_v29 = vadd.f32 %v308_v26, %v214_v17  ;;  %v353_v30 = vadd.f32 %v352_v27, %v219_v19  ;;  %v310_v31 = vpop.f32.mrb[2].mxu0  ;;  %v525_v32 = vpop.f32.mrb[3].mxu1 }
  0xf0   : > { %v356_v34 = vadd.f32 3.0, %v307_v25  ;;  %v311_v35 = vadd.f32 %v310_v31, %v219_v19  ;;  %v312_v36 = vpop.f32.mrb[3].mxu0 }
  0xf1   : > { %v364_v37 = vmax.f32 %v358_v28, 0.0  ;;  %v357_v39 = vadd.f32 3.0, %v309_v29  ;;  %v361_v40 = vadd.f32 3.0, %v353_v30  ;;  %v313_v41 = vadd.f32 %v312_v36, %v219_v19 }
  0xf2   : > { %v362_v42 = vmax.f32 %v356_v34, 0.0  ;;  %v359_v45 = vadd.f32 3.0, %v311_v35 }
  0xf3   : > { %v370_v46 = vmin.f32 %v364_v37, 6.0  ;;  %v363_v47 = vmax.f32 %v357_v39, 0.0  ;;  %v367_v48 = vmax.f32 %v361_v40, 0.0  ;;  %v360_v49 = vadd.f32 3.0, %v313_v41 }
  0xf4   : > { %v368_v51 = vmin.f32 %v362_v42, 6.0  ;;  %v365_v52 = vmax.f32 %v359_v45, 0.0 }
  0xf5   : > { %v376_v53 = vmul.f32 %v370_v46, %v350_v22  ;;  %v369_v54 = vmin.f32 %v363_v47, 6.0  ;;  %v373_v55 = vmin.f32 %v367_v48, 6.0  ;;  %v366_v56 = vmax.f32 %v360_v49, 0.0 }
  0xf6   : > { %v374_v57 = vmul.f32 %v368_v51, %v307_v25  ;;  %v371_v60 = vmin.f32 %v365_v52, 6.0 }
  0xf7   : > { %v382_v61 = vmul.f32 0.16666667, %v376_v53  ;;  %v375_v62 = vmul.f32 %v369_v54, %v309_v29  ;;  %v379_v63 = vmul.f32 %v373_v55, %v353_v30  ;;  %v372_v0 = vmin.f32 %v366_v56, 6.0 }
  0xf8   : > { %v380_v1 = vmul.f32 0.16666667, %v374_v57  ;;  %v377_v2 = vmul.f32 %v371_v60, %v311_v35 }
  0xf9   : > { %v405_v3 = vmul.f32 %v399_v50, %v382_v61  ;;  %v381_v4 = vmul.f32 0.16666667, %v375_v62  ;;  %v385_v5 = vmul.f32 0.16666667, %v379_v63  ;;  %v378_v6 = vmul.f32 %v372_v0, %v313_v41 }
  0xfa   : > { %v403_v7 = vmul.f32 %v391_v58, %v380_v1  ;;  %v383_v8 = vmul.f32 0.16666667, %v377_v2 }
  0xfb   : > { %v512_v9 = vpack.c.bf16 %v405_v3, %v405_v3  ;;  %v404_v10 = vmul.f32 %v395_v59, %v381_v4  ;;  %v408_v11 = vmul.f32 %v399_v50, %v385_v5  ;;  %v384_v12 = vmul.f32 0.16666667, %v378_v6 }
  0xfc   : > { %v406_v13 = vmul.f32 %v391_v58, %v383_v8 }
  0xfd   : > { %431 = vst.msk [vmem:[%s197_s6 + $0x8] sm:$0xf] %vm430_vm4, %v512_v9  ;;  %v511_v14 = vpack.c.bf16 %v404_v10, %v403_v7  ;;  %v514_v15 = vpack.c.bf16 %v408_v11, %v408_v11  ;;  %v407_v16 = vmul.f32 %v395_v59, %v384_v12 }
  0xff   : > { %429 = vst [vmem:[%s197_s6] sm:$0xff] %v511_v14  ;;  %433 = vst.msk [vmem:[%s197_s6 + $0x14] sm:$0xf] %vm430_vm4, %v514_v15  ;;  %v513_v17 = vpack.c.bf16 %v407_v16, %v406_v13 }
 0x101   : > { %432 = vst [vmem:[%s197_s6 + $0xc] sm:$0xff] %v513_v17 }
 0x102 PF: > { %s14_s15 = sadd.s32 1, %s556_s15  }
 0x103   : > { %p11_p4 = scmp.ge.s32.totalorder %s14_s15, 4  }
 0x105   :  { %13 = sbr.rel (!%p11_p4) target bundleno = 1 (0x1), region = 66 }

// kernel: mobilenet_v3_forward.6
= control target key start
LH: loop header
LB: loop body
LE: loop exit
PB: predicated region body
PF: predicated region fallthrough
CT: control target
= control target key end

     0   :  { %s1108_s21 = smov 0   ;;  %s1298_s0 = inlined_call_operand.vmem [shape: bf16[2,16,324], index: 0, kind: input, shape index: {}]   ;;  %s1299_s1 = inlined_call_operand.vmem [shape: f32[16,9], index: 1, kind: input, shape index: {}]   ;;  %s1300_s2 = inlined_call_operand.vmem [shape: f32[16,1], index: 2, kind: input, shape index: {}]   ;;  %s1301_s3 = inlined_call_operand.vmem [shape: f32[1,286], index: 3, kind: input, shape index: {}]   ;;  %s1302_s4 = inlined_call_operand.vmem [shape: bf16[16,16], index: 4, kind: input, shape index: {}]   ;;  %s1303_s5 = inlined_call_operand.vmem [shape: f32[16,1], index: 5, kind: input, shape index: {}]   ;;  %s1304_s6 = inlined_call_operand.vmem [shape: bf16[2,16,324], index: 6, kind: output, shape index: {}]  }
   0x1 LB: > { %s962_s22 = sadd.s32 4294967295, %s1051_s21   ;;  %p966_p0 = scmp.ge.s32.totalorder %s1051_s21, 1  ;;  %s1051_s21 = sphi %s1108_s21, %s16_s21  }
   0x2   : > { %p212_p1 = scmp.lt.s32.totalorder %s1051_s21, 3 }
   0x4   : > { %p213_p2 = pnand %p966_p0, %p212_p1 }
   0x5   : > { %v263_v0 = vld [vmem:[%s1299_s1] sm:$0xff] (!%p213_p2)  ;;  %v1053_v1 = vmov (!%p213_p2), 1   ;;  %v1054_v2 = vmov (!%p213_p2), 2   ;;  %v264_v3 = vld [vmem:[%s1299_s1 + $0x8] sm:$0xff] (!%p213_p2)  ;;  %v1055_v4 = vmov (!%p213_p2), 0   ;;  %v1056_v5 = vmov (!%p213_p2), 3  }
   0x6   : > { %216 = sbr.rel (%p213_p2) target bundleno = 702 (0x2be), region = 44  ;;  %1015 = vset.pattern.permute.xlu0 (!%p213_p2), %v1053_v1  ;;  %1016 = vset.pattern.permute.xlu1 (!%p213_p2), %v1054_v2  ;;  %v1057_v6 = vmov (!%p213_p2), 4   ;;  %v1058_v7 = vmov (!%p213_p2), 5   ;;  %v1059_v8 = vmov (!%p213_p2), 6   ;;  %v1060_v9 = vmov (!%p213_p2), 7   ;;  %v674_v10 = vld [vmem:[%s1300_s2 + $0x8] sm:$0xff] (!%p213_p2) }
   0x7   : > { %282 = vperm.xlu0 (!%p213_p2), %1015, %v263_v0   ;;  %331 = vperm.xlu1 (!%p213_p2), %1016, %v263_v0   ;;  %v1061_v11 = vmov (!%p213_p2), 8   ;;  %v673_v12 = vld [vmem:[%s1300_s2] sm:$0xff] (!%p213_p2)  ;;  %p242_p3 = scmp.lt.s32.totalorder (!%p213_p2), %s962_s22, 1  ;;  %s1062_s11 = smov (!%p213_p2), 127   ;;  %vm1071_vm0 = vmmov (!%p213_p2), 0   ;;  %vm313_vm1 = vcmask (!%p213_p2), 1039360  }
   0x8   : > { %756 = vmatprep.mubr.bf16.mxu0 (!%p213_p2), %v1055_v4  ;;  %s1063_s12 = smov (!%p213_p2), 126   ;;  %s1064_s13 = smov (!%p213_p2), 110   ;;  %vm362_vm2 = vcmask (!%p213_p2), 1031168   ;;  %vm411_vm3 = vcmask (!%p213_p2), 900096   ;;  %vm460_vm4 = vcmask (!%p213_p2), 891904   ;;  %vm509_vm5 = vcmask (!%p213_p2), 883712  }
   0x9   : > { %s1065_s14 = smov (!%p213_p2), 109   ;;  %s1066_s15 = smov (!%p213_p2), 108   ;;  %vm558_vm6 = vcmask (!%p213_p2), 752640   ;;  %vm607_vm7 = vcmask (!%p213_p2), 744448   ;;  %vm656_vm8 = vcmask (!%p213_p2), 736256   ;;  %vm720_vm9 = vcmask (!%p213_p2), 130048  }
   0xa   : > { %s1067_s16 = smov (!%p213_p2), 92   ;;  %s1068_s17 = smov (!%p213_p2), 91   ;;  %vm876_vm10 = vcmask (!%p213_p2), 154624   ;;  %vm883_vm11 = vcmask (!%p213_p2), 400384   ;;  %vm903_vm12 = vcmask (!%p213_p2), 551936  }
   0xb   : > { %286 = vperm.xlu0 (!%p213_p2), %1015, %v264_v3   ;;  %335 = vperm.xlu1 (!%p213_p2), %1016, %v264_v3   ;;  %s1070_s18 = smov (!%p213_p2), 90   ;;  %s1072_s29 = smov (!%p213_p2), 19  }
   0xd   : > { %s1306_s22 = smov (!%p242_p3, %s962_s22), 1 }
   0xe   : > { %s986_s7 = smul.u32 24, %s1306_s22 }
   0xf   : > { %1017 = vset.pattern.permute.xlu0 %v1056_v5  ;;  %1018 = vset.pattern.permute.xlu1 %v1056_v5 }
  0x10   : > { %380 = vperm.xlu0 %1017, %v263_v0   ;;  %384 = vperm.xlu1 %1018, %v264_v3   ;;  %s246_s10 = scalar_lea.vmem %s1298_s0, %s986_s7  ;;  %s251_s9 = scalar_lea.vmem %s1304_s6, %s986_s7 }
  0x11   : > { %v253_v13 = vld [vmem:[%s246_s10] sm:$0xff]  ;;  %v254_v14 = vld [vmem:[%s246_s10 + $0x8] ss:$12 sps:$4 sm:$0xff]   ;;  %v255_v17 = vld [vmem:[%s246_s10 + $0xc] sm:$0xff] }
  0x12   : > { %v1140_v15 = vunpack.c.h.bf16 %v253_v13  ;;  %v1142_v16 = vunpack.c.l.bf16 %v254_v14  ;;  %v1146_v21 = vunpack.c.h.bf16 %v255_v17  ;;  %v1148_v22 = vunpack.c.h.bf16 %v254_v14 }
  0x13   : > { %v1150_v24 = vunpack.c.l.bf16 %v253_v13  ;;  %v1152_v25 = vunpack.c.l.bf16 %v255_v17 }
  0x14   : > { %1019 = vset.pattern.permute.xlu1 %v1057_v6  ;;  %1020 = vset.pattern.permute.xlu0 %v1057_v6 }
  0x15   : > { %429 = vperm.xlu1 %1019, %v263_v0   ;;  %433 = vperm.xlu0 %1020, %v264_v3  }
  0x19   : > { %1021 = vset.pattern.permute.xlu1 %v1058_v7  ;;  %1022 = vset.pattern.permute.xlu0 %v1059_v8 }
  0x1a   : > { %478 = vperm.xlu1 %1021, %v263_v0   ;;  %527 = vperm.xlu0 %1022, %v263_v0  }
  0x1e   : > { %482 = vperm.xlu1 %1021, %v264_v3   ;;  %1025 = vset.pattern.permute.xlu0 %v1060_v9 }
  0x1f   : > { %580 = vperm.xlu0 %1025, %v264_v3  }
  0x22   : > { %1023 = vset.pattern.permute.xlu1 %v1059_v8 }
  0x23   : > { %531 = vperm.xlu1 %1023, %v264_v3   ;;  %1027 = vset.pattern.permute.xlu0 %v1055_v4 }
  0x24   : > { %267 = vperm.xlu0 %1027, %v263_v0  }
  0x27   : > { %1024 = vset.pattern.permute.xlu1 %v1060_v9 }
  0x28   : > { %576 = vperm.xlu1 %1024, %v263_v0   ;;  %682 = vperm.xlu0 %1027, %v674_v10  }
  0x2c   : > { %1026 = vset.pattern.permute.xlu1 %v1061_v11 }
  0x2d   : > { %625 = vperm.xlu1 %1026, %v263_v0  }
  0x31   : > { %629 = vperm.xlu1 %1026, %v264_v3  }
  0x35   : > { %1028 = vset.pattern.permute.xlu1 %v1055_v4 }
  0x36   : > { %272 = vperm.xlu1 %1028, %v264_v3  }
  0x3a   : > { %677 = vperm.xlu1 %1028, %v673_v12  }
  0x86   : > { %v283_v18 = vpop.permute.xlu0 %282  ;;  %v332_v28 = vpop.permute.xlu1 %331 }
  0x87   : > { %v290_v19 = vmul.f32 %v283_v18, %v1140_v15  ;;  %v291_v20 = vmul.f32 %v283_v18, %v1142_v16  ;;  %v289_v29 = vmul.f32 %v283_v18, %v1150_v24  ;;  %v339_v31 = vmul.f32 %v332_v28, %v1140_v15 }
  0x88   : > { %v340_v32 = vmul.f32 %v332_v28, %v1142_v16  ;;  %v338_v37 = vmul.f32 %v332_v28, %v1150_v24 }
  0x89   : > { %305 = vrot.lane.b32.xlu0 %v291_v20, %s1062_s11  ;;  %303 = vrot.lane.b32.xlu1 %v290_v19, %s1062_s11  ;;  %v1069_v19 = vmov 0.0  }
  0x8a   : > { %v287_v23 = vpop.permute.xlu0 %286  ;;  %v336_v33 = vpop.permute.xlu1 %335  ;;  %980 = vmatprep.subr.bf16.mxu1 %v1069_v19  ;;  %982 = vmatprep.mubr.msk.bf16.mxu1 %vm1071_vm0, %v1069_v19 }
  0x8b   : > { %v293_v26 = vmul.f32 %v287_v23, %v1146_v21  ;;  %v294_v27 = vmul.f32 %v287_v23, %v1148_v22  ;;  %v292_v30 = vmul.f32 %v287_v23, %v1152_v25  ;;  %v342_v34 = vmul.f32 %v336_v33, %v1146_v21 }
  0x8c   : > { %v343_v35 = vmul.f32 %v336_v33, %v1148_v22  ;;  %v341_v38 = vmul.f32 %v336_v33, %v1152_v25  ;;  %v1039_v33 = vpack.i.bf16 %v1152_v25, %v1150_v24 }
  0x8d   : > { %311 = vrot.lane.b32.xlu0 %v294_v27, %s1062_s11  ;;  %309 = vrot.lane.b32.xlu1 %v293_v26, %s1062_s11 }
  0x8f   : > { %v381_v36 = vpop.permute.xlu0 %380  ;;  %v385_v41 = vpop.permute.xlu1 %384 }
  0x90   : > { %v388_v39 = vmul.f32 %v381_v36, %v1140_v15  ;;  %v389_v40 = vmul.f32 %v381_v36, %v1142_v16  ;;  %v391_v42 = vmul.f32 %v385_v41, %v1146_v21  ;;  %v392_v43 = vmul.f32 %v385_v41, %v1148_v22 }
  0x91   : > { %307 = vrot.lane.b32.xlu0 %v292_v30, %s1062_s11  ;;  %301 = vrot.lane.b32.xlu1 %v289_v29, %s1062_s11  ;;  %v387_v45 = vmul.f32 %v381_v36, %v1150_v24  ;;  %v390_v46 = vmul.f32 %v385_v41, %v1152_v25  ;;  %v704_v29 = vld [vmem:[%s1303_s5 + $0x8] sm:$0xff]  ;;  %v703_v30 = vld [vmem:[%s1303_s5] sm:$0xff] }
  0x94   : > { %v430_v44 = vpop.permute.xlu1 %429  ;;  %v434_v49 = vpop.permute.xlu0 %433 }
  0x95   : > { %354 = vrot.lane.b32.xlu0 %v340_v32, %s1063_s12  ;;  %352 = vrot.lane.b32.xlu1 %v339_v31, %s1063_s12  ;;  %v437_v47 = vmul.f32 %v430_v44, %v1140_v15  ;;  %v438_v48 = vmul.f32 %v430_v44, %v1142_v16  ;;  %v440_v50 = vmul.f32 %v434_v49, %v1146_v21 }
  0x96   : > { %v441_v51 = vmul.f32 %v434_v49, %v1148_v22  ;;  %v436_v53 = vmul.f32 %v430_v44, %v1150_v24  ;;  %v439_v54 = vmul.f32 %v434_v49, %v1152_v25  ;;  %v1029_v31 = vpack.i.bf16 %v1142_v16, %v1140_v15 }
  0x97   : > { %v1034_v32 = vpack.i.bf16 %v1148_v22, %v1146_v21 }
  0x99   : > { %360 = vrot.lane.b32.xlu0 %v343_v35, %s1063_s12  ;;  %358 = vrot.lane.b32.xlu1 %v342_v34, %s1063_s12  ;;  %v479_v52 = vpop.permute.xlu1 %478  ;;  %v528_v60 = vpop.permute.xlu0 %527 }
  0x9a   : > { %v486_v55 = vmul.f32 %v479_v52, %v1140_v15  ;;  %v487_v56 = vmul.f32 %v479_v52, %v1142_v16  ;;  %v485_v61 = vmul.f32 %v479_v52, %v1150_v24  ;;  %v535_v63 = vmul.f32 %v528_v60, %v1140_v15 }
  0x9b   : > { %v536_v0 = vmul.f32 %v528_v60, %v1142_v16  ;;  %v534_v5 = vmul.f32 %v528_v60, %v1150_v24 }
  0x9d   : > { %356 = vrot.lane.b32.xlu0 %v341_v38, %s1063_s12  ;;  %350 = vrot.lane.b32.xlu1 %v338_v37, %s1063_s12  ;;  %v483_v57 = vpop.permute.xlu1 %482 }
  0x9e   : > { %v489_v58 = vmul.f32 %v483_v57, %v1146_v21  ;;  %v490_v59 = vmul.f32 %v483_v57, %v1148_v22  ;;  %v488_v62 = vmul.f32 %v483_v57, %v1152_v25  ;;  %v581_v9 = vpop.permute.xlu0 %580 }
  0x9f   : > { %v587_v10 = vmul.f32 %v581_v9, %v1146_v21  ;;  %v588_v11 = vmul.f32 %v581_v9, %v1148_v22  ;;  %v586_v14 = vmul.f32 %v581_v9, %v1152_v25 }
  0xa1   : > { %403 = vrot.lane.b32.xlu0 %v389_v40, %s1064_s13  ;;  %401 = vrot.lane.b32.xlu1 %v388_v39, %s1064_s13 }
  0xa2   : > { %v532_v1 = vpop.permute.xlu1 %531 }
  0xa3   : > { %v538_v2 = vmul.f32 %v532_v1, %v1146_v21  ;;  %v539_v3 = vmul.f32 %v532_v1, %v1148_v22  ;;  %v537_v6 = vmul.f32 %v532_v1, %v1152_v25  ;;  %v268_v35 = vpop.permute.xlu0 %267 }
  0xa4   : > { %v277_v38 = vmul.f32 %v268_v35, %v1142_v16  ;;  %v276_v39 = vmul.f32 %v268_v35, %v1140_v15 }
  0xa5   : > { %409 = vrot.lane.b32.xlu0 %v392_v43, %s1064_s13  ;;  %407 = vrot.lane.b32.xlu1 %v391_v42, %s1064_s13 }
  0xa7   : > { %v577_v4 = vpop.permute.xlu1 %576  ;;  %v1223_v37 = vpop.permute.xlu0 %682 }
  0xa8   : > { %v584_v7 = vmul.f32 %v577_v4, %v1140_v15  ;;  %v585_v8 = vmul.f32 %v577_v4, %v1142_v16  ;;  %v583_v13 = vmul.f32 %v577_v4, %v1150_v24 }
  0xa9   : > { %405 = vrot.lane.b32.xlu0 %v390_v46, %s1064_s13  ;;  %399 = vrot.lane.b32.xlu1 %v387_v45, %s1064_s13 }
  0xac   : > { %v626_v12 = vpop.permute.xlu1 %625 }
  0xad   : > { %452 = vrot.lane.b32.xlu0 %v438_v48, %s1065_s14  ;;  %450 = vrot.lane.b32.xlu1 %v437_v47, %s1065_s14  ;;  %v633_v17 = vmul.f32 %v626_v12, %v1140_v15  ;;  %v634_v18 = vmul.f32 %v626_v12, %v1142_v16  ;;  %v632_v27 = vmul.f32 %v626_v12, %v1150_v24 }
  0xae   : > { %v275_v15 = vmul.f32 %v268_v35, %v1150_v24 }
  0xb0   : > { %v630_v20 = vpop.permute.xlu1 %629 }
  0xb1   : > { %458 = vrot.lane.b32.xlu0 %v441_v51, %s1065_s14  ;;  %456 = vrot.lane.b32.xlu1 %v440_v50, %s1065_s14  ;;  %v636_v23 = vmul.f32 %v630_v20, %v1146_v21  ;;  %v637_v26 = vmul.f32 %v630_v20, %v1148_v22  ;;  %v635_v28 = vmul.f32 %v630_v20, %v1152_v25 }
  0xb5   : > { %454 = vrot.lane.b32.xlu0 %v439_v54, %s1065_s14  ;;  %448 = vrot.lane.b32.xlu1 %v436_v53, %s1065_s14  ;;  %v273_v34 = vpop.permute.xlu1 %272 }
  0xb6   : > { %v280_v45 = vmul.f32 %v273_v34, %v1148_v22  ;;  %v279_v46 = vmul.f32 %v273_v34, %v1146_v21  ;;  %v278_v16 = vmul.f32 %v273_v34, %v1152_v25 }
  0xb9   : > { %501 = vrot.lane.b32.xlu0 %v487_v56, %s1066_s15  ;;  %499 = vrot.lane.b32.xlu1 %v486_v55, %s1066_s15  ;;  %v1221_v36 = vpop.permute.xlu1 %677 }
  0xbd   : > { %507 = vrot.lane.b32.xlu0 %v490_v59, %s1066_s15  ;;  %505 = vrot.lane.b32.xlu1 %v489_v58, %s1066_s15 }
  0xc1   : > { %503 = vrot.lane.b32.xlu0 %v488_v62, %s1066_s15  ;;  %497 = vrot.lane.b32.xlu1 %v485_v61, %s1066_s15 }
  0xc5   : > { %550 = vrot.lane.b32.xlu0 %v536_v0, %s1067_s16  ;;  %548 = vrot.lane.b32.xlu1 %v535_v63, %s1067_s16 }
  0xc9   : > { %556 = vrot.lane.b32.xlu0 %v539_v3, %s1067_s16  ;;  %554 = vrot.lane.b32.xlu1 %v538_v2, %s1067_s16 }
  0xcd   : > { %552 = vrot.lane.b32.xlu0 %v537_v6, %s1067_s16  ;;  %546 = vrot.lane.b32.xlu1 %v534_v5, %s1067_s16 }
  0xd1   : > { %599 = vrot.lane.b32.xlu0 %v585_v8, %s1068_s17  ;;  %597 = vrot.lane.b32.xlu1 %v584_v7, %s1068_s17 }
  0xd5   : > { %605 = vrot.lane.b32.xlu0 %v588_v11, %s1068_s17  ;;  %603 = vrot.lane.b32.xlu1 %v587_v10, %s1068_s17 }
  0xd9   : > { %601 = vrot.lane.b32.xlu0 %v586_v14, %s1068_s17  ;;  %595 = vrot.lane.b32.xlu1 %v583_v13, %s1068_s17 }
  0xdd   : > { %648 = vrot.lane.b32.xlu0 %v634_v18, %s1070_s18  ;;  %646 = vrot.lane.b32.xlu1 %v633_v17, %s1070_s18 }
  0xe1   : > { %654 = vrot.lane.b32.xlu0 %v637_v26, %s1070_s18  ;;  %652 = vrot.lane.b32.xlu1 %v636_v23, %s1070_s18 }
  0xe5   : > { %650 = vrot.lane.b32.xlu0 %v635_v28, %s1070_s18  ;;  %644 = vrot.lane.b32.xlu1 %v632_v27, %s1070_s18 }
  0xe9   : > { %712 = vperm.xlu0 %1027, %v704_v29   ;;  %707 = vperm.xlu1 %1028, %v703_v30  }
  0xed   : > { %1030 = vrot.lane.b32.xlu1 %v1029_v31, %s1065_s14  ;;  %1035 = vrot.lane.b32.xlu0 %v1034_v32, %s1065_s14 }
  0xf1   : > { %1040 = vrot.lane.b32.xlu1 %v1039_v33, %s1065_s14 }
  0xfb   : > { %v306_v40 = vpop.permute.xlu0 %305  ;;  %v304_v41 = vpop.permute.xlu1 %303 }
  0xfc   : > { %v326_v42 = vadd.f32 %v306_v40, %v277_v38  ;;  %v315_v43 = vsel %vm313_vm1, %v304_v41, %v306_v40 }
  0xfd   : > { %v325_v44 = vadd.f32 %v315_v43, %v276_v39 }
  0xff   : > { %v312_v47 = vpop.permute.xlu0 %311  ;;  %v310_v48 = vpop.permute.xlu1 %309 }
 0x100   : > { %v329_v49 = vadd.f32 %v312_v47, %v280_v45  ;;  %v317_v50 = vsel %vm313_vm1, %v310_v48, %v312_v47 }
 0x101   : > { %v1231_v51 = vadd.f32 %v317_v50, %v279_v46 }
 0x103   : > { %v308_v52 = vpop.permute.xlu0 %307  ;;  %v302_v53 = vpop.permute.xlu1 %301 }
 0x104   : > { %v316_v54 = vsel %vm313_vm1, %v308_v52, %v310_v48  ;;  %v314_v55 = vsel %vm313_vm1, %v302_v53, %v304_v41 }
 0x105   : > { %v327_v22 = vadd.f32 %v316_v54, %v278_v16  ;;  %v324_v56 = vadd.f32 %v314_v55, %v275_v15 }
 0x107   : > { %v355_v21 = vpop.permute.xlu0 %354  ;;  %v353_v57 = vpop.permute.xlu1 %352 }
 0x108   : > { %v375_v58 = vadd.f32 %v355_v21, %v326_v42  ;;  %v364_v59 = vsel %vm362_vm2, %v353_v57, %v355_v21 }
 0x109   : > { %v374_v60 = vadd.f32 %v364_v59, %v325_v44 }
 0x10b   : > { %v361_v61 = vpop.permute.xlu0 %360  ;;  %v359_v62 = vpop.permute.xlu1 %358 }
 0x10c   : > { %v366_v38 = vsel %vm362_vm2, %v359_v62, %v361_v61  ;;  %v378_v41 = vadd.f32 %v361_v61, %v329_v49 }
 0x10d   : > { %v377_v50 = vadd.f32 %v366_v38, %v1231_v51 }
 0x10f   : > { %v357_v25 = vpop.permute.xlu0 %356  ;;  %v351_v63 = vpop.permute.xlu1 %350 }
 0x110   : > { %v365_v24 = vsel %vm362_vm2, %v357_v25, %v359_v62  ;;  %v363_v0 = vsel %vm362_vm2, %v351_v63, %v353_v57 }
 0x111   : > { %v376_v1 = vadd.f32 %v365_v24, %v327_v22  ;;  %v373_v2 = vadd.f32 %v363_v0, %v324_v56 }
 0x113   : > { %v404_v3 = vpop.permute.xlu0 %403  ;;  %v402_v4 = vpop.permute.xlu1 %401 }
 0x114   : > { %v413_v35 = vsel %vm411_vm3, %v402_v4, %v404_v3  ;;  %v424_v39 = vadd.f32 %v404_v3, %v375_v58 }
 0x115   : > { %v423_v42 = vadd.f32 %v413_v35, %v374_v60 }
 0x117   : > { %v410_v5 = vpop.permute.xlu0 %409  ;;  %v408_v6 = vpop.permute.xlu1 %407 }
 0x118   : > { %v415_v45 = vsel %vm411_vm3, %v408_v6, %v410_v5  ;;  %v427_v16 = vadd.f32 %v410_v5, %v378_v41 }
 0x119   : > { %v426_v55 = vadd.f32 %v415_v45, %v377_v50 }
 0x11b   : > { %v406_v7 = vpop.permute.xlu0 %405  ;;  %v400_v8 = vpop.permute.xlu1 %399 }
 0x11c   : > { %v414_v46 = vsel %vm411_vm3, %v406_v7, %v408_v6  ;;  %v412_v52 = vsel %vm411_vm3, %v400_v8, %v402_v4 }
 0x11d   : > { %v425_v22 = vadd.f32 %v414_v46, %v376_v1  ;;  %v422_v61 = vadd.f32 %v412_v52, %v373_v2 }
 0x11f   : > { %v453_v9 = vpop.permute.xlu0 %452  ;;  %v451_v10 = vpop.permute.xlu1 %450 }
 0x120   : > { %v462_v40 = vsel %vm460_vm4, %v451_v10, %v453_v9  ;;  %v473_v47 = vadd.f32 %v453_v9, %v424_v39 }
 0x121   : > { %v472_v15 = vadd.f32 %v462_v40, %v423_v42 }
 0x123   : > { %v459_v11 = vpop.permute.xlu0 %458  ;;  %v457_v12 = vpop.permute.xlu1 %456 }
 0x124   : > { %v464_v49 = vsel %vm460_vm4, %v457_v12, %v459_v11  ;;  %v476_v58 = vadd.f32 %v459_v11, %v427_v16 }
 0x125   : > { %v475_v62 = vadd.f32 %v464_v49, %v426_v55 }
 0x127   : > { %v455_v13 = vpop.permute.xlu0 %454  ;;  %v449_v14 = vpop.permute.xlu1 %448 }
 0x128   : > { %v463_v25 = vsel %vm460_vm4, %v455_v13, %v457_v12  ;;  %v461_v24 = vsel %vm460_vm4, %v449_v14, %v451_v10 }
 0x129   : > { %v474_v13 = vadd.f32 %v463_v25, %v425_v22  ;;  %v471_v10 = vadd.f32 %v461_v24, %v422_v61  ;;  %v843_v61 = vlaneseq }
 0x12b   : > { %v502_v17 = vpop.permute.xlu0 %501  ;;  %v500_v18 = vpop.permute.xlu1 %499 }
 0x12c   : > { %v511_v48 = vsel %vm509_vm5, %v500_v18, %v502_v17  ;;  %v522_v53 = vadd.f32 %v502_v17, %v473_v47 }
 0x12d   : > { %v521_v56 = vadd.f32 %v511_v48, %v472_v15 }
 0x12f   : > { %v508_v19 = vpop.permute.xlu0 %507  ;;  %v506_v20 = vpop.permute.xlu1 %505 }
 0x130   : > { %v513_v51 = vsel %vm509_vm5, %v506_v20, %v508_v19  ;;  %v525_v0 = vadd.f32 %v508_v19, %v476_v58 }
 0x131   : > { %v524_v4 = vadd.f32 %v513_v51, %v475_v62 }
 0x133   : > { %v504_v23 = vpop.permute.xlu0 %503  ;;  %v498_v26 = vpop.permute.xlu1 %497 }
 0x134   : > { %v512_v5 = vsel %vm509_vm5, %v504_v23, %v506_v20  ;;  %v510_v6 = vsel %vm509_vm5, %v498_v26, %v500_v18 }
 0x135   : > { %v523_v18 = vadd.f32 %v512_v5, %v474_v13  ;;  %v520_v26 = vadd.f32 %v510_v6, %v471_v10 }
 0x137   : > { %v551_v27 = vpop.permute.xlu0 %550  ;;  %v1240_v28 = vpop.permute.xlu1 %548 }
 0x138   : > { %v560_v54 = vsel %vm558_vm6, %v1240_v28, %v551_v27  ;;  %v571_v59 = vadd.f32 %v551_v27, %v522_v53 }
 0x139   : > { %v570_v63 = vadd.f32 %v560_v54, %v521_v56  ;;  %v1044_v56 = vld [vmem:[%s1302_s4] sm:$0xff]  }
 0x13b   : > { %v557_v29 = vpop.permute.xlu0 %556  ;;  %v555_v30 = vpop.permute.xlu1 %554 }
 0x13c   : > { %v562_v1 = vsel %vm558_vm6, %v555_v30, %v557_v29  ;;  %v574_v11 = vadd.f32 %v557_v29, %v525_v0 }
 0x13d   : > { %v573_v14 = vadd.f32 %v562_v1, %v524_v4 }
 0x13f   : > { %v553_v31 = vpop.permute.xlu0 %552  ;;  %v547_v32 = vpop.permute.xlu1 %546 }
 0x140   : > { %v561_v27 = vsel %vm558_vm6, %v553_v31, %v555_v30  ;;  %v559_v20 = vsel %vm558_vm6, %v547_v32, %v1240_v28 }
 0x141   : > { %v572_v30 = vadd.f32 %v561_v27, %v523_v18  ;;  %v569_v31 = vadd.f32 %v559_v20, %v520_v26 }
 0x143   : > { %v600_v33 = vpop.permute.xlu0 %599  ;;  %v1242_v34 = vpop.permute.xlu1 %597 }
 0x144   : > { %v609_v60 = vsel %vm607_vm7, %v1242_v34, %v600_v33  ;;  %v620_v3 = vadd.f32 %v600_v33, %v571_v59 }
 0x145   : > { %v619_v7 = vadd.f32 %v609_v60, %v570_v63  ;;  %v844_v63 = vshrl.u32 %v843_v61, 7 }
 0x147   : > { %v606_v43 = vpop.permute.xlu0 %605  ;;  %v604_v44 = vpop.permute.xlu1 %603  ;;  %v853_v24 = vsub.s32 2, %v844_v63 }
 0x148   : > { %v611_v2 = vsel %vm607_vm7, %v604_v44, %v606_v43  ;;  %v623_v23 = vadd.f32 %v606_v43, %v574_v11 }
 0x149   : > { %v622_v33 = vadd.f32 %v611_v2, %v573_v14  ;;  %v845_v14 = vsub.s32 0, %v844_v63 }
 0x14b   : > { %v602_v21 = vpop.permute.xlu0 %601  ;;  %v596_v57 = vpop.permute.xlu1 %595 }
 0x14c   : > { %v610_v29 = vsel %vm607_vm7, %v602_v21, %v604_v44  ;;  %v608_v39 = vsel %vm607_vm7, %v596_v57, %v1242_v34 }
 0x14d   : > { %v621_v43 = vadd.f32 %v610_v29, %v572_v30  ;;  %v618_v46 = vadd.f32 %v608_v39, %v569_v31 }
 0x14f   : > { %v649_v8 = vpop.permute.xlu0 %648  ;;  %v647_v9 = vpop.permute.xlu1 %646 }
 0x150   : > { %v669_v17 = vadd.f32 %v649_v8, %v620_v3  ;;  %v658_v12 = vsel %vm656_vm8, %v647_v9, %v649_v8 }
 0x151   : > { %v668_v19 = vadd.f32 %v658_v12, %v619_v7 }
 0x152   : > { %v687_v40 = vadd.f32 %v1221_v36, %v669_v17 }
 0x153   : > { %v655_v35 = vpop.permute.xlu0 %654  ;;  %v653_v38 = vpop.permute.xlu1 %652  ;;  %v686_v28 = vadd.f32 %v1221_v36, %v668_v19 }
 0x154   : > { %v672_v41 = vadd.f32 %v655_v35, %v623_v23  ;;  %v660_v42 = vsel %vm656_vm8, %v653_v38, %v655_v35  ;;  %v693_v16 = vmax.f32 %v687_v40, 0.0  ;;  %v849_v23 = vsub.s32 1, %v844_v63 }
 0x155   : > { %v671_v45 = vadd.f32 %v660_v42, %v622_v33  ;;  %v692_v53 = vmax.f32 %v686_v28, 0.0 }
 0x156   : > { %v690_v32 = vadd.f32 %v1223_v37, %v672_v41 }
 0x157   : > { %v651_v44 = vpop.permute.xlu0 %650  ;;  %v645_v47 = vpop.permute.xlu1 %644  ;;  %v689_v48 = vadd.f32 %v1223_v37, %v671_v45 }
 0x158   : > { %v659_v34 = vsel %vm656_vm8, %v651_v44, %v653_v38  ;;  %v657_v50 = vsel %vm656_vm8, %v645_v47, %v647_v9  ;;  %v696_v15 = vmax.f32 %v690_v32, 0.0 }
 0x159   : > { %v670_v52 = vadd.f32 %v659_v34, %v621_v43  ;;  %v667_v49 = vadd.f32 %v657_v50, %v618_v46  ;;  %v695_v54 = vmax.f32 %v689_v48, 0.0 }
 0x15a   : > { %v702_v55 = vpack.c.bf16 %v696_v15, %v693_v16 }
 0x15b   : > { %v701_v22 = vpack.c.bf16 %v695_v54, %v692_v53  ;;  %v685_v21 = vadd.f32 %v1221_v36, %v667_v49  ;;  %v688_v57 = vadd.f32 %v1223_v37, %v670_v52  ;;  %v697_v36 = vld [vmem:[%s1301_s3] sm:$0x7] }
 0x15c   : > { %981 = vmatpush3.bf16.msra.mxu1 %v702_v55  ;;  %v854_v9 = vrot.slane %v697_v36, %v853_v24  ;;  %v846_v42 = vrot.slane %v697_v36, %v845_v14  ;;  %v850_v32 = vrot.slane %v697_v36, %v849_v23 }
 0x15d   : > { %724 = vmatprep.subr.bf16.mxu0 %v701_v22  ;;  %v691_v58 = vmax.f32 %v685_v21, 0.0  ;;  %v694_v51 = vmax.f32 %v688_v57, 0.0 }
 0x15f   : > { %983 = vmatmul.mubr.msk.bf16.vlgmr.msra.gmra.mrb[0].mxu1 %vm720_vm9, %v1044_v56  ;;  %v700_v59 = vpack.c.bf16 %v694_v51, %v691_v58 }
 0x161   : > { %725 = vmatpush1.bf16.msra.mxu0 %v700_v59 }
 0x164   : > { %970 = vmatmul.mubr.msk.bf16.vlgmr.msra.gmra.mrb[0].mxu0 %vm720_vm9, %v1044_v56 }
 0x168   : > { %v708_v60 = vpop.permute.xlu1 %707  ;;  %v713_v25 = vpop.permute.xlu0 %712 }
 0x16c   : > { %v1031_v62 = vpop.permute.xlu1 %1030  ;;  %v1036_v0 = vpop.permute.xlu0 %1035 }
 0x16d   : > { %v1033_v37 = vunpack.i.h.bf16 %v1031_v62  ;;  %v1032_v5 = vunpack.i.l.bf16 %v1031_v62  ;;  %v1038_v7 = vunpack.i.h.bf16 %v1036_v0  ;;  %v1037_v17 = vunpack.i.l.bf16 %v1036_v0 }
 0x16f   : > { %v827_v33 = vsel %vm460_vm4, %v1032_v5, %v1033_v37  ;;  %v829_v45 = vsel %vm460_vm4, %v1037_v17, %v1038_v7 }
 0x170   : > { %v1041_v1 = vpop.permute.xlu1 %1040 }
 0x171   : > { %v1042_v8 = vunpack.i.l.bf16 %v1041_v1  ;;  %v1043_v13 = vunpack.i.h.bf16 %v1041_v1 }
 0x173   : > { %v826_v20 = vsel %vm460_vm4, %v1042_v8, %v1032_v5  ;;  %v828_v40 = vsel %vm460_vm4, %v1043_v13, %v1037_v17 }
 0x232   : > { %v801_v3 = vpop.f32.mrb[0].mxu1 }
 0x233   : > { %v802_v4 = vadd.f32 %v801_v3, %v708_v60  ;;  %v984_v6 = vpop.f32.mrb[1].mxu1 }
 0x234   : > { %v804_v11 = vpop.f32.mrb[2].mxu1 }
 0x235   : > { %v838_v2 = vadd.f32 %v1033_v37, %v802_v4  ;;  %v805_v12 = vadd.f32 %v804_v11, %v713_v25  ;;  %v985_v10 = vpop.f32.mrb[3].mxu1 }
 0x237   : > { %v841_v19 = vadd.f32 %v1038_v7, %v805_v12  ;;  %v758_v27 = vpop.f32.mrb[0].mxu0  ;;  %v860_v29 = vmul.f32 %v854_v9, %v838_v2 }
 0x238   : > { %v759_v18 = vadd.f32 %v758_v27, %v708_v60  ;;  %v760_v26 = vpop.f32.mrb[1].mxu0 }
 0x239   : > { %v863_v35 = vmul.f32 %v854_v9, %v841_v19  ;;  %v761_v38 = vadd.f32 %v760_v26, %v708_v60  ;;  %v762_v39 = vpop.f32.mrb[2].mxu0 }
 0x23a   : > { %v836_v41 = vadd.f32 %v826_v20, %v759_v18  ;;  %v763_v30 = vadd.f32 %v762_v39, %v713_v25  ;;  %v764_v31 = vpop.f32.mrb[3].mxu0 }
 0x23b   : > { %v837_v28 = vadd.f32 %v827_v33, %v761_v38  ;;  %v765_v43 = vadd.f32 %v764_v31, %v713_v25  ;;  %v866_v46 = vpack.c.bf16 %v863_v35, %v860_v29 }
 0x23c   : > { %v839_v44 = vadd.f32 %v828_v40, %v763_v30  ;;  %v858_v48 = vmul.f32 %v846_v42, %v836_v41 }
 0x23d   : > { %v840_v47 = vadd.f32 %v829_v45, %v765_v43  ;;  %874 = vrot.lane.b32.xlu1 %v866_v46, %s1072_s29  ;;  %v859_v50 = vmul.f32 %v850_v32, %v837_v28 }
 0x23e   : > { %v861_v34 = vmul.f32 %v846_v42, %v839_v44 }
 0x23f   : > { %v862_v16 = vmul.f32 %v850_v32, %v840_v47 }
 0x240   : > { %v864_v15 = vpack.c.bf16 %v861_v34, %v858_v48 }
 0x241   : > { %v865_v52 = vpack.c.bf16 %v862_v16, %v859_v50 }
 0x243   : > { %872 = vrot.lane.b32.xlu0 %v865_v52, %s1072_s29 }
 0x247   : > { %870 = vrot.lane.b32.xlu0 %v864_v15, %s1072_s29 }
 0x2af   : > { %v875_v49 = vpop.permute.xlu1 %874 }
 0x2b5   : > { %v873_v53 = vpop.permute.xlu0 %872 }
 0x2b6   : > { %v878_v54 = vsel %vm876_vm10, %v873_v53, %v875_v49 }
 0x2b7   : > { %v885_v55 = vsel %vm883_vm11, %v878_v54, 0 }
 0x2b8   : > { %v973_v22 = vcombine.low %v885_v55, %v885_v55  ;;  %v975_v56 = vcombine.high %v885_v55, %v885_v55 }
 0x2b9   : > { %v871_v21 = vpop.permute.xlu0 %870 }
 0x2ba   : > { %904 = vst.msk [vmem:[%s251_s9 + $0x8] sm:$0xf] %vm903_vm12, %v973_v22  ;;  %906 = vst.msk [vmem:[%s251_s9 + $0x14] sm:$0xf] %vm903_vm12, %v975_v56  ;;  %v877_v57 = vsel %vm876_vm10, %v871_v21, %v873_v53  ;;  %v882_v58 = vsel %vm876_vm10, 0, %v871_v21 }
 0x2bb   : > { %v972_v51 = vcombine.low %v882_v58, %v877_v57  ;;  %v974_v59 = vcombine.high %v882_v58, %v877_v57 }
 0x2bd   : > { %902 = vst [vmem:[%s251_s9] sm:$0xff] %v972_v51  ;;  %905 = vst [vmem:[%s251_s9 + $0xc] sm:$0xff] %v974_v59 }
 0x2be PF: > { %s16_s21 = sadd.s32 1, %s1051_s21  }
 0x2bf   : > { %p13_p4 = scmp.ge.s32.totalorder %s16_s21, 4  }
 0x2c1   :  { %15 = sbr.rel (!%p13_p4) target bundleno = 1 (0x1), region = 74 }

// kernel: mobilenet_v3_forward.9
= control target key start
LH: loop header
LB: loop body
LE: loop exit
PB: predicated region body
PF: predicated region fallthrough
CT: control target
= control target key end

     0   :  { %v352_v1 = vmov 0   ;;  %v353_v3 = vmov 0.0   ;;  %v60_v5 = vlaneseq  ;;  %v354_v8 = vmov 1966171168   ;;  %s447_s0 = inlined_call_operand.vmem [shape: bf16[2,144], index: 0, kind: input, shape index: {}]   ;;  %s448_s1 = inlined_call_operand.vmem [shape: bf16[144,64], index: 1, kind: input, shape index: {}]   ;;  %s449_s2 = inlined_call_operand.vmem [shape: f32[1,64], index: 2, kind: input, shape index: {}]   ;;  %s450_s3 = inlined_call_operand.vmem [shape: bf16[64,10], index: 3, kind: input, shape index: {}]   ;;  %s451_s4 = inlined_call_operand.vmem [shape: f32[1,10], index: 4, kind: input, shape index: {}]   ;;  %s452_s5 = inlined_call_operand.hbm [shape: f32[2,10], index: 5, kind: output, shape index: {}]  }
   0x1   :  { %v315_v0 = vld [vmem:[%s448_s1] sm:$0xff]   ;;  %130 = vmatprep.subr.bf16.mxu0 %v352_v1  ;;  %v316_v2 = vld [vmem:[%s448_s1 + $0x8] sm:$0xff]   ;;  %298 = vmatprep.subr.bf16.mxu1 %v353_v3  ;;  %v317_v4 = vld [vmem:[%s448_s1 + $0x10] sm:$0xff]   ;;  %v58_v9 = vunpack.c.l.s4 %v354_v8 }
   0x2   :  { %131 = vmatpush1.bf16.msra.mxu0 %v315_v0  ;;  %v276_v6 = vld.sshfl [vmem:[%s447_s0] sm:$0x11 pattern:$0x75316420]  ;;  %v318_v7 = vld [vmem:[%s448_s1 + $0x18] sm:$0xff]   ;;  %v61_v10 = vshrl.u32 %v60_v5, 7 }
   0x3   :  { %132 = vmatprep.subr.bf16.mxu0 %v352_v1  ;;  %v56_v11 = vcombine.high %v276_v6, %v276_v6  ;;  %v59_v12 = vunpack.c.0.s8 %v58_v9 }
   0x6   :  { %133 = vmatpush1.bf16.msra.mxu0 %v316_v2 }
   0x7   :  { %134 = vmatprep.subr.bf16.mxu0 %v352_v1 }
   0xa   :  { %135 = vmatpush1.bf16.msra.mxu0 %v317_v4 }
   0xb   :  { %136 = vmatprep.subr.bf16.mxu0 %v352_v1 }
   0xc   :  { %10 = vsyncpa [#allocation3], 0  ;;  %v319_v13 = vld [vmem:[%s448_s1 + $0x20] sm:$0xff]   ;;  %v62_v14 = vsub.s32 %v59_v12, %v61_v10  ;;  %vm126_vm0 = vcmask 130048   ;;  %v320_v16 = vld [vmem:[%s448_s1 + $0x28] sm:$0xff]   ;;  %vm355_vm1 = vmmov 0  }
   0xd   :  { %v321_v17 = vld [vmem:[%s448_s1 + $0x30] sm:$0xff]   ;;  %v322_v18 = vld [vmem:[%s448_s1 + $0x38] sm:$0xff]   ;;  %v323_v19 = vld [vmem:[%s448_s1 + $0x40] sm:$0xff]   ;;  %306 = vmatprep.mubr.msk.bf16.mxu1 %vm355_vm1, %v353_v3  ;;  %vm215_vm2 = vcmask 523264   ;;  %s356_s22 = smov [#allocation2]   ;;  %vm259_vm3 = vcmask 74752  }
   0xe   :  { %137 = vmatpush1.bf16.msra.mxu0 %v318_v7  ;;  %v70_v15 = vrot.slane %v56_v11, %v62_v14  ;;  %v63_v20 = vrot.slane %v276_v6, %v62_v14  ;;  %v324_v21 = vld [vmem:[%s450_s3] sm:$0xff]   ;;  %v325_v22 = vld [vmem:[%s450_s3 + $0x8] sm:$0xff]   ;;  %v326_v23 = vld [vmem:[%s450_s3 + $0x10] sm:$0xff]   ;;  %s267_s23 = sshll.u32 %s356_s22, 4  ;;  %s268_s23 = int_to_ptr.vmem [resolvable:$true] %s267_s23 }
   0xf   :  { %138 = vmatprep.subr.bf16.mxu0 %v352_v1  ;;  %299 = vmatpush3.bf16.msra.mxu1 %v324_v21  ;;  %v327_v24 = vld [vmem:[%s450_s3 + $0x18] sm:$0xff]   ;;  %v275_v25 = vld [vmem:[%s449_s2] ss:$0 sm:$0xff]  ;;  %s328_s2 = scalar_lea.vmem %s268_s23, 32  ;;  %p333_p1 = scmp.lt.s32.totalorder %s268_s23, %s268_s23 }
  0x10   :  { %286 = vmatprep.mubr.msk.bf16.mxu0 %vm126_vm0, %v70_v15  ;;  %300 = vmatprep.subr.bf16.mxu1 %v353_v3  ;;  %v287_v37 = vld [vmem:[%s451_s4] ss:$0 sm:$0xff]  ;;  %p329_p0 = scmp.ne.s32.totalorder %s268_s23, %s328_s2  ;;  %p334_p2 = scmp.lt.s32.totalorder %s328_s2, %s328_s2 }
  0x12   :  { %139 = vmatpush1.bf16.msra.mxu0 %v319_v13  ;;  %p335_p3 = por %p334_p2, %p333_p1 }
  0x13   :  { %140 = vmatprep.subr.bf16.mxu0 %v352_v1  ;;  %301 = vmatpush3.bf16.msra.mxu1 %v325_v22 }
  0x14   :  { %302 = vmatprep.subr.bf16.mxu1 %v353_v3  ;;  %p336_p4 = pnand %p335_p3, %p329_p0 }
  0x16   :  { %141 = vmatpush1.bf16.msra.mxu0 %v320_v16 }
  0x17   :  { %142 = vmatprep.subr.bf16.mxu0 %v352_v1  ;;  %303 = vmatpush3.bf16.msra.mxu1 %v326_v23 }
  0x18   :  { %304 = vmatprep.subr.bf16.mxu1 %v353_v3 }
  0x1a   :  { %143 = vmatpush1.bf16.msra.mxu0 %v321_v17 }
  0x1b   :  { %144 = vmatprep.subr.bf16.mxu0 %v352_v1  ;;  %305 = vmatpush3.bf16.msra.mxu1 %v327_v24 }
  0x1e   :  { %145 = vmatpush1.bf16.msra.mxu0 %v322_v18 }
  0x1f   :  { %146 = vmatprep.subr.bf16.mxu0 %v352_v1 }
  0x22   :  { %147 = vmatpush1.bf16.msra.mxu0 %v323_v19 }
  0x25   :  { %163 = vmatmul.mubr.bf16.vlgmr.msra.gmra.mrb[0].mxu0 %v63_v20 }
  0xf8   :  { %v164_v26 = vpop.f32.mrb[0].mxu0 }
  0xf9   :  { %v165_v27 = vadd.f32 %v275_v25, %v164_v26  ;;  %v166_v28 = vpop.f32.mrb[1].mxu0 }
  0xfa   :  { %v167_v29 = vpop.f32.mrb[2].mxu0 }
  0xfb   :  { %v170_v30 = vadd.f32 3.0, %v165_v27  ;;  %v168_v31 = vpop.f32.mrb[3].mxu0 }
  0xfd   :  { %v171_v32 = vmax.f32 %v170_v30, 0.0 }
  0xff   :  { %v172_v33 = vmin.f32 %v171_v32, 6.0 }
 0x101   :  { %v173_v34 = vmul.f32 %v172_v33, %v165_v27 }
 0x103   :  { %v174_v35 = vmul.f32 0.16666667, %v173_v34 }
 0x105   :  { %v175_v36 = vpack.c.bf16 %v174_v35, %v174_v35 }
 0x107   :  { %307 = vmatmul.mubr.msk.bf16.vlgmr.msra.gmra.mrb[0].mxu1 %vm215_vm2, %v175_v36 }
 0x1da   :  { %v253_v38 = vpop.f32.mrb[0].mxu1 }
 0x1db   :  { %v254_v39 = vadd.f32 %v287_v37, %v253_v38  ;;  %v308_v40 = vpop.f32.mrb[1].mxu1 }
 0x1dc   :  { %v256_v41 = vpop.f32.mrb[2].mxu1 }
 0x1dd   :  { %v309_v42 = vpop.f32.mrb[3].mxu1  ;;  %260 = vst.msk [vmem:[#allocation2] sm:$0x3] %vm259_vm3, %v254_v39 }
 0x1de   :  { %339 = shalt.err (!%p336_p4)
}
 0x1df   :  { %s340_s4 = scalar_lea.hbm %s452_s5, 32 }
 0x1e0   :  { %p341_p5 = scmp.ne.s32.totalorder %s452_s5, %s340_s4  ;;  %p344_p6 = scmp.lt.u32.totalorder %s340_s4, %s452_s5 }
 0x1e2   :  { %p346_p7 = pnand %p344_p6, %p341_p5 }
 0x1e4   :  { %349 = shalt.err (!%p346_p7)
}
 0x1e5   :  { %270 = dma.vmem_to_hbm [thread:$0]  %s268_s23, 32, %s452_s5, [#allocation3]  }
 0x1e6   :  { %350 = dma.done.wait [#allocation3], 32  }
 0x1e7   :  { %351 = vsyncadd [#allocation3], 4294967264 }
 0x1e8   :  { %274 = vsyncpa [#allocation3], 1 }

// kernel: mobilenet_v3_forward.8
= control target key start
LH: loop header
LB: loop body
LE: loop exit
PB: predicated region body
PF: predicated region fallthrough
CT: control target
= control target key end

     0   :  { %s928_s15 = smov 0   ;;  %s1158_s0 = inlined_call_operand.vmem [shape: bf16[2,24,100], index: 0, kind: input, shape index: {}]   ;;  %s1159_s1 = inlined_call_operand.vmem [shape: bf16[144,24], index: 1, kind: input, shape index: {}]   ;;  %s1160_s2 = inlined_call_operand.vmem [shape: f32[144,1], index: 2, kind: input, shape index: {}]   ;;  %s1161_s3 = inlined_call_operand.vmem [shape: f32[1,100], index: 3, kind: input, shape index: {}]   ;;  %s1162_s4 = inlined_call_operand.vmem [shape: f32[2,144,1], index: 4, kind: output, shape index: {}]  }
   0x1 LB: > { %s781_s16 = sadd.s32 4294967295, %s898_s15   ;;  %p785_p0 = scmp.ge.s32.totalorder %s898_s15, 1  ;;  %s898_s15 = sphi %s928_s15, %s14_s15  }
   0x2   : > { %p162_p1 = scmp.lt.s32.totalorder %s898_s15, 3 }
   0x4   : > { %p163_p2 = pnand %p785_p0, %p162_p1 }
   0x5   : > { %p188_p3 = scmp.lt.s32.totalorder (!%p163_p2), %s781_s16, 1  ;;  %v900_v0 = vmov (!%p163_p2), 0.0   ;;  %vm901_vm0 = vmmov (!%p163_p2), 0   ;;  %v902_v1 = vmov (!%p163_p2), 0   ;;  %vm410_vm1 = vcmask (!%p163_p2), 1043456   ;;  %v222_v5 = vld [vmem:[%s1160_s2 + $0x10] sm:$0xff] (!%p163_p2) }
   0x6   : > { %166 = sbr.rel (%p163_p2) target bundleno = 435 (0x1b3), region = 36  ;;  %822 = vmatprep.subr.bf16.mxu0 (!%p163_p2), %v900_v0  ;;  %862 = vmatprep.subr.bf16.mxu1 (!%p163_p2), %v900_v0  ;;  %v883_v6 = vld [vmem:[%s1159_s1] sm:$0xff] (!%p163_p2)   ;;  %v884_v7 = vld [vmem:[%s1159_s1 + $0x28] sm:$0xff] (!%p163_p2)   ;;  %vm382_vm2 = vcmask (!%p163_p2), 195584   ;;  %v223_v9 = vld [vmem:[%s1160_s2 + $0x18] sm:$0xff] (!%p163_p2)  ;;  %vm634_vm3 = vcmask (!%p163_p2), 818176  }
   0x7   : > { %826 = vmatprep.mubr.msk.bf16.mxu0 (!%p163_p2), %vm901_vm0, %v900_v0  ;;  %846 = vmatprep.mubr.msk.bf16.mxu1 (!%p163_p2), %vm901_vm0, %v900_v0  ;;  %v220_v8 = vld [vmem:[%s1160_s2] sm:$0xff] (!%p163_p2)  ;;  %v221_v10 = vld [vmem:[%s1160_s2 + $0x8] sm:$0xff] (!%p163_p2)  ;;  %v886_v14 = vld [vmem:[%s1159_s1 + $0x30] sm:$0xff] (!%p163_p2)   ;;  %vm707_vm4 = vcmask (!%p163_p2), 7168  }
   0x8   : > { %880 = vset.pattern.permute.xlu1 (!%p163_p2), %v902_v1  ;;  %879 = vset.pattern.permute.xlu0 (!%p163_p2), %v902_v1  ;;  %v225_v11 = vld [vmem:[%s1160_s2 + $0x28] sm:$0xff] (!%p163_p2)  ;;  %v224_v12 = vld [vmem:[%s1160_s2 + $0x20] sm:$0xff] (!%p163_p2)  ;;  %v227_v15 = vld [vmem:[%s1160_s2 + $0x38] sm:$0xff] (!%p163_p2) }
   0x9   : > { %250 = vperm.xlu1 (!%p163_p2), %880, %v222_v5   ;;  %240 = vperm.xlu0 (!%p163_p2), %879, %v220_v8   ;;  %v885_v13 = vld [vmem:[%s1159_s1 + $0x8] sm:$0xff] (!%p163_p2)   ;;  %v226_v16 = vld [vmem:[%s1160_s2 + $0x30] sm:$0xff] (!%p163_p2)  ;;  %v228_v18 = vld [vmem:[%s1160_s2 + $0x40] sm:$0xff] (!%p163_p2) }
   0xa   : > { %v229_v17 = vld [vmem:[%s1160_s2 + $0x48] sm:$0xff] (!%p163_p2)  ;;  %v887_v19 = vld [vmem:[%s1159_s1 + $0x10] sm:$0xff] (!%p163_p2)   ;;  %v888_v20 = vld [vmem:[%s1159_s1 + $0x38] sm:$0xff] (!%p163_p2)  }
   0xb   : > { %v231_v21 = vld [vmem:[%s1160_s2 + $0x58] sm:$0xff] (!%p163_p2)  ;;  %v230_v22 = vld [vmem:[%s1160_s2 + $0x50] sm:$0xff] (!%p163_p2)  ;;  %v233_v23 = vld [vmem:[%s1160_s2 + $0x68] sm:$0xff] (!%p163_p2) }
   0xc   : > { %v232_v24 = vld [vmem:[%s1160_s2 + $0x60] sm:$0xff] (!%p163_p2)  ;;  %v889_v25 = vld [vmem:[%s1159_s1 + $0x18] sm:$0xff] (!%p163_p2)   ;;  %v234_v28 = vld [vmem:[%s1160_s2 + $0x70] sm:$0xff] (!%p163_p2) }
   0xd   : > { %s1164_s16 = smov (!%p188_p3, %s781_s16), 1  ;;  %255 = vperm.xlu1 %880, %v223_v9   ;;  %245 = vperm.xlu0 %879, %v221_v10   ;;  %v890_v26 = vld [vmem:[%s1159_s1 + $0x40] sm:$0xff]   ;;  %v235_v27 = vld [vmem:[%s1160_s2 + $0x78] sm:$0xff]  ;;  %v237_v29 = vld [vmem:[%s1160_s2 + $0x88] sm:$0xff] }
   0xe   : > { %s866_s17 = smul.u32 12, %s1164_s16  ;;  %v236_v30 = vld [vmem:[%s1160_s2 + $0x80] sm:$0xff] }
   0xf   : > { %v891_v31 = vld [vmem:[%s1159_s1 + $0x20] sm:$0xff]   ;;  %s867_s29 = smul.u32 144, %s1164_s16 }
  0x10   : > { %s192_s20 = scalar_lea.vmem %s1158_s0, %s866_s17 }
  0x11   : > { %v881_v2 = vld [vmem:[%s192_s20] sm:$0xff]   ;;  %v882_v3 = vld [vmem:[%s192_s20 + $0x8] ss:$0 sps:$4 sm:$0xff]   ;;  %265 = vperm.xlu1 %880, %v225_v11   ;;  %260 = vperm.xlu0 %879, %v224_v12   ;;  %s1117_s6 = scalar_lea.vmem %s1162_s4, %s867_s29 }
  0x12   : > { %823 = vmatpush3.bf16.msra.mxu0 %v881_v2  ;;  %864 = vmatpush3.bf16.msra.mxu1 %v881_v2  ;;  %v412_v4 = vsel %vm410_vm1, %v882_v3, 0 }
  0x13   : > { %824 = vmatprep.subr.bf16.mxu0 %v900_v0  ;;  %863 = vmatprep.subr.bf16.mxu1 %v900_v0 }
  0x15   : > { %275 = vperm.xlu1 %880, %v227_v15   ;;  %270 = vperm.xlu0 %879, %v226_v16   ;;  %v1069_v16 = vld [vmem:[%s1161_s3] ss:$0 sm:$0xff] }
  0x16   : > { %825 = vmatpush3.bf16.msra.mxu0 %v412_v4  ;;  %865 = vmatpush3.bf16.msra.mxu1 %v412_v4 }
  0x19   : > { %827 = vmatmul.mubr.msk.bf16.vlgmr.msra.gmra.mrb[0].mxu0 %vm382_vm2, %v883_v6  ;;  %847 = vmatmul.mubr.msk.bf16.vlgmr.msra.gmra.mrb[0].mxu1 %vm382_vm2, %v884_v7 }
  0x1a   : > { %830 = vmatprep.mubr.msk.bf16.mxu0 %vm901_vm0, %v900_v0  ;;  %850 = vmatprep.mubr.msk.bf16.mxu1 %vm901_vm0, %v900_v0 }
  0x1b   : > { %285 = vperm.xlu1 %880, %v229_v17   ;;  %280 = vperm.xlu0 %879, %v228_v18  }
  0x1f   : > { %295 = vperm.xlu1 %880, %v231_v21   ;;  %290 = vperm.xlu0 %879, %v230_v22  }
  0x21   : > { %831 = vmatmul.mubr.msk.bf16.gmra.mrb[4].mxu0 %vm382_vm2, %v885_v13  ;;  %851 = vmatmul.mubr.msk.bf16.gmra.mrb[4].mxu1 %vm382_vm2, %v886_v14 }
  0x22   : > { %834 = vmatprep.mubr.msk.bf16.mxu0 %vm901_vm0, %v900_v0  ;;  %854 = vmatprep.mubr.msk.bf16.mxu1 %vm901_vm0, %v900_v0 }
  0x23   : > { %305 = vperm.xlu1 %880, %v233_v23   ;;  %300 = vperm.xlu0 %879, %v232_v24  }
  0x27   : > { %315 = vperm.xlu1 %880, %v235_v27   ;;  %310 = vperm.xlu0 %879, %v234_v28  }
  0x29   : > { %835 = vmatmul.mubr.msk.bf16.gmra.mrb[8].mxu0 %vm382_vm2, %v887_v19  ;;  %855 = vmatmul.mubr.msk.bf16.gmra.mrb[8].mxu1 %vm382_vm2, %v888_v20 }
  0x2a   : > { %838 = vmatprep.mubr.msk.bf16.mxu0 %vm901_vm0, %v900_v0  ;;  %858 = vmatprep.mubr.msk.bf16.mxu1 %vm901_vm0, %v900_v0 }
  0x2b   : > { %325 = vperm.xlu1 %880, %v237_v29   ;;  %320 = vperm.xlu0 %879, %v236_v30  }
  0x31   : > { %839 = vmatmul.mubr.msk.bf16.gmra.mrb[12].mxu0 %vm382_vm2, %v889_v25  ;;  %859 = vmatmul.mubr.msk.bf16.gmra.mrb[12].mxu1 %vm382_vm2, %v890_v26 }
  0x32   : > { %842 = vmatprep.mubr.msk.bf16.mxu0 %vm901_vm0, %v900_v0 }
  0x39   : > { %843 = vmatmul.mubr.msk.bf16.gmra.mrb[16].mxu0 %vm382_vm2, %v891_v31 }
  0x88   : > { %v251_v32 = vpop.permute.xlu1 %250  ;;  %v241_v33 = vpop.permute.xlu0 %240 }
  0x8c   : > { %v256_v34 = vpop.permute.xlu1 %255  ;;  %v246_v35 = vpop.permute.xlu0 %245 }
  0x90   : > { %v1054_v36 = vpop.permute.xlu1 %265  ;;  %v1056_v37 = vpop.permute.xlu0 %260 }
  0x94   : > { %v1058_v38 = vpop.permute.xlu1 %275  ;;  %v1060_v39 = vpop.permute.xlu0 %270 }
  0x9a   : > { %v1062_v40 = vpop.permute.xlu1 %285  ;;  %v1064_v41 = vpop.permute.xlu0 %280 }
  0x9e   : > { %v296_v42 = vpop.permute.xlu1 %295  ;;  %v291_v43 = vpop.permute.xlu0 %290 }
  0xa2   : > { %v306_v62 = vpop.permute.xlu1 %305  ;;  %v301_v63 = vpop.permute.xlu0 %300 }
  0xec   : > { %v448_v44 = vpop.f32.mrb[0].mxu0  ;;  %v488_v45 = vpop.f32.mrb[0].mxu1 }
  0xed   : > { %v449_v46 = vadd.f32 %v448_v44, %v241_v33  ;;  %v489_v47 = vadd.f32 %v488_v45, %v291_v43  ;;  %v828_v48 = vpop.f32.mrb[1].mxu0  ;;  %v848_v49 = vpop.f32.mrb[1].mxu1 }
  0xee   : > { %v451_v50 = vpop.f32.mrb[2].mxu0  ;;  %v491_v51 = vpop.f32.mrb[2].mxu1 }
  0xef   : > { %v519_v52 = vadd.f32 3.0, %v449_v46  ;;  %v529_v53 = vadd.f32 3.0, %v489_v47  ;;  %v452_v54 = vadd.f32 %v451_v50, %v246_v35  ;;  %v492_v55 = vadd.f32 %v491_v51, %v296_v42  ;;  %v829_v56 = vpop.f32.mrb[3].mxu0  ;;  %v849_v57 = vpop.f32.mrb[3].mxu1 }
  0xf0   : > { %v316_v42 = vpop.permute.xlu1 %315  ;;  %v311_v43 = vpop.permute.xlu0 %310 }
  0xf1   : > { %v537_v58 = vmax.f32 %v519_v52, 0.0  ;;  %v547_v59 = vmax.f32 %v529_v53, 0.0  ;;  %v520_v60 = vadd.f32 3.0, %v452_v54  ;;  %v530_v61 = vadd.f32 3.0, %v492_v55 }
  0xf3   : > { %v555_v0 = vmin.f32 %v537_v58, 6.0  ;;  %v565_v1 = vmin.f32 %v547_v59, 6.0  ;;  %v538_v2 = vmax.f32 %v520_v60, 0.0  ;;  %v548_v3 = vmax.f32 %v530_v61, 0.0 }
  0xf4   : > { %v456_v4 = vpop.f32.mrb[4].mxu0  ;;  %v496_v5 = vpop.f32.mrb[4].mxu1 }
  0xf5   : > { %v573_v6 = vmul.f32 %v555_v0, %v449_v46  ;;  %v583_v7 = vmul.f32 %v565_v1, %v489_v47  ;;  %v556_v8 = vmin.f32 %v538_v2, 6.0  ;;  %v566_v9 = vmin.f32 %v548_v3, 6.0  ;;  %v832_v10 = vpop.f32.mrb[5].mxu0  ;;  %v852_v11 = vpop.f32.mrb[5].mxu1 }
  0xf6   : > { %v457_v12 = vadd.f32 %v456_v4, %v251_v32  ;;  %v497_v13 = vadd.f32 %v496_v5, %v301_v63  ;;  %v459_v14 = vpop.f32.mrb[6].mxu0  ;;  %v499_v15 = vpop.f32.mrb[6].mxu1 }
  0xf7   : > { %v591_v17 = vmul.f32 0.16666667, %v573_v6  ;;  %v601_v18 = vmul.f32 0.16666667, %v583_v7  ;;  %v574_v19 = vmul.f32 %v556_v8, %v452_v54  ;;  %v584_v20 = vmul.f32 %v566_v9, %v492_v55  ;;  %v833_v21 = vpop.f32.mrb[7].mxu0  ;;  %v853_v22 = vpop.f32.mrb[7].mxu1 }
  0xf8   : > { %v521_v23 = vadd.f32 3.0, %v457_v12  ;;  %v531_v24 = vadd.f32 3.0, %v497_v13  ;;  %v460_v25 = vadd.f32 %v459_v14, %v256_v34  ;;  %v500_v26 = vadd.f32 %v499_v15, %v306_v62 }
  0xf9   : > { %v592_v27 = vmul.f32 0.16666667, %v574_v19  ;;  %v602_v28 = vmul.f32 0.16666667, %v584_v20  ;;  %v626_v29 = vmul.f32 %v1069_v16, %v601_v18  ;;  %v616_v30 = vmul.f32 %v1069_v16, %v591_v17  ;;  %v321_v19 = vpop.permute.xlu0 %320 }
  0xfa   : > { %v539_v31 = vmax.f32 %v521_v23, 0.0  ;;  %v549_v32 = vmax.f32 %v531_v24, 0.0  ;;  %v522_v33 = vadd.f32 3.0, %v460_v25  ;;  %v532_v35 = vadd.f32 3.0, %v500_v26 }
  0xfb   : > { %v665_v44 = vsel %vm634_vm3, %v626_v29, 0.0  ;;  %v635_v45 = vsel %vm634_vm3, %v616_v30, 0.0  ;;  %v627_v46 = vmul.f32 %v1069_v16, %v602_v28  ;;  %v617_v34 = vmul.f32 %v1069_v16, %v592_v27 }
  0xfc   : > { %v557_v47 = vmin.f32 %v539_v31, 6.0  ;;  %v567_v48 = vmin.f32 %v549_v32, 6.0  ;;  %v540_v49 = vmax.f32 %v522_v33, 0.0  ;;  %v550_v50 = vmax.f32 %v532_v35, 0.0  ;;  %666 = vadd.xlane.f32.xlu1 %v665_v44  ;;  %v504_v51 = vpop.f32.mrb[8].mxu1  ;;  %636 = vadd.xlane.f32.xlu0 %v635_v45  ;;  %v464_v52 = vpop.f32.mrb[8].mxu0 }
  0xfd   : > { %v505_v53 = vadd.f32 %v504_v51, %v311_v43  ;;  %v465_v54 = vadd.f32 %v464_v52, %v1056_v37  ;;  %v836_v55 = vpop.f32.mrb[9].mxu0  ;;  %v856_v56 = vpop.f32.mrb[9].mxu1  ;;  %v668_v57 = vsel %vm634_vm3, %v627_v46, 0.0  ;;  %v638_v58 = vsel %vm634_vm3, %v617_v34, 0.0 }
  0xfe   : > { %v575_v59 = vmul.f32 %v557_v47, %v457_v12  ;;  %v585_v60 = vmul.f32 %v567_v48, %v497_v13  ;;  %v558_v61 = vmin.f32 %v540_v49, 6.0  ;;  %v568_v62 = vmin.f32 %v550_v50, 6.0  ;;  %v467_v63 = vpop.f32.mrb[10].mxu0  ;;  %v507_v0 = vpop.f32.mrb[10].mxu1 }
  0xff   : > { %v533_v1 = vadd.f32 3.0, %v505_v53  ;;  %v523_v2 = vadd.f32 3.0, %v465_v54  ;;  %v468_v3 = vadd.f32 %v467_v63, %v1054_v36  ;;  %v508_v4 = vadd.f32 %v507_v0, %v316_v42  ;;  %v837_v5 = vpop.f32.mrb[11].mxu0  ;;  %v857_v6 = vpop.f32.mrb[11].mxu1 }
 0x100   : > { %v593_v37 = vmul.f32 0.16666667, %v575_v59  ;;  %v603_v7 = vmul.f32 0.16666667, %v585_v60  ;;  %v576_v8 = vmul.f32 %v558_v61, %v460_v25  ;;  %v586_v9 = vmul.f32 %v568_v62, %v500_v26  ;;  %669 = vadd.xlane.f32.xlu0 %v668_v57  ;;  %639 = vadd.xlane.f32.xlu1 %v638_v58  ;;  %v326_v36 = vpop.permute.xlu1 %325 }
 0x101   : > { %v551_v10 = vmax.f32 %v533_v1, 0.0  ;;  %v541_v11 = vmax.f32 %v523_v2, 0.0  ;;  %v524_v12 = vadd.f32 3.0, %v468_v3  ;;  %v534_v13 = vadd.f32 3.0, %v508_v4 }
 0x102   : > { %v594_v14 = vmul.f32 0.16666667, %v576_v8  ;;  %v604_v15 = vmul.f32 0.16666667, %v586_v9  ;;  %v628_v17 = vmul.f32 %v1069_v16, %v603_v7  ;;  %v618_v18 = vmul.f32 %v1069_v16, %v593_v37 }
 0x103   : > { %v569_v20 = vmin.f32 %v551_v10, 6.0  ;;  %v559_v21 = vmin.f32 %v541_v11, 6.0  ;;  %v542_v22 = vmax.f32 %v524_v12, 0.0  ;;  %v552_v23 = vmax.f32 %v534_v13, 0.0 }
 0x104   : > { %v512_v24 = vpop.f32.mrb[12].mxu1  ;;  %v671_v25 = vsel %vm634_vm3, %v628_v17, 0.0  ;;  %v641_v26 = vsel %vm634_vm3, %v618_v18, 0.0  ;;  %v472_v27 = vpop.f32.mrb[12].mxu0  ;;  %v619_v28 = vmul.f32 %v1069_v16, %v594_v14  ;;  %v629_v34 = vmul.f32 %v1069_v16, %v604_v15 }
 0x105   : > { %v587_v29 = vmul.f32 %v569_v20, %v505_v53  ;;  %v577_v30 = vmul.f32 %v559_v21, %v465_v54  ;;  %v560_v31 = vmin.f32 %v542_v22, 6.0  ;;  %v570_v32 = vmin.f32 %v552_v23, 6.0  ;;  %672 = vadd.xlane.f32.xlu1 %v671_v25  ;;  %642 = vadd.xlane.f32.xlu0 %v641_v26  ;;  %v840_v33 = vpop.f32.mrb[13].mxu0  ;;  %v860_v35 = vpop.f32.mrb[13].mxu1 }
 0x106   : > { %v513_v42 = vadd.f32 %v512_v24, %v321_v19  ;;  %v473_v43 = vadd.f32 %v472_v27, %v1060_v39  ;;  %v475_v44 = vpop.f32.mrb[14].mxu0  ;;  %v515_v45 = vpop.f32.mrb[14].mxu1  ;;  %v644_v46 = vsel %vm634_vm3, %v619_v28, 0.0  ;;  %v674_v62 = vsel %vm634_vm3, %v629_v34, 0.0 }
 0x107   : > { %v605_v47 = vmul.f32 0.16666667, %v587_v29  ;;  %v595_v48 = vmul.f32 0.16666667, %v577_v30  ;;  %v578_v49 = vmul.f32 %v560_v31, %v468_v3  ;;  %v588_v50 = vmul.f32 %v570_v32, %v508_v4  ;;  %v841_v51 = vpop.f32.mrb[15].mxu0  ;;  %v861_v52 = vpop.f32.mrb[15].mxu1 }
 0x108   : > { %v535_v53 = vadd.f32 3.0, %v513_v42  ;;  %v525_v54 = vadd.f32 3.0, %v473_v43  ;;  %v476_v55 = vadd.f32 %v475_v44, %v1058_v38  ;;  %v516_v56 = vadd.f32 %v515_v45, %v326_v36 }
 0x109   : > { %v596_v57 = vmul.f32 0.16666667, %v578_v49  ;;  %645 = vadd.xlane.f32.xlu0 %v644_v46  ;;  %v620_v39 = vmul.f32 %v1069_v16, %v595_v48  ;;  %v630_v0 = vmul.f32 %v1069_v16, %v605_v47  ;;  %v606_v1 = vmul.f32 0.16666667, %v588_v50 }
 0x10a   : > { %v543_v58 = vmax.f32 %v525_v54, 0.0  ;;  %v526_v59 = vadd.f32 3.0, %v476_v55  ;;  %v536_v60 = vadd.f32 3.0, %v516_v56  ;;  %v553_v61 = vmax.f32 %v535_v53, 0.0 }
 0x10b   : > { %v647_v63 = vsel %vm634_vm3, %v620_v39, 0.0  ;;  %v621_v4 = vmul.f32 %v1069_v16, %v596_v57  ;;  %v677_v14 = vsel %vm634_vm3, %v630_v0, 0.0  ;;  %v631_v36 = vmul.f32 %v1069_v16, %v606_v1 }
 0x10c   : > { %v561_v2 = vmin.f32 %v543_v58, 6.0  ;;  %v544_v3 = vmax.f32 %v526_v59, 0.0  ;;  %648 = vadd.xlane.f32.xlu1 %v647_v63  ;;  %v480_v38 = vpop.f32.mrb[16].mxu0  ;;  %v554_v5 = vmax.f32 %v536_v60, 0.0  ;;  %v571_v10 = vmin.f32 %v553_v61, 6.0 }
 0x10d   : > { %675 = vadd.xlane.f32.xlu0 %v674_v62  ;;  %v481_v6 = vadd.f32 %v480_v38, %v1064_v41  ;;  %v844_v37 = vpop.f32.mrb[17].mxu0  ;;  %v650_v18 = vsel %vm634_vm3, %v621_v4, 0.0  ;;  %v680_v25 = vsel %vm634_vm3, %v631_v36, 0.0 }
 0x10e   : > { %v579_v7 = vmul.f32 %v561_v2, %v473_v43  ;;  %v562_v8 = vmin.f32 %v544_v3, 6.0  ;;  %v483_v9 = vpop.f32.mrb[18].mxu0  ;;  %v572_v19 = vmin.f32 %v554_v5, 6.0  ;;  %v589_v23 = vmul.f32 %v571_v10, %v513_v42 }
 0x10f   : > { %v527_v11 = vadd.f32 3.0, %v481_v6  ;;  %v484_v12 = vadd.f32 %v483_v9, %v1062_v40  ;;  %v845_v13 = vpop.f32.mrb[19].mxu0 }
 0x110   : > { %v597_v15 = vmul.f32 0.16666667, %v579_v7  ;;  %v580_v17 = vmul.f32 %v562_v8, %v476_v55  ;;  %678 = vadd.xlane.f32.xlu1 %v677_v14  ;;  %v590_v28 = vmul.f32 %v572_v19, %v516_v56  ;;  %v607_v31 = vmul.f32 0.16666667, %v589_v23 }
 0x111   : > { %v545_v41 = vmax.f32 %v527_v11, 0.0  ;;  %v528_v20 = vadd.f32 3.0, %v484_v12  ;;  %651 = vadd.xlane.f32.xlu0 %v650_v18 }
 0x112   : > { %v598_v21 = vmul.f32 0.16666667, %v580_v17  ;;  %v622_v22 = vmul.f32 %v1069_v16, %v597_v15  ;;  %v608_v42 = vmul.f32 0.16666667, %v590_v28  ;;  %v632_v34 = vmul.f32 %v1069_v16, %v607_v31 }
 0x113   : > { %v563_v24 = vmin.f32 %v545_v41, 6.0  ;;  %v546_v40 = vmax.f32 %v528_v20, 0.0 }
 0x114   : > { %v653_v26 = vsel %vm634_vm3, %v622_v22, 0.0  ;;  %v623_v27 = vmul.f32 %v1069_v16, %v598_v21  ;;  %v633_v48 = vmul.f32 %v1069_v16, %v608_v42  ;;  %v683_v49 = vsel %vm634_vm3, %v632_v34, 0.0 }
 0x115   : > { %v581_v29 = vmul.f32 %v563_v24, %v481_v6  ;;  %v564_v30 = vmin.f32 %v546_v40, 6.0  ;;  %681 = vadd.xlane.f32.xlu0 %v680_v25  ;;  %654 = vadd.xlane.f32.xlu1 %v653_v26 }
 0x116   : > { %v656_v35 = vsel %vm634_vm3, %v623_v27, 0.0  ;;  %v686_v50 = vsel %vm634_vm3, %v633_v48, 0.0 }
 0x117   : > { %v599_v32 = vmul.f32 0.16666667, %v581_v29  ;;  %v582_v33 = vmul.f32 %v564_v30, %v484_v12 }
 0x119   : > { %v600_v43 = vmul.f32 0.16666667, %v582_v33  ;;  %657 = vadd.xlane.f32.xlu0 %v656_v35  ;;  %v624_v44 = vmul.f32 %v1069_v16, %v599_v32 }
 0x11b   : > { %v659_v45 = vsel %vm634_vm3, %v624_v44, 0.0  ;;  %v625_v46 = vmul.f32 %v1069_v16, %v600_v43 }
 0x11c   : > { %660 = vadd.xlane.f32.xlu1 %v659_v45 }
 0x11d   : > { %v662_v47 = vsel %vm634_vm3, %v625_v46, 0.0 }
 0x11e   : > { %663 = vadd.xlane.f32.xlu0 %v662_v47 }
 0x120   : > { %684 = vadd.xlane.f32.xlu1 %v683_v49 }
 0x122   : > { %687 = vadd.xlane.f32.xlu0 %v686_v50 }
 0x189   : > { %v667_v51 = vpop.xlane.xlu1 %666  ;;  %v637_v16 = vpop.xlane.xlu0 %636 }
 0x18a   : > { %v699_v52 = vmul.f32 0.015625, %v667_v51  ;;  %v689_v53 = vmul.f32 0.015625, %v637_v16 }
 0x18c   : > { %718 = vst.msk [vmem:[%s1117_s6 + $0x50] sm:$0xff] %vm707_vm4, %v699_v52  ;;  %708 = vst.msk [vmem:[%s1117_s6] sm:$0xff] %vm707_vm4, %v689_v53 }
 0x18d   : > { %v670_v54 = vpop.xlane.xlu0 %669  ;;  %v640_v55 = vpop.xlane.xlu1 %639 }
 0x18e   : > { %v700_v56 = vmul.f32 0.015625, %v670_v54  ;;  %v690_v57 = vmul.f32 0.015625, %v640_v55 }
 0x190   : > { %719 = vst.msk [vmem:[%s1117_s6 + $0x58] sm:$0xff] %vm707_vm4, %v700_v56  ;;  %709 = vst.msk [vmem:[%s1117_s6 + $0x8] sm:$0xff] %vm707_vm4, %v690_v57 }
 0x192   : > { %v673_v39 = vpop.xlane.xlu1 %672  ;;  %v643_v58 = vpop.xlane.xlu0 %642 }
 0x193   : > { %v701_v59 = vmul.f32 0.015625, %v673_v39  ;;  %v691_v60 = vmul.f32 0.015625, %v643_v58 }
 0x195   : > { %720 = vst.msk [vmem:[%s1117_s6 + $0x60] sm:$0xff] %vm707_vm4, %v701_v59  ;;  %710 = vst.msk [vmem:[%s1117_s6 + $0x10] sm:$0xff] %vm707_vm4, %v691_v60 }
 0x196   : > { %v646_v61 = vpop.xlane.xlu0 %645 }
 0x197   : > { %v692_v62 = vmul.f32 0.015625, %v646_v61 }
 0x199   : > { %711 = vst.msk [vmem:[%s1117_s6 + $0x18] sm:$0xff] %vm707_vm4, %v692_v62  ;;  %v649_v63 = vpop.xlane.xlu1 %648 }
 0x19a   : > { %v676_v0 = vpop.xlane.xlu0 %675  ;;  %v693_v1 = vmul.f32 0.015625, %v649_v63 }
 0x19b   : > { %v702_v2 = vmul.f32 0.015625, %v676_v0 }
 0x19c   : > { %712 = vst.msk [vmem:[%s1117_s6 + $0x20] sm:$0xff] %vm707_vm4, %v693_v1 }
 0x19d   : > { %721 = vst.msk [vmem:[%s1117_s6 + $0x68] sm:$0xff] %vm707_vm4, %v702_v2  ;;  %v679_v3 = vpop.xlane.xlu1 %678 }
 0x19e   : > { %v703_v38 = vmul.f32 0.015625, %v679_v3  ;;  %v652_v4 = vpop.xlane.xlu0 %651 }
 0x19f   : > { %v694_v5 = vmul.f32 0.015625, %v652_v4 }
 0x1a0   : > { %722 = vst.msk [vmem:[%s1117_s6 + $0x70] sm:$0xff] %vm707_vm4, %v703_v38 }
 0x1a1   : > { %713 = vst.msk [vmem:[%s1117_s6 + $0x28] sm:$0xff] %vm707_vm4, %v694_v5 }
 0x1a2   : > { %v682_v6 = vpop.xlane.xlu0 %681  ;;  %v655_v37 = vpop.xlane.xlu1 %654 }
 0x1a3   : > { %v704_v7 = vmul.f32 0.015625, %v682_v6  ;;  %v695_v8 = vmul.f32 0.015625, %v655_v37 }
 0x1a5   : > { %723 = vst.msk [vmem:[%s1117_s6 + $0x78] sm:$0xff] %vm707_vm4, %v704_v7  ;;  %714 = vst.msk [vmem:[%s1117_s6 + $0x30] sm:$0xff] %vm707_vm4, %v695_v8 }
 0x1a6   : > { %v658_v9 = vpop.xlane.xlu0 %657 }
 0x1a7   : > { %v696_v10 = vmul.f32 0.015625, %v658_v9 }
 0x1a9   : > { %715 = vst.msk [vmem:[%s1117_s6 + $0x38] sm:$0xff] %vm707_vm4, %v696_v10  ;;  %v661_v11 = vpop.xlane.xlu1 %660 }
 0x1aa   : > { %v697_v12 = vmul.f32 0.015625, %v661_v11 }
 0x1ab   : > { %v664_v13 = vpop.xlane.xlu0 %663 }
 0x1ac   : > { %716 = vst.msk [vmem:[%s1117_s6 + $0x40] sm:$0xff] %vm707_vm4, %v697_v12  ;;  %v698_v14 = vmul.f32 0.015625, %v664_v13 }
 0x1ad   : > { %v685_v15 = vpop.xlane.xlu1 %684 }
 0x1ae   : > { %717 = vst.msk [vmem:[%s1117_s6 + $0x48] sm:$0xff] %vm707_vm4, %v698_v14  ;;  %v705_v17 = vmul.f32 0.015625, %v685_v15 }
 0x1af   : > { %v688_v18 = vpop.xlane.xlu0 %687 }
 0x1b0   : > { %724 = vst.msk [vmem:[%s1117_s6 + $0x80] sm:$0xff] %vm707_vm4, %v705_v17  ;;  %v706_v36 = vmul.f32 0.015625, %v688_v18 }
 0x1b2   : > { %725 = vst.msk [vmem:[%s1117_s6 + $0x88] sm:$0xff] %vm707_vm4, %v706_v36 }
 0x1b3 PF: > { %s14_s15 = sadd.s32 1, %s898_s15  }
 0x1b4   : > { %p11_p4 = scmp.ge.s32.totalorder %s14_s15, 4  }
 0x1b6   :  { %13 = sbr.rel (!%p11_p4) target bundleno = 1 (0x1), region = 66 }

// kernel: mobilenet_v3_forward.7
= control target key start
LH: loop header
LB: loop body
LE: loop exit
PB: predicated region body
PF: predicated region fallthrough
CT: control target
= control target key end

     0   :  { %s1685_s25 = smov 0   ;;  %s2194_s0 = inlined_call_operand.vmem [shape: bf16[2,16,360], index: 0, kind: input, shape index: {}]   ;;  %s2195_s1 = inlined_call_operand.vmem [shape: f32[1,360], index: 1, kind: input, shape index: {}]   ;;  %s2196_s2 = inlined_call_operand.vmem [shape: bf16[32,16], index: 2, kind: input, shape index: {}]   ;;  %s2197_s3 = inlined_call_operand.vmem [shape: f32[32,1], index: 3, kind: input, shape index: {}]   ;;  %s2198_s4 = inlined_call_operand.vmem [shape: f32[32,9], index: 4, kind: input, shape index: {}]   ;;  %s2199_s5 = inlined_call_operand.vmem [shape: f32[32,1], index: 5, kind: input, shape index: {}]   ;;  %s2200_s6 = inlined_call_operand.vmem [shape: f32[1,78], index: 6, kind: input, shape index: {}]   ;;  %s2201_s7 = inlined_call_operand.vmem [shape: f32[32,8], index: 7, kind: input, shape index: {}]   ;;  %s2202_s8 = inlined_call_operand.vmem [shape: f32[1,8], index: 8, kind: input, shape index: {}]   ;;  %s2203_s9 = inlined_call_operand.vmem [shape: f32[32,8], index: 9, kind: input, shape index: {}]   ;;  %s2204_s10 = inlined_call_operand.vmem [shape: f32[32,1], index: 10, kind: input, shape index: {}]   ;;  %s2205_s11 = inlined_call_operand.vmem [shape: bf16[24,32], index: 11, kind: input, shape index: {}]   ;;  %s2206_s12 = inlined_call_operand.vmem [shape: f32[24,1], index: 12, kind: input, shape index: {}]   ;;  %s2207_s13 = inlined_call_operand.vmem [shape: bf16[2,24,100], index: 13, kind: output, shape index: {}]  }
   0x1 LB: > { %s1479_s26 = sadd.s32 4294967295, %s1595_s25   ;;  %p1483_p0 = scmp.ge.s32.totalorder %s1595_s25, 1  ;;  %s1595_s25 = sphi %s1685_s25, %s23_s25  }
   0x2   : > { %p387_p1 = scmp.lt.s32.totalorder %s1595_s25, 3 }
   0x4   : > { %p388_p2 = pnand %p1483_p0, %p387_p1 }
   0x6   : > { %391 = sbr.rel (%p388_p2) target bundleno = 1284 (0x504), region = 72 }
   0xd   : > { %v452_v0 = vld [vmem:[%s2197_s3 + $0x10] sm:$0xff]  ;;  %p431_p3 = scmp.lt.s32.totalorder %s1479_s26, 1  ;;  %v1597_v1 = vmov 0   ;;  %v1585_v2 = vld [vmem:[%s2196_s2] sm:$0xff]   ;;  %vm500_vm0 = vcmask 130048   ;;  %v453_v3 = vld [vmem:[%s2197_s3 + $0x18] sm:$0xff]  ;;  %v671_v58 = vlaneseq }
   0xe   : > { %1554 = vset.pattern.permute.xlu1 %v1597_v1  ;;  %539 = vmatprep.mubr.bf16.mxu0 %v1597_v1  ;;  %v1598_v4 = vmov 1   ;;  %v1710_v5 = vld [vmem:[%s2198_s4] sm:$0xff]  ;;  %v1599_v8 = vmov 2   ;;  %v1720_v10 = vld [vmem:[%s2198_s4 + $0x8] sm:$0xff]  ;;  %v1730_v12 = vld [vmem:[%s2198_s4 + $0x10] sm:$0xff]  ;;  %v1600_v13 = vmov 3  }
   0xf   : > { %466 = vperm.xlu1 %1554, %v452_v0   ;;  %s2223_s26 = smov (!%p431_p3, %s1479_s26), 1  ;;  %1514 = vmatprep.mubr.msk.bf16.mxu1 %vm500_vm0, %v1585_v2  ;;  %v1586_v11 = vld [vmem:[%s2196_s2 + $0x8] sm:$0xff]   ;;  %v701_v14 = vld [vmem:[%s2198_s4 + $0x18] sm:$0xff]  ;;  %v1601_v15 = vmov 4   ;;  %v1602_v16 = vmov 5   ;;  %v1603_v17 = vmov 6  }
  0x10   : > { %1555 = vset.pattern.permute.xlu0 %v1598_v4  ;;  %s1526_s18 = smul.u32 24, %s2223_s26  ;;  %v1604_v18 = vmov 7   ;;  %v1605_v19 = vmov 8   ;;  %v450_v20 = vld [vmem:[%s2197_s3] sm:$0xff]  ;;  %v451_v21 = vld [vmem:[%s2197_s3 + $0x8] sm:$0xff]  ;;  %v1132_v24 = vld [vmem:[%s2199_s5 + $0x10] sm:$0xff] }
  0x11   : > { %727 = vperm.xlu0 %1555, %v1710_v5   ;;  %v1130_v22 = vld [vmem:[%s2199_s5] sm:$0xff]  ;;  %v1131_v23 = vld [vmem:[%s2199_s5 + $0x8] sm:$0xff]  ;;  %v1133_v25 = vld [vmem:[%s2199_s5 + $0x18] sm:$0xff]  ;;  %s1606_s14 = smov 38   ;;  %s1607_s15 = smov 127   ;;  %vm774_vm1 = vcmask 310272  }
  0x12   : > { %s435_s21 = scalar_lea.vmem %s2194_s0, %s1526_s18  ;;  %s1608_s16 = smov 76   ;;  %vm875_vm2 = vcmask 621568   ;;  %vm976_vm3 = vcmask 613376   ;;  %vm1077_vm4 = vcmask 228352   ;;  %vm1189_vm5 = vcmask 637952  }
  0x13   : > { %471 = vperm.xlu1 %1554, %v453_v3   ;;  %v1581_v6 = vld [vmem:[%s435_s21 + $0x4] ss:$12 sps:$4 sm:$0xff]   ;;  %v1583_v7 = vld [vmem:[%s435_s21 + $0x8] ss:$12 sps:$4 sm:$0xff]   ;;  %v1584_v9 = vld [vmem:[%s435_s21] ss:$12 sps:$4 sm:$0xff]  }
  0x14   : > { %507 = vmatprep.subr.bf16.mxu0 %v1581_v6  ;;  %1512 = vmatprep.subr.bf16.mxu1 %v1583_v7  ;;  %v1850_v3 = vshrl.u32 %v671_v58, 7  ;;  %s1609_s17 = smov 75   ;;  %s1610_s18 = smov 114   ;;  %vm1214_vm6 = vcmask 64512   ;;  %vm1334_vm7 = vcmask 261120   ;;  %vm1400_vm8 = vcmask 89088  }
  0x15   : > { %1557 = vset.pattern.permute.xlu0 %v1599_v8  ;;  %508 = vmatpush1.bf16.msra.mxu0 %v1584_v9  ;;  %s1611_s19 = smov 28   ;;  %s1612_s20 = smov 118   ;;  %vm1406_vm9 = vcmask 728064   ;;  %vm1420_vm10 = vcmask 814080  }
  0x16   : > { %788 = vperm.xlu0 %1557, %v1710_v5   ;;  %1513 = vmatpush3.bf16.msra.mxu1 %v1583_v7  ;;  %2213 = vst [vmem:[#allocation5_spill] sm:$0xff] %v1850_v3  ;;  %s1613_s21 = smov 117  }
  0x17   : > { %1556 = vset.pattern.permute.xlu1 %v1598_v4 }
  0x18   : > { %731 = vperm.xlu1 %1556, %v1720_v10   ;;  %1491 = vmatmul.mubr.msk.bf16.vlgmr.msra.gmra.mrb[0].mxu0 %vm500_vm0, %v1585_v2 }
  0x19   : > { %1515 = vmatmul.mubr.msk.bf16.vlgmr.msra.gmra.mrb[0].mxu1 %vm500_vm0, %v1586_v11  ;;  %549 = vmatprep.mubr.bf16.mxu0 %v1597_v1 }
  0x1a   : > { %1560 = vset.pattern.permute.xlu0 %v1600_v13 }
  0x1b   : > { %828 = vperm.xlu0 %1560, %v1710_v5  }
  0x1c   : > { %735 = vperm.xlu1 %1556, %v1730_v12  }
  0x1f   : > { %836 = vperm.xlu0 %1560, %v1730_v12  }
  0x20   : > { %1558 = vset.pattern.permute.xlu1 %v1599_v8  ;;  %1492 = vmatmul.mubr.msk.bf16.gmra.mrb[4].mxu0 %vm500_vm0, %v1586_v11 }
  0x21   : > { %792 = vperm.xlu1 %1558, %v1720_v10  }
  0x23   : > { %1563 = vset.pattern.permute.xlu0 %v1601_v15 }
  0x24   : > { %889 = vperm.xlu0 %1563, %v1710_v5  }
  0x25   : > { %1559 = vset.pattern.permute.xlu1 %v1598_v4 }
  0x26   : > { %739 = vperm.xlu1 %1559, %v701_v14  }
  0x28   : > { %1566 = vset.pattern.permute.xlu0 %v1602_v16 }
  0x29   : > { %929 = vperm.xlu0 %1566, %v1710_v5  }
  0x2a   : > { %1561 = vset.pattern.permute.xlu1 %v1600_v13 }
  0x2b   : > { %832 = vperm.xlu1 %1561, %v1720_v10  }
  0x2d   : > { %937 = vperm.xlu0 %1566, %v1730_v12  }
  0x2f   : > { %1562 = vset.pattern.permute.xlu1 %v1599_v8 }
  0x30   : > { %796 = vperm.xlu1 %1562, %v1730_v12  }
  0x31   : > { %1569 = vset.pattern.permute.xlu0 %v1603_v17 }
  0x32   : > { %990 = vperm.xlu0 %1569, %v1710_v5  }
  0x34   : > { %800 = vperm.xlu1 %1562, %v701_v14  }
  0x36   : > { %1572 = vset.pattern.permute.xlu0 %v1604_v18 }
  0x37   : > { %1030 = vperm.xlu0 %1572, %v1710_v5  }
  0x38   : > { %1564 = vset.pattern.permute.xlu1 %v1601_v15 }
  0x39   : > { %893 = vperm.xlu1 %1564, %v1720_v10  }
  0x3b   : > { %1038 = vperm.xlu0 %1572, %v1730_v12  }
  0x3d   : > { %1565 = vset.pattern.permute.xlu1 %v1600_v13 }
  0x3e   : > { %840 = vperm.xlu1 %1565, %v701_v14  }
  0x3f   : > { %1575 = vset.pattern.permute.xlu0 %v1605_v19 }
  0x40   : > { %1091 = vperm.xlu0 %1575, %v1710_v5  }
  0x42   : > { %1567 = vset.pattern.permute.xlu1 %v1602_v16 }
  0x43   : > { %933 = vperm.xlu1 %1567, %v1720_v10  }
  0x44   : > { %1099 = vperm.xlu0 %1575, %v1730_v12  }
  0x47   : > { %1568 = vset.pattern.permute.xlu1 %v1601_v15 }
  0x48   : > { %897 = vperm.xlu1 %1568, %v1730_v12   ;;  %1578 = vset.pattern.permute.xlu0 %v1597_v1 }
  0x49   : > { %456 = vperm.xlu0 %1578, %v450_v20  }
  0x4c   : > { %901 = vperm.xlu1 %1568, %v701_v14  }
  0x4d   : > { %461 = vperm.xlu0 %1578, %v451_v21   ;;  %v677_v21 = vsub.s32 1, %v1850_v3 }
  0x50   : > { %1570 = vset.pattern.permute.xlu1 %v1603_v17 }
  0x51   : > { %994 = vperm.xlu1 %1570, %v1720_v10   ;;  %704 = vperm.xlu0 %1578, %v1710_v5  }
  0x55   : > { %1571 = vset.pattern.permute.xlu1 %v1602_v16  ;;  %719 = vperm.xlu0 %1578, %v701_v14  }
  0x56   : > { %941 = vperm.xlu1 %1571, %v701_v14  }
  0x59   : > { %1136 = vperm.xlu0 %1578, %v1130_v22  }
  0x5a   : > { %1573 = vset.pattern.permute.xlu1 %v1604_v18 }
  0x5b   : > { %1034 = vperm.xlu1 %1573, %v1720_v10  }
  0x5f   : > { %1574 = vset.pattern.permute.xlu1 %v1603_v17 }
  0x60   : > { %998 = vperm.xlu1 %1574, %v1730_v12  }
  0x64   : > { %1002 = vperm.xlu1 %1574, %v701_v14  }
  0x68   : > { %1576 = vset.pattern.permute.xlu1 %v1605_v19 }
  0x69   : > { %1095 = vperm.xlu1 %1576, %v1720_v10  }
  0x6d   : > { %1577 = vset.pattern.permute.xlu1 %v1604_v18 }
  0x6e   : > { %1042 = vperm.xlu1 %1577, %v701_v14  }
  0x72   : > { %1579 = vset.pattern.permute.xlu1 %v1605_v19  ;;  %v673_v19 = vsub.s32 0, %v1850_v3 }
  0x73   : > { %1103 = vperm.xlu1 %1579, %v701_v14  }
  0x77   : > { %1580 = vset.pattern.permute.xlu1 %v1597_v1 }
  0x78   : > { %709 = vperm.xlu1 %1580, %v1720_v10  }
  0x7c   : > { %714 = vperm.xlu1 %1580, %v1730_v12  }
  0x80   : > { %1141 = vperm.xlu1 %1580, %v1131_v23  }
  0x84   : > { %1146 = vperm.xlu1 %1580, %v1132_v24   ;;  %v669_v24 = vld [vmem:[%s2195_s1] sm:$0x7] }
  0x88   : > { %1151 = vperm.xlu1 %1580, %v1133_v25  }
  0x8e   : > { %v1783_v26 = vpop.permute.xlu1 %466 }
  0x90   : > { %v1791_v30 = vpop.permute.xlu0 %727 }
  0x92   : > { %v1785_v27 = vpop.permute.xlu1 %471 }
  0x95   : > { %v1795_v32 = vpop.permute.xlu0 %788 }
  0x97   : > { %v1787_v28 = vpop.permute.xlu1 %731 }
  0x9a   : > { %v1799_v34 = vpop.permute.xlu0 %828 }
  0x9b   : > { %v1789_v29 = vpop.permute.xlu1 %735 }
  0x9e   : > { %v1805_v37 = vpop.permute.xlu0 %836 }
  0xa0   : > { %v1793_v31 = vpop.permute.xlu1 %792 }
  0xa3   : > { %v1809_v39 = vpop.permute.xlu0 %889 }
  0xa5   : > { %v1797_v33 = vpop.permute.xlu1 %739 }
  0xa8   : > { %v1813_v41 = vpop.permute.xlu0 %929 }
  0xaa   : > { %v1801_v35 = vpop.permute.xlu1 %832 }
  0xac   : > { %v1817_v43 = vpop.permute.xlu0 %937 }
  0xaf   : > { %v1803_v36 = vpop.permute.xlu1 %796 }
  0xb1   : > { %v1823_v46 = vpop.permute.xlu0 %990 }
  0xb3   : > { %v1807_v38 = vpop.permute.xlu1 %800 }
  0xb6   : > { %v1827_v48 = vpop.permute.xlu0 %1030 }
  0xb8   : > { %v1811_v40 = vpop.permute.xlu1 %893 }
  0xba   : > { %v1831_v50 = vpop.permute.xlu0 %1038 }
  0xbd   : > { %v1815_v42 = vpop.permute.xlu1 %840 }
  0xbf   : > { %v1835_v52 = vpop.permute.xlu0 %1091 }
  0xc2   : > { %v1819_v44 = vpop.permute.xlu1 %933 }
  0xc3   : > { %v1841_v55 = vpop.permute.xlu0 %1099 }
  0xc4   : > { %2210 = vst [vmem:[#allocation2_spill] sm:$0xff] %v1841_v55  ;;  %v1872_v55 = vrot.slane %v669_v24, %v677_v21 }
  0xc7   : > { %v1821_v45 = vpop.permute.xlu1 %897 }
  0xc8   : > { %v457_v57 = vpop.permute.xlu0 %456 }
  0xcb   : > { %v1825_v47 = vpop.permute.xlu1 %901 }
  0xcc   : > { %v1847_v60 = vpop.permute.xlu0 %461 }
  0xd0   : > { %v1829_v49 = vpop.permute.xlu1 %994 }
  0xd5   : > { %v1833_v51 = vpop.permute.xlu1 %941 }
  0xda   : > { %v1837_v53 = vpop.permute.xlu1 %1034 }
  0xdf   : > { %v1839_v54 = vpop.permute.xlu1 %998 }
  0xe3   : > { %v1843_v56 = vpop.permute.xlu1 %1002 }
  0xe4   : > { %2211 = vst [vmem:[#allocation3_spill] sm:$0xff] %v1843_v56 }
  0xe8   : > { %v1845_v59 = vpop.permute.xlu1 %1095 }
  0xe9   : > { %2212 = vst [vmem:[#allocation4_spill] sm:$0xff] %v1845_v59 }
  0xeb   : > { %v541_v61 = vpop.f32.mrb[0].mxu0 }
  0xec   : > { %v1516_v62 = vpop.f32.mrb[0].mxu1  ;;  %v542_v63 = vadd.f32 %v541_v61, %v457_v57  ;;  %v543_v1 = vpop.f32.mrb[1].mxu0 }
  0xed   : > { %v603_v0 = vadd.f32 %v1516_v62, %v1783_v26  ;;  %v594_v2 = vpop.f32.mrb[1].mxu1  ;;  %v544_v4 = vadd.f32 %v543_v1, %v457_v57  ;;  %v545_v6 = vpop.f32.mrb[2].mxu0 }
  0xee   : > { %v595_v5 = vadd.f32 %v594_v2, %v457_v57  ;;  %v1517_v7 = vpop.f32.mrb[2].mxu1  ;;  %v609_v8 = vadd.f32 3.0, %v542_v63  ;;  %v546_v10 = vadd.f32 %v545_v6, %v1847_v60  ;;  %v1853_v11 = vpop.f32.mrb[3].mxu0 }
  0xef   : > { %v617_v9 = vadd.f32 3.0, %v603_v0  ;;  %v1855_v12 = vpop.f32.mrb[3].mxu1  ;;  %v610_v13 = vadd.f32 3.0, %v544_v4  ;;  %v1857_v15 = vpop.permute.xlu1 %1042  ;;  %v606_v61 = vadd.f32 %v1517_v7, %v1785_v27 }
  0xf0   : > { %v611_v14 = vadd.f32 3.0, %v595_v5  ;;  %2214 = vst [vmem:[#allocation6_spill] sm:$0xff] %v1857_v15  ;;  %v621_v16 = vmax.f32 %v609_v8, 0.0  ;;  %v612_v18 = vadd.f32 3.0, %v546_v10  ;;  %v681_v8 = vsub.s32 2, %v1850_v3 }
  0xf1   : > { %v629_v17 = vmax.f32 %v617_v9, 0.0  ;;  %v622_v20 = vmax.f32 %v610_v13, 0.0 }
  0xf2   : > { %v623_v22 = vmax.f32 %v611_v14, 0.0  ;;  %v633_v23 = vmin.f32 %v621_v16, 6.0  ;;  %v624_v25 = vmax.f32 %v612_v18, 0.0  ;;  %v674_v14 = vrot.slane %v669_v24, %v673_v19 }
  0xf3   : > { %v634_v57 = vmin.f32 %v622_v20, 6.0  ;;  %v551_v62 = vpop.f32.mrb[4].mxu0  ;;  %v1865_v1 = vpop.permute.xlu1 %1103  ;;  %v641_v6 = vmin.f32 %v629_v17, 6.0  ;;  %v1874_v17 = vrot.slane %v669_v24, %v681_v8 }
  0xf4   : > { %v635_v58 = vmin.f32 %v623_v22, 6.0  ;;  %2215 = vst [vmem:[#allocation7_spill] sm:$0xff] %v1865_v1  ;;  %v645_v2 = vmul.f32 %v633_v23, %v542_v63  ;;  %v636_v9 = vmin.f32 %v624_v25, 6.0  ;;  %v1868_v13 = vpop.f32.mrb[5].mxu0  ;;  %v620_v1 = vadd.f32 3.0, %v606_v61 }
  0xf5   : > { %v646_v16 = vmul.f32 %v634_v57, %v544_v4  ;;  %v555_v20 = vpop.f32.mrb[6].mxu0  ;;  %v653_v63 = vmul.f32 %v641_v6, %v603_v0 }
  0xf6   : > { %v647_v18 = vmul.f32 %v635_v58, %v595_v5  ;;  %v657_v22 = vmul.f32 0.16666667, %v645_v2  ;;  %v648_v7 = vmul.f32 %v636_v9, %v546_v10  ;;  %v557_v59 = vpop.f32.mrb[7].mxu0  ;;  %v552_v5 = vadd.f32 %v551_v62, %v1783_v26 }
  0xf7   : > { %v658_v56 = vmul.f32 0.16666667, %v646_v16  ;;  %v710_v4 = vpop.permute.xlu1 %709  ;;  %v632_v57 = vmax.f32 %v620_v1, 0.0  ;;  %v556_v10 = vadd.f32 %v555_v20, %v1785_v27  ;;  %v558_v58 = vadd.f32 %v557_v59, %v1785_v27 }
  0xf8   : > { %v659_v23 = vmul.f32 0.16666667, %v647_v18  ;;  %v660_v25 = vmul.f32 0.16666667, %v648_v7  ;;  %v1876_v15 = vmul.f32 %v674_v14, %v657_v22  ;;  %v665_v0 = vmul.f32 0.16666667, %v653_v63 }
  0xf9   : > { %v1879_v3 = vmul.f32 %v1872_v55, %v658_v56  ;;  %v615_v2 = vadd.f32 3.0, %v552_v5  ;;  %v618_v56 = vadd.f32 3.0, %v556_v10  ;;  %v619_v8 = vadd.f32 3.0, %v558_v58 }
  0xfa   : > { %v1881_v21 = vmul.f32 %v674_v14, %v660_v25  ;;  %v1887_v24 = vmul.f32 %v1874_v17, %v659_v23  ;;  %v742_v9 = vmul.f32 %v1791_v30, %v1876_v15  ;;  %v694_v27 = vmul.f32 %v1874_v17, %v665_v0 }
  0xfb   : > { %v743_v62 = vmul.f32 %v1791_v30, %v1879_v3  ;;  %v627_v1 = vmax.f32 %v615_v2, 0.0  ;;  %v630_v16 = vmax.f32 %v618_v56, 0.0  ;;  %v631_v18 = vmax.f32 %v619_v8, 0.0 }
  0xfc   : > { %v1890_v6 = vmul.f32 %v710_v4, %v1881_v21  ;;  %758 = vrot.lane.b32.xlu1 %v742_v9, %s1606_s14  ;;  %v644_v59 = vmin.f32 %v632_v57, 6.0  ;;  %v803_v63 = vmul.f32 %v1795_v32, %v1876_v15  ;;  %v844_v30 = vmul.f32 %v1799_v34, %v1887_v24  ;;  %v715_v32 = vpop.permute.xlu1 %714 }
  0xfd   : > { %760 = vrot.lane.b32.xlu0 %v743_v62, %s1606_s14  ;;  %v639_v20 = vmin.f32 %v627_v1, 6.0  ;;  %v642_v22 = vmin.f32 %v630_v16, 6.0  ;;  %v643_v7 = vmin.f32 %v631_v18, 6.0  ;;  %v548_v57 = vadd.f32 %v1853_v11, %v1847_v60  ;;  %v705_v11 = vpop.permute.xlu0 %704 }
  0xfe   : > { %v656_v0 = vmul.f32 %v644_v59, %v606_v61  ;;  %v848_v9 = vmul.f32 %v1805_v37, %v694_v27  ;;  %v598_v61 = vadd.f32 %v1855_v12, %v1847_v60  ;;  %v1046_v59 = vmul.f32 %v1827_v48, %v1879_v3 }
  0xff   : > { %v651_v23 = vmul.f32 %v639_v20, %v552_v5  ;;  %v654_v25 = vmul.f32 %v642_v22, %v556_v10  ;;  %v655_v4 = vmul.f32 %v643_v7, %v558_v58  ;;  %v945_v5 = vmul.f32 %v1813_v41, %v1887_v24 }
 0x100   : > { %811 = vrot.lane.b32.xlu1 %v803_v63, %s1607_s15  ;;  %v668_v16 = vmul.f32 0.16666667, %v656_v0  ;;  %v613_v18 = vadd.f32 3.0, %v548_v57  ;;  %v614_v20 = vadd.f32 3.0, %v598_v61  ;;  %v949_v12 = vmul.f32 %v1817_v43, %v694_v27 }
 0x101   : > { %861 = vrot.lane.b32.xlu0 %v844_v30, %s1608_s16  ;;  %v663_v2 = vmul.f32 0.16666667, %v651_v23  ;;  %v666_v56 = vmul.f32 0.16666667, %v654_v25  ;;  %v667_v8 = vmul.f32 0.16666667, %v655_v4  ;;  %v804_v7 = vmul.f32 %v1793_v31, %v1881_v21  ;;  %v720_v63 = vpop.permute.xlu0 %719 }
 0x102   : > { %v697_v22 = vmul.f32 %v1874_v17, %v668_v16  ;;  %v625_v60 = vmax.f32 %v613_v18, 0.0  ;;  %v626_v23 = vmax.f32 %v614_v20, 0.0  ;;  %v1005_v4 = vmul.f32 %v1823_v46, %v1876_v15 }
 0x103   : > { %v1910_v10 = vmul.f32 %v674_v14, %v663_v2  ;;  %v1912_v58 = vmul.f32 %v674_v14, %v666_v56  ;;  %v1915_v62 = vmul.f32 %v1872_v55, %v667_v8  ;;  %v906_v14 = vmul.f32 %v1821_v45, %v694_v27 }
 0x104   : > { %869 = vrot.lane.b32.xlu1 %v848_v9, %s1608_s16  ;;  %v1936_v45 = vmul.f32 %v705_v11, %v1876_v15  ;;  %v637_v25 = vmin.f32 %v625_v60, 6.0  ;;  %v850_v27 = vmul.f32 %v1815_v42, %v697_v22  ;;  %v638_v31 = vmin.f32 %v626_v23, 6.0  ;;  %v2219_v23 = vld [vmem:[#allocation2_spill] sm:$0xff] }
 0x105   : > { %962 = vrot.lane.b32.xlu0 %v945_v5, %s1609_s17  ;;  %v1922_v1 = vmul.f32 %v715_v32, %v1910_v10  ;;  %v1939_v30 = vmul.f32 %v720_v63, %v1912_v58  ;;  %v1045_v2 = vmul.f32 %v1827_v48, %v1876_v15  ;;  %v907_v56 = vmul.f32 %v1825_v47, %v697_v22  ;;  %v2218_v63 = vld [vmem:[#allocation4_spill] sm:$0xff] }
 0x106   : > { %v649_v0 = vmul.f32 %v637_v25, %v548_v57  ;;  %v650_v8 = vmul.f32 %v638_v31, %v598_v61  ;;  %v843_v32 = vmul.f32 %v1799_v34, %v1879_v3  ;;  %v1006_v9 = vmul.f32 %v1829_v49, %v1881_v21  ;;  %v2042_v31 = vpop.permute.xlu1 %1141 }
 0x107   : > { %v554_v47 = vadd.f32 %v1868_v13, %v1783_v26  ;;  %v904_v5 = vmul.f32 %v1809_v39, %v1887_v24  ;;  %v951_v11 = vmul.f32 %v1833_v51, %v697_v22  ;;  %v944_v61 = vmul.f32 %v1813_v41, %v1879_v3 }
 0x108   : > { %916 = vrot.lane.b32.xlu1 %v906_v14, %s1610_s18  ;;  %v661_v46 = vmul.f32 0.16666667, %v649_v0  ;;  %v662_v57 = vmul.f32 0.16666667, %v650_v8  ;;  %v744_v39 = vmul.f32 %v1787_v28, %v1881_v21  ;;  %v1047_v41 = vmul.f32 %v1837_v53, %v1881_v21 }
 0x109   : > { %1063 = vrot.lane.b32.xlu0 %v1046_v59, %s1611_s19  ;;  %v616_v49 = vadd.f32 3.0, %v554_v47  ;;  %v1007_v22 = vmul.f32 %v1839_v54, %v1910_v10  ;;  %v748_v54 = vmul.f32 %v1797_v33, %v1912_v58 }
 0x10a   : > { %v690_v48 = vmul.f32 %v1872_v55, %v661_v46  ;;  %v691_v34 = vmul.f32 %v1874_v17, %v662_v57  ;;  %v2044_v0 = vpop.permute.xlu1 %1146 }
 0x10b   : > { %v628_v26 = vmax.f32 %v616_v49, 0.0 }
 0x10c   : > { %970 = vrot.lane.b32.xlu1 %v949_v12, %s1609_s17  ;;  %v745_v16 = vmul.f32 %v1787_v28, %v690_v48  ;;  %v846_v13 = vmul.f32 %v1801_v35, %v691_v34  ;;  %v905_v3 = vmul.f32 %v1811_v40, %v691_v34  ;;  %v845_v18 = vmul.f32 %v1801_v35, %v690_v48 }
 0x10d   : > { %813 = vrot.lane.b32.xlu0 %v804_v7, %s1607_s15  ;;  %v640_v17 = vmin.f32 %v628_v26, 6.0  ;;  %v947_v28 = vmul.f32 %v1819_v44, %v691_v34  ;;  %v946_v59 = vmul.f32 %v1819_v44, %v690_v48  ;;  %v1048_v20 = vmul.f32 %v1837_v53, %v690_v48 }
 0x10e   : > { %v746_v35 = vmul.f32 %v1789_v29, %v1910_v10  ;;  %v805_v44 = vmul.f32 %v1803_v36, %v1910_v10  ;;  %v806_v7 = vmul.f32 %v1807_v38, %v1912_v58 }
 0x10f   : > { %v652_v24 = vmul.f32 %v640_v17, %v554_v47 }
 0x110   : > { %1013 = vrot.lane.b32.xlu1 %v1005_v4, %s1612_s20  ;;  %v2220_v4 = vld [vmem:[#allocation7_spill] sm:$0xff] }
 0x111   : > { %873 = vrot.lane.b32.xlu0 %v850_v27, %s1608_s16  ;;  %v664_v14 = vmul.f32 0.16666667, %v652_v24  ;;  %v1109_v27 = vmul.f32 %v2220_v4, %v1912_v58 }
 0x113   : > { %v693_v40 = vmul.f32 %v1872_v55, %v664_v14  ;;  %v1049_v55 = vmul.f32 %v1831_v50, %v1910_v10 }
 0x114   : > { %1061 = vrot.lane.b32.xlu1 %v1045_v2, %s1611_s19  ;;  %v2046_v2 = vpop.permute.xlu0 %1136 }
 0x115   : > { %918 = vrot.lane.b32.xlu0 %v907_v56, %s1610_s18  ;;  %v747_v53 = vmul.f32 %v1789_v29, %v693_v40  ;;  %v847_v60 = vmul.f32 %v1805_v37, %v693_v40  ;;  %v948_v36 = vmul.f32 %v1817_v43, %v693_v40  ;;  %v1106_v29 = vmul.f32 %v1835_v52, %v1876_v15  ;;  %v2216_v52 = vld [vmem:[#allocation6_spill] sm:$0xff]  ;;  %v2217_v15 = vld [vmem:[#allocation3_spill] sm:$0xff] }
 0x116   : > { %v1050_v12 = vmul.f32 %v1831_v50, %v693_v40  ;;  %v849_v37 = vmul.f32 %v1815_v42, %v1915_v62  ;;  %v950_v43 = vmul.f32 %v1833_v51, %v1915_v62  ;;  %v749_v50 = vmul.f32 %v1797_v33, %v1915_v62 }
 0x117   : > { %v1051_v42 = vmul.f32 %v2216_v52, %v1912_v58  ;;  %v1008_v38 = vmul.f32 %v2217_v15, %v1912_v58  ;;  %v1107_v51 = vmul.f32 %v2218_v63, %v1881_v21  ;;  %v1108_v33 = vmul.f32 %v2219_v23, %v1910_v10  ;;  %v2048_v21 = vpop.permute.xlu1 %1151 }
 0x118   : > { %859 = vrot.lane.b32.xlu1 %v843_v32, %s1608_s16  ;;  %v1052_v25 = vmul.f32 %v2216_v52, %v1915_v62 }
 0x119   : > { %1015 = vrot.lane.b32.xlu0 %v1006_v9, %s1612_s20 }
 0x11c   : > { %912 = vrot.lane.b32.xlu1 %v904_v5, %s1610_s18 }
 0x11d   : > { %974 = vrot.lane.b32.xlu0 %v951_v11, %s1609_s17 }
 0x120   : > { %960 = vrot.lane.b32.xlu1 %v944_v61, %s1609_s17 }
 0x121   : > { %764 = vrot.lane.b32.xlu0 %v745_v16, %s1606_s14 }
 0x124   : > { %762 = vrot.lane.b32.xlu1 %v744_v39, %s1606_s14 }
 0x125   : > { %865 = vrot.lane.b32.xlu0 %v846_v13, %s1608_s16 }
 0x128   : > { %1065 = vrot.lane.b32.xlu1 %v1047_v41, %s1611_s19 }
 0x129   : > { %914 = vrot.lane.b32.xlu0 %v905_v3, %s1610_s18 }
 0x12c   : > { %863 = vrot.lane.b32.xlu1 %v845_v18, %s1608_s16 }
 0x12d   : > { %966 = vrot.lane.b32.xlu0 %v947_v28, %s1609_s17 }
 0x130   : > { %964 = vrot.lane.b32.xlu1 %v946_v59, %s1609_s17 }
 0x131   : > { %1067 = vrot.lane.b32.xlu0 %v1048_v20, %s1611_s19 }
 0x134   : > { %766 = vrot.lane.b32.xlu1 %v746_v35, %s1606_s14 }
 0x135   : > { %1017 = vrot.lane.b32.xlu0 %v1007_v22, %s1612_s20 }
 0x138   : > { %815 = vrot.lane.b32.xlu1 %v805_v44, %s1607_s15 }
 0x139   : > { %768 = vrot.lane.b32.xlu0 %v747_v53, %s1606_s14 }
 0x13c   : > { %1069 = vrot.lane.b32.xlu1 %v1049_v55, %s1611_s19 }
 0x13d   : > { %867 = vrot.lane.b32.xlu0 %v847_v60, %s1608_s16 }
 0x140   : > { %770 = vrot.lane.b32.xlu1 %v748_v54, %s1606_s14 }
 0x141   : > { %968 = vrot.lane.b32.xlu0 %v948_v36, %s1609_s17 }
 0x144   : > { %1114 = vrot.lane.b32.xlu1 %v1106_v29, %s1613_s21 }
 0x145   : > { %1071 = vrot.lane.b32.xlu0 %v1050_v12, %s1611_s19 }
 0x148   : > { %871 = vrot.lane.b32.xlu1 %v849_v37, %s1608_s16  ;;  %s1527_s16 = smul.u32 12, %s2223_s26 }
 0x149   : > { %817 = vrot.lane.b32.xlu0 %v806_v7, %s1607_s15  ;;  %s1614_s15 = smov 11  }
 0x14c   : > { %972 = vrot.lane.b32.xlu1 %v950_v43, %s1609_s17 }
 0x14d   : > { %772 = vrot.lane.b32.xlu0 %v749_v50, %s1606_s14 }
 0x150   : > { %1073 = vrot.lane.b32.xlu1 %v1051_v42, %s1611_s19 }
 0x151   : > { %1019 = vrot.lane.b32.xlu0 %v1008_v38, %s1612_s20 }
 0x154   : > { %1118 = vrot.lane.b32.xlu1 %v1108_v33, %s1613_s21 }
 0x155   : > { %1116 = vrot.lane.b32.xlu0 %v1107_v51, %s1613_s21 }
 0x159   : > { %1075 = vrot.lane.b32.xlu0 %v1052_v25, %s1611_s19  ;;  %s440_s19 = scalar_lea.vmem %s2207_s13, %s1527_s16 }
 0x15d   : > { %1120 = vrot.lane.b32.xlu0 %v1109_v27, %s1613_s21 }
 0x16e   : > { %v759_v10 = vpop.permute.xlu1 %758 }
 0x16f   : > { %v761_v56 = vpop.permute.xlu0 %760 }
 0x170   : > { %v775_v18 = vsel %vm774_vm1, %v759_v10, %v761_v56 }
 0x171   : > { %v783_v59 = vadd.f32 %v775_v18, %v1936_v45 }
 0x172   : > { %v812_v8 = vpop.permute.xlu1 %811 }
 0x173   : > { %v862_v46 = vpop.permute.xlu0 %861  ;;  %v823_v22 = vadd.f32 %v812_v8, %v783_v59 }
 0x176   : > { %v870_v32 = vpop.permute.xlu1 %869 }
 0x177   : > { %v963_v62 = vpop.permute.xlu0 %962 }
 0x17a   : > { %v917_v9 = vpop.permute.xlu1 %916 }
 0x17b   : > { %v1064_v57 = vpop.permute.xlu0 %1063 }
 0x17e   : > { %v971_v48 = vpop.permute.xlu1 %970 }
 0x17f   : > { %v814_v47 = vpop.permute.xlu0 %813 }
 0x182   : > { %v1014_v58 = vpop.permute.xlu1 %1013 }
 0x183   : > { %v2050_v5 = vpop.permute.xlu0 %873 }
 0x186   : > { %v1062_v11 = vpop.permute.xlu1 %1061 }
 0x187   : > { %v2052_v34 = vpop.permute.xlu0 %918 }
 0x18a   : > { %v860_v49 = vpop.permute.xlu1 %859 }
 0x18b   : > { %v2054_v61 = vpop.permute.xlu0 %1015  ;;  %v876_v35 = vsel %vm875_vm2, %v860_v49, %v862_v46 }
 0x18c   : > { %v884_v55 = vadd.f32 %v876_v35, %v823_v22  ;;  %v2081_v35 = vld [vmem:[%s2200_s6] ss:$0 sm:$0xff] }
 0x18e   : > { %v913_v16 = vpop.permute.xlu1 %912 }
 0x18f   : > { %v2056_v26 = vpop.permute.xlu0 %974  ;;  %v924_v29 = vadd.f32 %v913_v16, %v884_v55 }
 0x192   : > { %v961_v39 = vpop.permute.xlu1 %960 }
 0x193   : > { %v765_v13 = vpop.permute.xlu0 %764  ;;  %v977_v60 = vsel %vm976_vm3, %v961_v39, %v963_v62 }
 0x194   : > { %v985_v7 = vadd.f32 %v977_v60, %v924_v29 }
 0x196   : > { %v763_v17 = vpop.permute.xlu1 %762  ;;  %v1025_v63 = vadd.f32 %v1014_v58, %v985_v7 }
 0x197   : > { %v866_v41 = vpop.permute.xlu0 %865  ;;  %v776_v37 = vsel %vm774_vm1, %v763_v17, %v765_v13 }
 0x198   : > { %v784_v42 = vadd.f32 %v776_v37, %v1890_v6 }
 0x19a   : > { %v2058_v3 = vpop.permute.xlu1 %1065  ;;  %v824_v4 = vadd.f32 %v814_v47, %v784_v42 }
 0x19b   : > { %v915_v24 = vpop.permute.xlu0 %914 }
 0x19e   : > { %v864_v28 = vpop.permute.xlu1 %863 }
 0x19f   : > { %v967_v14 = vpop.permute.xlu0 %966  ;;  %v877_v51 = vsel %vm875_vm2, %v864_v28, %v866_v41 }
 0x1a0   : > { %v885_v56 = vadd.f32 %v877_v51, %v824_v4 }
 0x1a2   : > { %v965_v20 = vpop.permute.xlu1 %964 }
 0x1a3   : > { %v1068_v40 = vpop.permute.xlu0 %1067  ;;  %v978_v58 = vsel %vm976_vm3, %v965_v20, %v967_v14 }
 0x1a6   : > { %v767_v44 = vpop.permute.xlu1 %766 }
 0x1a7   : > { %v1018_v53 = vpop.permute.xlu0 %1017 }
 0x1aa   : > { %v816_v54 = vpop.permute.xlu1 %815 }
 0x1ab   : > { %v769_v36 = vpop.permute.xlu0 %768 }
 0x1ac   : > { %v777_v12 = vsel %vm774_vm1, %v767_v44, %v769_v36 }
 0x1ad   : > { %v785_v45 = vadd.f32 %v777_v12, %v1922_v1  ;;  %v1078_v1 = vsel %vm1077_vm4, %v1062_v11, %v1064_v57 }
 0x1ae   : > { %v1070_v43 = vpop.permute.xlu1 %1069  ;;  %v1086_v8 = vadd.f32 %v1078_v1, %v1025_v63 }
 0x1af   : > { %v868_v50 = vpop.permute.xlu0 %867  ;;  %v825_v52 = vadd.f32 %v816_v54, %v785_v45 }
 0x1b0   : > { %v878_v15 = vsel %vm875_vm2, %v868_v50, %v870_v32  ;;  %v925_v32 = vadd.f32 %v915_v24, %v885_v56 }
 0x1b1   : > { %v886_v38 = vadd.f32 %v878_v15, %v825_v52 }
 0x1b2   : > { %v771_v23 = vpop.permute.xlu1 %770 }
 0x1b3   : > { %v969_v33 = vpop.permute.xlu0 %968  ;;  %v926_v25 = vadd.f32 %v917_v9, %v886_v38  ;;  %v986_v9 = vadd.f32 %v978_v58, %v925_v32 }
 0x1b4   : > { %v979_v27 = vsel %vm976_vm3, %v969_v33, %v971_v48 }
 0x1b5   : > { %v987_v10 = vadd.f32 %v979_v27, %v926_v25  ;;  %v1026_v24 = vadd.f32 %v2054_v61, %v986_v9 }
 0x1b6   : > { %v1115_v46 = vpop.permute.xlu1 %1114 }
 0x1b7   : > { %v1072_v6 = vpop.permute.xlu0 %1071  ;;  %v1126_v62 = vadd.f32 %v1115_v46, %v1086_v8  ;;  %v1027_v28 = vadd.f32 %v1018_v53, %v987_v10 }
 0x1b9   : > { %v1154_v49 = vadd.f32 %v2046_v2, %v1126_v62  ;;  %v1080_v2 = vsel %vm1077_vm4, %v1070_v43, %v1072_v6 }
 0x1ba   : > { %v872_v16 = vpop.permute.xlu1 %871  ;;  %v1088_v61 = vadd.f32 %v1080_v2, %v1027_v28  ;;  %v1209_v2 = vld [vmem:[%s2201_s7 + $0x18] sm:$0xff] }
 0x1bb   : > { %v818_v39 = vpop.permute.xlu0 %817  ;;  %v1158_v13 = vadd.f32 3.0, %v1154_v49  ;;  %v879_v44 = vsel %vm875_vm2, %v872_v16, %v2050_v5 }
 0x1bd   : > { %v1162_v47 = vmax.f32 %v1158_v13, 0.0 }
 0x1be   : > { %v973_v17 = vpop.permute.xlu1 %972 }
 0x1bf   : > { %v773_v48 = vpop.permute.xlu0 %772  ;;  %v1166_v41 = vmin.f32 %v1162_v47, 6.0  ;;  %v980_v12 = vsel %vm976_vm3, %v973_v17, %v2056_v26  ;;  %v1206_v17 = vld [vmem:[%s2201_s7] sm:$0xff] }
 0x1c0   : > { %v778_v57 = vsel %vm774_vm1, %v771_v23, %v773_v48 }
 0x1c1   : > { %v786_v11 = vadd.f32 %v778_v57, %v1939_v30  ;;  %v1170_v18 = vmul.f32 %v1166_v41, %v1154_v49  ;;  %v1079_v30 = vsel %vm1077_vm4, %v2058_v3, %v1068_v40  ;;  %v1208_v41 = vld [vmem:[%s2201_s7 + $0x10] sm:$0xff] }
 0x1c2   : > { %v1074_v14 = vpop.permute.xlu1 %1073  ;;  %v1087_v55 = vadd.f32 %v1079_v30, %v1026_v24 }
 0x1c3   : > { %v826_v59 = vadd.f32 %v818_v39, %v786_v11  ;;  %v1020_v20 = vpop.permute.xlu0 %1019  ;;  %v2083_v22 = vmul.f32 0.16666667, %v1170_v18  ;;  %v1207_v39 = vld [vmem:[%s2201_s7 + $0x8] sm:$0xff] }
 0x1c5   : > { %v887_v53 = vadd.f32 %v879_v44, %v826_v59  ;;  %v1185_v60 = vmul.f32 %v2081_v35, %v2083_v22 }
 0x1c6   : > { %v1119_v36 = vpop.permute.xlu1 %1118 }
 0x1c7   : > { %v927_v54 = vadd.f32 %v2052_v34, %v887_v53  ;;  %v1117_v29 = vpop.permute.xlu0 %1116  ;;  %v1128_v37 = vadd.f32 %v1119_v36, %v1088_v61  ;;  %v1190_v5 = vsel %vm1189_vm5, %v1185_v60, 0.0 }
 0x1c8   : > { %v1127_v45 = vadd.f32 %v1117_v29, %v1087_v55  ;;  %1191 = vadd.xlane.f32.xlu1 %v1190_v5 }
 0x1c9   : > { %v988_v7 = vadd.f32 %v980_v12, %v927_v54  ;;  %v1156_v3 = vadd.f32 %v2044_v0, %v1128_v37 }
 0x1ca   : > { %v1155_v40 = vadd.f32 %v2042_v31, %v1127_v45  ;;  %v1228_v45 = vld [vmem:[%s2202_s8] sm:$0x1] }
 0x1cb   : > { %v1028_v43 = vadd.f32 %v1020_v20, %v988_v7  ;;  %v1076_v50 = vpop.permute.xlu0 %1075  ;;  %v1160_v52 = vadd.f32 3.0, %v1156_v3 }
 0x1cc   : > { %v1159_v42 = vadd.f32 3.0, %v1155_v40  ;;  %v1081_v34 = vsel %vm1077_vm4, %v1074_v14, %v1076_v50 }
 0x1cd   : > { %v1089_v15 = vadd.f32 %v1081_v34, %v1028_v43  ;;  %v1164_v38 = vmax.f32 %v1160_v52, 0.0  ;;  %v1231_v43 = vld [vmem:[%s2203_s9] sm:$0xff]  ;;  %v1233_v34 = vld [vmem:[%s2203_s9 + $0x10] sm:$0xff] }
 0x1ce   : > { %v1163_v63 = vmax.f32 %v1159_v42, 0.0  ;;  %v1234_v42 = vld [vmem:[%s2203_s9 + $0x18] sm:$0xff] }
 0x1cf   : > { %v1121_v26 = vpop.permute.xlu0 %1120  ;;  %v1168_v51 = vmin.f32 %v1164_v38, 6.0 }
 0x1d0   : > { %v1167_v23 = vmin.f32 %v1163_v63, 6.0  ;;  %v1129_v33 = vadd.f32 %v1121_v26, %v1089_v15 }
 0x1d1   : > { %v1172_v25 = vmul.f32 %v1168_v51, %v1156_v3 }
 0x1d2   : > { %v1171_v4 = vmul.f32 %v1167_v23, %v1155_v40  ;;  %v1157_v27 = vadd.f32 %v2048_v21, %v1129_v33  ;;  %v1232_v40 = vld [vmem:[%s2203_s9 + $0x8] sm:$0xff] }
 0x1d3   : > { %v2101_v31 = vmul.f32 0.16666667, %v1172_v25  ;;  %v1256_v25 = vld [vmem:[%s2204_s10 + $0x8] sm:$0xff] }
 0x1d4   : > { %v1161_v0 = vadd.f32 3.0, %v1157_v27  ;;  %v2099_v1 = vmul.f32 0.16666667, %v1171_v4  ;;  %v1255_v4 = vld [vmem:[%s2204_s10] sm:$0xff] }
 0x1d5   : > { %v1187_v6 = vmul.f32 %v2081_v35, %v2101_v31 }
 0x1d6   : > { %v1165_v10 = vmax.f32 %v1161_v0, 0.0  ;;  %v1186_v56 = vmul.f32 %v2081_v35, %v2099_v1 }
 0x1d7   : > { %v1196_v21 = vsel %vm1189_vm5, %v1187_v6, 0.0 }
 0x1d8   : > { %v1169_v8 = vmin.f32 %v1165_v10, 6.0  ;;  %v1193_v46 = vsel %vm1189_vm5, %v1186_v56, 0.0 }
 0x1d9   : > { %1194 = vadd.xlane.f32.xlu0 %v1193_v46  ;;  %v1257_v46 = vld [vmem:[%s2204_s10 + $0x10] sm:$0xff] }
 0x1da   : > { %v1173_v62 = vmul.f32 %v1169_v8, %v1157_v27  ;;  %v1258_v8 = vld [vmem:[%s2204_s10 + $0x18] sm:$0xff] }
 0x1dc   : > { %v2108_v32 = vmul.f32 0.16666667, %v1173_v62 }
 0x1dd   : > { %1197 = vadd.xlane.f32.xlu0 %v1196_v21 }
 0x1de   : > { %v1188_v49 = vmul.f32 %v2081_v35, %v2108_v32 }
 0x1e0   : > { %v1199_v58 = vsel %vm1189_vm5, %v1188_v49, 0.0 }
 0x1e1   : > { %1200 = vadd.xlane.f32.xlu1 %v1199_v58 }
 0x255   : > { %v1192_v16 = vpop.xlane.xlu1 %1191 }
 0x256   : > { %v1202_v9 = vmul.f32 0.015625, %v1192_v16 }
 0x258   : > { %v1210_v11 = vmul.f32 %v1206_v17, %v1202_v9 }
 0x25a   : > { %v1215_v14 = vsel %vm1214_vm6, %v1210_v11, 0.0 }
 0x266   : > { %v1195_v13 = vpop.xlane.xlu0 %1194 }
 0x267   : > { %v1203_v47 = vmul.f32 0.015625, %v1195_v13 }
 0x269   : > { %v1211_v48 = vmul.f32 %v1207_v39, %v1203_v47 }
 0x26a   : > { %v1198_v57 = vpop.xlane.xlu0 %1197 }
 0x26b   : > { %v1204_v18 = vmul.f32 0.015625, %v1198_v57  ;;  %v1216_v28 = vsel %vm1214_vm6, %v1211_v48, 0.0 }
 0x26c   : > { %v1217_v30 = vadd.f32 %v1216_v28, %v1215_v14  ;;  %v1309_v14 = vld [vmem:[%s2206_s12 + $0x8] sm:$0xff] }
 0x26d   : > { %v1212_v24 = vmul.f32 %v1208_v41, %v1204_v18 }
 0x26e   : > { %v1201_v59 = vpop.xlane.xlu1 %1200 }
 0x26f   : > { %v1218_v20 = vsel %vm1214_vm6, %v1212_v24, 0.0  ;;  %v1205_v44 = vmul.f32 0.015625, %v1201_v59 }
 0x270   : > { %v1219_v61 = vadd.f32 %v1218_v20, %v1217_v30  ;;  %v1308_v20 = vld [vmem:[%s2206_s12] sm:$0xff] }
 0x271   : > { %v1213_v53 = vmul.f32 %v1209_v2, %v1205_v44  ;;  %v1310_v44 = vld [vmem:[%s2206_s12 + $0x10] sm:$0xff]  ;;  %v1587_v30 = vld [vmem:[%s2205_s11] sm:$0xff]  }
 0x272   : > { %1522 = vmatprep.mubr.msk.bf16.mxu1 %vm1334_vm7, %v1587_v30 }
 0x273   : > { %v1220_v55 = vsel %vm1214_vm6, %v1213_v53, 0.0 }
 0x274   : > { %v1221_v60 = vadd.f32 %v1220_v55, %v1219_v61 }
 0x276   : > { %v1222_v54 = vrot.slane %v1221_v60, 4 }
 0x278   : > { %v1223_v36 = vadd.f32 %v1222_v54, %v1221_v60 }
 0x27a   : > { %v1224_v29 = vrot.slane %v1223_v36, 2 }
 0x27c   : > { %v1225_v12 = vadd.f32 %v1224_v29, %v1223_v36 }
 0x27e   : > { %v1226_v37 = vrot.slane %v1225_v12, 1 }
 0x280   : > { %v1227_v5 = vadd.f32 %v1226_v37, %v1225_v12 }
 0x282   : > { %v1229_v7 = vadd.f32 %v1228_v45, %v1227_v5  ;;  %v1588_v5 = vld [vmem:[%s2205_s11 + $0x8] ss:$0 sps:$4 sm:$0xff]  }
 0x284   : > { %v1230_v3 = vmax.f32 %v1229_v7, 0.0 }
 0x286   : > { %v1238_v52 = vrot.slane %v1230_v3, %v673_v19 }
 0x288   : > { %v1240_v15 = vmul.f32 %v1238_v52, %v1232_v40  ;;  %v1239_v38 = vmul.f32 %v1238_v52, %v1231_v43  ;;  %v1242_v51 = vmul.f32 %v1238_v52, %v1234_v42  ;;  %v1241_v23 = vmul.f32 %v1238_v52, %v1233_v34 }
 0x28a   : > { %v1246_v63 = vsel %vm1214_vm6, %v1240_v15, 0.0  ;;  %v1243_v26 = vsel %vm1214_vm6, %v1239_v38, 0.0  ;;  %v1252_v19 = vsel %vm1214_vm6, %v1242_v51, 0.0  ;;  %v1249_v33 = vsel %vm1214_vm6, %v1241_v23, 0.0 }
 0x28b   : > { %1247 = vadd.xlane.f32.xlu1 %v1246_v63  ;;  %1244 = vadd.xlane.f32.xlu0 %v1243_v26 }
 0x28f   : > { %1253 = vadd.xlane.f32.xlu1 %v1252_v19  ;;  %1250 = vadd.xlane.f32.xlu0 %v1249_v33 }
 0x318   : > { %v1248_v27 = vpop.xlane.xlu1 %1247  ;;  %v1245_v0 = vpop.xlane.xlu0 %1244 }
 0x319   : > { %v1260_v10 = vadd.f32 %v1256_v25, %v1248_v27  ;;  %v1259_v56 = vadd.f32 %v1255_v4, %v1245_v0 }
 0x31b   : > { %v1264_v6 = vadd.f32 3.0, %v1260_v10  ;;  %v1263_v62 = vadd.f32 3.0, %v1259_v56 }
 0x31c   : > { %v1254_v21 = vpop.xlane.xlu1 %1253  ;;  %v1251_v49 = vpop.xlane.xlu0 %1250 }
 0x31d   : > { %v1268_v58 = vmax.f32 %v1264_v6, 0.0  ;;  %v1267_v16 = vmax.f32 %v1263_v62, 0.0  ;;  %v1262_v39 = vadd.f32 %v1258_v8, %v1254_v21  ;;  %v1261_v13 = vadd.f32 %v1257_v46, %v1251_v49 }
 0x31f   : > { %v1272_v9 = vmin.f32 %v1268_v58, 6.0  ;;  %v1271_v47 = vmin.f32 %v1267_v16, 6.0  ;;  %v1266_v17 = vadd.f32 3.0, %v1262_v39  ;;  %v1265_v48 = vadd.f32 3.0, %v1261_v13 }
 0x321   : > { %v1276_v41 = vmul.f32 0.16666667, %v1272_v9  ;;  %v1275_v57 = vmul.f32 0.16666667, %v1271_v47  ;;  %v1270_v11 = vmax.f32 %v1266_v17, 0.0  ;;  %v1269_v18 = vmax.f32 %v1265_v48, 0.0 }
 0x323   : > { %v1274_v28 = vmin.f32 %v1270_v11, 6.0  ;;  %v1273_v24 = vmin.f32 %v1269_v18, 6.0  ;;  %1286 = vperm.xlu1 %1580, %v1276_v41   ;;  %1281 = vperm.xlu0 %1578, %v1275_v57  }
 0x325   : > { %v1278_v2 = vmul.f32 0.16666667, %v1274_v28  ;;  %v1277_v59 = vmul.f32 0.16666667, %v1273_v24 }
 0x327   : > { %1296 = vperm.xlu0 %1578, %v1278_v2   ;;  %1291 = vperm.xlu1 %1580, %v1277_v59  }
 0x32b   : > { %1318 = vperm.xlu0 %1578, %v1309_v14   ;;  %1313 = vperm.xlu1 %1580, %v1308_v20  }
 0x32f   : > { %1323 = vperm.xlu1 %1580, %v1310_v44  }
 0x3a2   : > { %v1287_v53 = vpop.permute.xlu1 %1286  ;;  %v1282_v61 = vpop.permute.xlu0 %1281 }
 0x3a3   : > { %v1300_v55 = vmul.f32 %v1287_v53, %v2099_v1  ;;  %v1299_v60 = vmul.f32 %v1282_v61, %v2083_v22 }
 0x3a5   : > { %v1306_v54 = vpack.c.bf16 %v1300_v55, %v1299_v60 }
 0x3a6   : > { %v1292_v36 = vpop.permute.xlu1 %1291  ;;  %v1297_v29 = vpop.permute.xlu0 %1296 }
 0x3a7   : > { %v1301_v12 = vmul.f32 %v1292_v36, %v2101_v31  ;;  %v1302_v37 = vmul.f32 %v1297_v29, %v2108_v32  ;;  %1518 = vmatprep.subr.bf16.mxu1 %v1306_v54 }
 0x3a8   : > { %1519 = vmatpush3.bf16.msra.mxu1 %v1306_v54 }
 0x3a9   : > { %v1307_v45 = vpack.c.bf16 %v1302_v37, %v1301_v12 }
 0x3aa   : > { %v1314_v1 = vpop.permute.xlu1 %1313  ;;  %v1319_v32 = vpop.permute.xlu0 %1318 }
 0x3ab   : > { %1520 = vmatprep.subr.bf16.mxu1 %v1307_v45 }
 0x3ac   : > { %1521 = vmatpush3.bf16.msra.mxu1 %v1307_v45 }
 0x3ae   : > { %v1324_v22 = vpop.permute.xlu1 %1323 }
 0x3af   : > { %1523 = vmatmul.mubr.msk.bf16.vlgmr.msra.gmra.mrb[4].mxu1 %vm1334_vm7, %v1588_v5 }
 0x482   : > { %v1524_v7 = vpop.f32.mrb[4].mxu1 }
 0x483   : > { %v1384_v3 = vadd.f32 %v1524_v7, %v1324_v22  ;;  %v1375_v40 = vpop.f32.mrb[5].mxu1 }
 0x484   : > { %v1376_v31 = vadd.f32 %v1375_v40, %v1314_v1  ;;  %v1525_v43 = vpop.f32.mrb[6].mxu1 }
 0x485   : > { %v1391_v50 = vmul.f32 %v2081_v35, %v1384_v3  ;;  %v1378_v52 = vpop.f32.mrb[7].mxu1 }
 0x486   : > { %v1379_v42 = vadd.f32 %v1378_v52, %v1319_v32  ;;  %v1389_v15 = vmul.f32 %v2081_v35, %v1376_v31 }
 0x487   : > { %v1393_v34 = vpack.c.bf16 %v1391_v50, %v1391_v50 }
 0x488   : > { %v1390_v38 = vmul.f32 %v2081_v35, %v1379_v42 }
 0x489   : > { %1398 = vrot.lane.b32.xlu1 %v1393_v34, %s1614_s15 }
 0x48a   : > { %v1392_v63 = vpack.c.bf16 %v1390_v38, %v1389_v15 }
 0x48c   : > { %1396 = vrot.lane.b32.xlu0 %v1392_v63, %s1614_s15 }
 0x4fb   : > { %v1399_v26 = vpop.permute.xlu1 %1398 }
 0x4fc   : > { %v1405_v51 = vsel %vm1400_vm8, 0, %v1399_v26 }
 0x4fd   : > { %v1408_v23 = vsel %vm1406_vm9, %v1405_v51, 0 }
 0x4fe   : > { %v1502_v19 = vcombine.low %v1408_v23, %v1408_v23  ;;  %v1397_v33 = vpop.permute.xlu0 %1396 }
 0x4ff   : > { %v1403_v25 = vsel %vm1400_vm8, 0, %v1397_v33 }
 0x500   : > { %1423 = vst.msk [vmem:[%s440_s19 + $0x8] sm:$0xf] %vm1420_vm10, %v1502_v19  ;;  %v1407_v35 = vsel %vm1406_vm9, %v1403_v25, 0 }
 0x501   : > { %v1500_v4 = vcombine.low %v1407_v35, %v1407_v35  ;;  %v1501_v27 = vcombine.high %v1407_v35, %v1407_v35 }
 0x503   : > { %1421 = vst.msk [vmem:[%s440_s19] sm:$0xf] %vm1420_vm10, %v1500_v4  ;;  %1422 = vst.msk [vmem:[%s440_s19 + $0x4] sm:$0xf] %vm1420_vm10, %v1501_v27 }
 0x504 PF: > { %s23_s25 = sadd.s32 1, %s1595_s25  }
 0x505   : > { %p20_p4 = scmp.ge.s32.totalorder %s23_s25, 4  }
 0x507   :  { %22 = sbr.rel (!%p20_p4) target bundleno = 1 (0x1), region = 102 }

</bundles_post_ra>
